<compile_context>
chip_gen: v6e
topology: v6e:2x2x1
jax: 0.10.0
libtpu: 0.0.40
codegen_flags: <defaults>
</compile_context>

<pallas_src>
import jax
import jax.numpy as jnp
from jax import lax
from jax.experimental import pallas as pl
from jax.experimental.pallas import tpu as pltpu


_NEG_INF = -1e9


def _round_up(x, m):
    return ((x + m - 1) // m) * m


def _make_cross_attention_kernel(*, nhead, head_dim, eps, normalize_before,
                                 compute_dtype, has_memory_mask):
    """Builds the fused kernel. Ref order:
       tgt, qpos, mem, pos, kp_bias, [mm], wq, bq, wk, bk, wv, bv, wo, bo,
       gamma, beta, out, q_sc, m_sc, l_sc, acc_sc."""

    def kernel(*refs):
        tgt_ref, qpos_ref, mem_ref, pos_ref, kp_ref = refs[:5]
        i = 5
        mm_ref = None
        if has_memory_mask:
            mm_ref = refs[5]
            i = 6
        (wq_ref, bq_ref, wk_ref, bk_ref, wv_ref, bv_ref, wo_ref, bo_ref,
         gamma_ref, beta_ref, o_ref, q_sc, m_sc, l_sc, acc_sc) = refs[i:]

        s_idx = pl.program_id(1)
        n_s = pl.num_programs(1)

        gamma = gamma_ref[...].astype(jnp.float32)     # (1, D)
        beta = beta_ref[...].astype(jnp.float32)       # (1, D)

        def layer_norm(x):
            mu = jnp.mean(x, axis=-1, keepdims=True)
            xc = x - mu
            var = jnp.mean(xc * xc, axis=-1, keepdims=True)
            return xc * lax.rsqrt(var + eps) * gamma + beta

        # ---------------- per-batch init (first S tile) -------------------
        @pl.when(s_idx == 0)
        def _init():
            tgt = tgt_ref[0].astype(jnp.float32)       # (L, D)
            qpos = qpos_ref[0].astype(jnp.float32)     # (L, D)
            x_q = layer_norm(tgt) if normalize_before else tgt
            q_in = (x_q + qpos).astype(compute_dtype)
            # head_dim**-0.5 is already folded into wq / bq by the wrapper.
            q_full = (jnp.dot(q_in, wq_ref[...],
                              preferred_element_type=jnp.float32)
                      + bq_ref[...].astype(jnp.float32))           # (L, D) f32
            for h in range(nhead):
                q_sc[h] = q_full[:, h * head_dim:(h + 1) * head_dim].astype(
                    compute_dtype)
            m_sc[...] = jnp.full(m_sc.shape, -jnp.inf, jnp.float32)
            l_sc[...] = jnp.zeros(l_sc.shape, jnp.float32)
            acc_sc[...] = jnp.zeros(acc_sc.shape, jnp.float32)

        # -------------- per-S-tile body: K/V proj + online softmax --------
        kp = kp_ref[0]                                  # (1, TS) additive bias
        if has_memory_mask:
            bias = kp + mm_ref[...]                     # (L, TS)
        else:
            bias = kp                                   # broadcast over L

        k_in = mem_ref[0] + pos_ref[0]                  # (TS, D) compute_dtype
        v_in = mem_ref[0]
        k = (jnp.dot(k_in, wk_ref[...], preferred_element_type=jnp.float32)
             + bk_ref[...].astype(jnp.float32)).astype(compute_dtype)
        v = (jnp.dot(v_in, wv_ref[...], preferred_element_type=jnp.float32)
             + bv_ref[...].astype(jnp.float32)).astype(compute_dtype)

        for h in range(nhead):
            lo = h * head_dim
            qh = q_sc[h]                                # (L, Dh) compute_dtype
            kh = k[:, lo:lo + head_dim]                 # (TS, Dh)
            vh = v[:, lo:lo + head_dim]                 # (TS, Dh)
            s = lax.dot_general(qh, kh, (((1,), (1,)), ((), ())),
                                preferred_element_type=jnp.float32)  # (L, TS)
            s = s + bias
            m_prev = m_sc[h]                            # (L, 1)
            m_new = jnp.maximum(m_prev, jnp.max(s, axis=-1, keepdims=True))
            a = jnp.exp(m_prev - m_new)
            p = jnp.exp(s - m_new)
            l_sc[h] = a * l_sc[h] + jnp.sum(p, axis=-1, keepdims=True)
            acc_sc[h] = a * acc_sc[h] + jnp.dot(p.astype(compute_dtype), vh,
                                                preferred_element_type=jnp.float32)
            m_sc[h] = m_new

        # ------------- per-batch finalize (last S tile) --------------------
        @pl.when(s_idx == n_s - 1)
        def _finalize():
            tgt = tgt_ref[0].astype(jnp.float32)
            tgt2 = bo_ref[...].astype(jnp.float32)      # (1, D), broadcasts
            for h in range(nhead):
                inv_l = 1.0 / l_sc[h]                   # exact reciprocal (finalize only)
                attn_h = (acc_sc[h] * inv_l).astype(compute_dtype)   # (L, Dh)
                tgt2 = tgt2 + jnp.dot(attn_h, wo_ref[h],
                                      preferred_element_type=jnp.float32)
            y = tgt + tgt2                   # residual; dropout(p=0) = identity
            if not normalize_before:
                y = layer_norm(y)
            o_ref[0] = y.astype(o_ref.dtype)

    return kernel


def cross_attention_layer_pallas(tgt, memory, params, *, nhead,
                                 memory_mask=None, memory_key_padding_mask=None,
                                 pos=None, query_pos=None,
                                 normalize_before=False,
                                 compute_dtype=jnp.bfloat16,
                                 s_tile=512,
                                 interpret=False):
    """tgt: (L, N, D); memory: (S, N, D) (PyTorch seq-first layout)."""
    l, n, d = tgt.shape
    s, n2, d2 = memory.shape
    assert n == n2 and d == d2, "tgt / memory batch or d_model mismatch"
    assert d % nhead == 0, "d_model must be divisible by nhead"
    head_dim = d // nhead
    scale = float(head_dim) ** -0.5

    l_pad = _round_up(max(l, 1), 16)
    ts = _round_up(min(max(s_tile, 128), _round_up(s, 128)), 128)
    s_pad = _round_up(s, ts)
    num_s_tiles = s_pad // ts

    def to_batch_major(x, length, pad_len):
        x = jnp.transpose(jnp.asarray(x), (1, 0, 2))            # (N, len, D)
        if pad_len > length:
            x = jnp.pad(x, ((0, 0), (0, pad_len - length), (0, 0)))
        return x.astype(compute_dtype)                          # narrow DMA

    tgt_b = to_batch_major(tgt, l, l_pad)
    mem_b = to_batch_major(memory, s, s_pad)
    qpos_b = (to_batch_major(query_pos, l, l_pad)
              if query_pos is not None else jnp.zeros_like(tgt_b))
    pos_b = (to_batch_major(pos, s, s_pad)
             if pos is not None else jnp.zeros_like(mem_b))

    # Key-padding + sequence-padding additive bias row: (N, 1, S_pad) f32.
    kp = jnp.zeros((n, s_pad), jnp.float32)
    if s_pad > s:
        kp = kp.at[:, s:].set(_NEG_INF)
    if memory_key_padding_mask is not None:
        kpm = jnp.asarray(memory_key_padding_mask).astype(bool)
        kpm = jnp.pad(kpm, ((0, 0), (0, s_pad - s)), constant_values=True)
        kp = jnp.where(kpm, _NEG_INF, kp)
    kp = kp[:, None, :]

    has_mm = memory_mask is not None
    mm = None
    if has_mm:
        mm = jnp.asarray(memory_mask)
        # TODO(synk): per-head (N*nhead, L, S) attn_mask (real Mask2Former usage)
        # is not supported here; only a shared 2-D (L, S) mask is handled.
        assert mm.ndim == 2, "only 2-D (L, S) memory_mask supported"
        if mm.dtype == jnp.bool_:
            mm = jnp.where(mm, jnp.float32(_NEG_INF), jnp.float32(0.0))
        mm = mm.astype(jnp.float32)
        mm = jnp.pad(mm, ((0, l_pad - l), (0, s_pad - s)))

    # Parameters: (in, out) weights; q scale folded; Wo pre-split per head.
    wq = (jnp.asarray(params["wq"], jnp.float32).T * scale).astype(compute_dtype)
    wk = jnp.asarray(params["wk"], jnp.float32).T.astype(compute_dtype)
    wv = jnp.asarray(params["wv"], jnp.float32).T.astype(compute_dtype)
    wo = (jnp.asarray(params["wo"], jnp.float32).T
          .reshape(nhead, head_dim, d).astype(compute_dtype))
    bq = (jnp.asarray(params["bq"], jnp.float32) * scale).reshape(1, d)
    bk = jnp.asarray(params["bk"], jnp.float32).reshape(1, d)
    bv = jnp.asarray(params["bv"], jnp.float32).reshape(1, d)
    bo = jnp.asarray(params["bo"], jnp.float32).reshape(1, d)
    gamma = jnp.asarray(params["gamma"], jnp.float32).reshape(1, d)
    beta = jnp.asarray(params["beta"], jnp.float32).reshape(1, d)

    inputs = [tgt_b, qpos_b, mem_b, pos_b, kp]
    in_specs = [
        pl.BlockSpec((1, l_pad, d), lambda b, si: (b, 0, 0)),      # tgt
        pl.BlockSpec((1, l_pad, d), lambda b, si: (b, 0, 0)),      # query_pos
        pl.BlockSpec((1, ts, d), lambda b, si: (b, si, 0)),        # memory tile
        pl.BlockSpec((1, ts, d), lambda b, si: (b, si, 0)),        # pos tile
        pl.BlockSpec((1, 1, ts), lambda b, si: (b, 0, si)),        # kp bias row
    ]
    if has_mm:
        inputs.append(mm)
        in_specs.append(pl.BlockSpec((l_pad, ts), lambda b, si: (0, si)))

    # Grid-invariant parameters: constant index_map -> DMA'd once, VMEM-resident.
    inputs += [wq, bq, wk, bk, wv, bv, wo, bo, gamma, beta]
    in_specs += [
        pl.BlockSpec((d, d), lambda b, si: (0, 0)),                      # wq
        pl.BlockSpec((1, d), lambda b, si: (0, 0)),                      # bq
        pl.BlockSpec((d, d), lambda b, si: (0, 0)),                      # wk
        pl.BlockSpec((1, d), lambda b, si: (0, 0)),                      # bk
        pl.BlockSpec((d, d), lambda b, si: (0, 0)),                      # wv
        pl.BlockSpec((1, d), lambda b, si: (0, 0)),                      # bv
        pl.BlockSpec((nhead, head_dim, d), lambda b, si: (0, 0, 0)),     # wo
        pl.BlockSpec((1, d), lambda b, si: (0, 0)),                      # bo
        pl.BlockSpec((1, d), lambda b, si: (0, 0)),                      # gamma
        pl.BlockSpec((1, d), lambda b, si: (0, 0)),                      # beta
    ]
    out_spec = pl.BlockSpec((1, l_pad, d), lambda b, si: (b, 0, 0))

    scratch_shapes = [
        pltpu.VMEM((nhead, l_pad, head_dim), compute_dtype),   # q (head-separated)
        pltpu.VMEM((nhead, l_pad, 1), jnp.float32),            # running max m
        pltpu.VMEM((nhead, l_pad, 1), jnp.float32),            # running sum l
        pltpu.VMEM((nhead, l_pad, head_dim), jnp.float32),     # unnormalized acc
    ]

    kernel = _make_cross_attention_kernel(
        nhead=nhead, head_dim=head_dim, eps=1e-5,
        normalize_before=normalize_before, compute_dtype=compute_dtype,
        has_memory_mask=has_mm)

    # Generation-aware VMEM budget (generous estimate, capped at 3/4 of VMEM).
    cb = jnp.dtype(compute_dtype).itemsize
    est = (4 * l_pad * d * cb                       # tgt + qpos buffers
           + 4 * ts * d * cb                        # memory + pos (double buffered)
           + 4 * ts * 4                             # kp bias
           + (2 * l_pad * ts * 4 if has_mm else 0)  # memory_mask tile
           + 2 * l_pad * d * 4                      # output buffer
           + 2 * (3 * d * d + nhead * head_dim * d) * cb          # weights
           + 2 * nhead * l_pad * (head_dim * (4 + cb) + 8)        # scratch
           + 2 * ts * d * 4                         # in-kernel k, v (f32)
           + 4 * l_pad * ts * 4)                    # score / p intermediates
    try:
        vmem_cap = int(pltpu.get_tpu_info().vmem_capacity_bytes)
    except Exception:
        vmem_cap = 64 << 20
    vmem_limit = int(min(max(3 * est, 16 << 20), (vmem_cap * 3) // 4))

    y_pad = pl.pallas_call(
        kernel,
        out_shape=jax.ShapeDtypeStruct((n, l_pad, d), tgt.dtype),
        grid_spec=pltpu.PrefetchScalarGridSpec(
            num_scalar_prefetch=0,
            grid=(n, num_s_tiles),
            in_specs=in_specs,
            out_specs=out_spec,
            scratch_shapes=scratch_shapes,
        ),
        compiler_params=pltpu.CompilerParams(
            dimension_semantics=("parallel", "arbitrary"),
            vmem_limit_bytes=vmem_limit,
        ),
        interpret=interpret,
    )(*inputs)

    y = y_pad[:, :l, :]                       # drop padded query rows
    return jnp.transpose(y, (1, 0, 2))        # back to (L, N, D)


def cross_attention_layer_reference(tgt, memory, params, *, nhead,
                                    memory_mask=None,
                                    memory_key_padding_mask=None,
                                    pos=None, query_pos=None,
                                    normalize_before=False, eps=1e-5):
    """Pure-JAX f32 reference matching the PyTorch forward."""
    l, n, d = tgt.shape
    s = memory.shape[0]
    dh = d // nhead
    gamma = params["gamma"]
    beta = params["beta"]

    def ln(x):
        mu = jnp.mean(x, axis=-1, keepdims=True)
        var = jnp.mean((x - mu) ** 2, axis=-1, keepdims=True)
        return (x - mu) / jnp.sqrt(var + eps) * gamma + beta

    x = ln(tgt) if normalize_before else tgt
    q_in = x if query_pos is None else x + query_pos
    k_in = memory if pos is None else memory + pos
    q = q_in @ params["wq"].T + params["bq"]
    k = k_in @ params["wk"].T + params["bk"]
    v = memory @ params["wv"].T + params["bv"]

    qh = q.reshape(l, n, nhead, dh)
    kh = k.reshape(s, n, nhead, dh)
    vh = v.reshape(s, n, nhead, dh)
    scores = jnp.einsum("lnhd,snhd->nhls", qh, kh) * (dh ** -0.5)

    bias = jnp.zeros((n, l, s), jnp.float32)
    if memory_key_padding_mask is not None:
        kpm = jnp.asarray(memory_key_padding_mask).astype(bool)
        bias = jnp.where(kpm[:, None, :], _NEG_INF, bias)
    if memory_mask is not None:
        mm = jnp.asarray(memory_mask)
        if mm.dtype == jnp.bool_:
            mm = jnp.where(mm, jnp.float32(_NEG_INF), jnp.float32(0.0))
        bias = bias + mm[None, :, :].astype(jnp.float32)
    scores = scores + bias[:, None, :, :]
    p = jax.nn.softmax(scores, axis=-1)
    attn = jnp.einsum("nhls,snhd->lnhd", p, vh).reshape(l, n, d)
    tgt2 = attn @ params["wo"].T + params["bo"]
    y = tgt + tgt2                                     # dropout p=0 -> identity
    return y if normalize_before else ln(y)


def init_cross_attention_params(key, d_model):
    """Synthetic init with nn.MultiheadAttention / nn.LayerNorm shapes."""
    keys = jax.random.split(key, 8)
    bound_in = (6.0 / (3 * d_model + d_model)) ** 0.5
    bound_out = (6.0 / (2 * d_model)) ** 0.5
    wq = jax.random.uniform(keys[0], (d_model, d_model), jnp.float32, -bound_in, bound_in)
    wk = jax.random.uniform(keys[1], (d_model, d_model), jnp.float32, -bound_in, bound_in)
    wv = jax.random.uniform(keys[2], (d_model, d_model), jnp.float32, -bound_in, bound_in)
    wo = jax.random.uniform(keys[3], (d_model, d_model), jnp.float32, -bound_out, bound_out)
    bq = jax.random.uniform(keys[4], (d_model,), jnp.float32, -0.1, 0.1)
    bk = jax.random.uniform(keys[5], (d_model,), jnp.float32, -0.1, 0.1)
    bv = jax.random.uniform(keys[6], (d_model,), jnp.float32, -0.1, 0.1)
    bo = jax.random.uniform(keys[7], (d_model,), jnp.float32, -0.1, 0.1)
    gamma = jnp.ones((d_model,), jnp.float32)
    beta = jnp.zeros((d_model,), jnp.float32)
    return dict(wq=wq, wk=wk, wv=wv, wo=wo, bq=bq, bk=bk, bv=bv, bo=bo,
                gamma=gamma, beta=beta)


if __name__ == "__main__":
    # Small shapes consistent with the module: (num_queries, batch, d_model),
    # (memory_len, batch, d_model). S=300 with a 128-wide S tile exercises the
    # multi-tile online-softmax path; lengths are non-multiples of 8/128 to
    # exercise padding/masking; d_model=128 keeps the output lane-dense.
    L, S, N, D, H = 10, 300, 2, 128, 4
    TS = 128

    key = jax.random.PRNGKey(0)
    key, k1, k2, k3, k4, k5, k6 = jax.random.split(key, 7)
    tgt = jax.random.normal(k1, (L, N, D), jnp.float32)
    memory = jax.random.normal(k2, (S, N, D), jnp.float32)
    query_pos = jax.random.normal(k3, (L, N, D), jnp.float32)
    pos = jax.random.normal(k4, (S, N, D), jnp.float32)
    # key-padding mask: batch 1 ignores its last 37 memory tokens
    kpm = jnp.zeros((N, S), jnp.bool_).at[1, S - 37:].set(True)
    # boolean (L, S) memory_mask, True = disallowed (~20% of entries)
    mmask = jax.random.uniform(k6, (L, S)) < 0.2

    params = init_cross_attention_params(k5, D)

    # f32 MXU path with key-padding mask AND memory_mask: tight parity check.
    y_ref = cross_attention_layer_reference(
        tgt, memory, params, nhead=H, memory_mask=mmask,
        memory_key_padding_mask=kpm, pos=pos, query_pos=query_pos)
    y_f32 = cross_attention_layer_pallas(
        tgt, memory, params, nhead=H, memory_mask=mmask,
        memory_key_padding_mask=kpm, pos=pos, query_pos=query_pos,
        compute_dtype=jnp.float32, s_tile=TS)
    y_f32 = jax.block_until_ready(y_f32)
    assert y_f32.shape == (L, N, D)
    err = float(jnp.max(jnp.abs(y_f32 - y_ref)))
    assert err < 2e-4, "f32 kernel mismatch, max abs diff = %e" % err

    # bf16 path (default performance mode, key-padding mask only): loose check.
    y_ref2 = cross_attention_layer_reference(
        tgt, memory, params, nhead=H,
        memory_key_padding_mask=kpm, pos=pos, query_pos=query_pos)
    y_bf16 = cross_attention_layer_pallas(
        tgt, memory, params, nhead=H,
        memory_key_padding_mask=kpm, pos=pos, query_pos=query_pos,
        compute_dtype=jnp.bfloat16, s_tile=TS)
    y_bf16 = jax.block_until_ready(y_bf16)
    err2 = float(jnp.max(jnp.abs(y_bf16.astype(jnp.float32) - y_ref2)))
    assert err2 < 2e-1, "bf16 kernel mismatch, max abs diff = %e" % err2

    print("KERNEL_OK")
</pallas_src>

<mosaic_0001>
module attributes {stable_mosaic.version = 11 : i64} {
  func.func @kernel(%arg0: i32, %arg1: i32, %arg2: memref<1x16x128xf32, #tpu.memory_space<vmem>>, %arg3: memref<1x16x128xf32, #tpu.memory_space<vmem>>, %arg4: memref<1x128x128xf32, #tpu.memory_space<vmem>>, %arg5: memref<1x128x128xf32, #tpu.memory_space<vmem>>, %arg6: memref<1x1x128xf32, #tpu.memory_space<vmem>>, %arg7: memref<16x128xf32, #tpu.memory_space<vmem>>, %arg8: memref<128x128xf32, #tpu.memory_space<vmem>>, %arg9: memref<1x128xf32, #tpu.memory_space<vmem>>, %arg10: memref<128x128xf32, #tpu.memory_space<vmem>>, %arg11: memref<1x128xf32, #tpu.memory_space<vmem>>, %arg12: memref<128x128xf32, #tpu.memory_space<vmem>>, %arg13: memref<1x128xf32, #tpu.memory_space<vmem>>, %arg14: memref<4x32x128xf32, #tpu.memory_space<vmem>>, %arg15: memref<1x128xf32, #tpu.memory_space<vmem>>, %arg16: memref<1x128xf32, #tpu.memory_space<vmem>>, %arg17: memref<1x128xf32, #tpu.memory_space<vmem>>, %arg18: memref<1x16x128xf32, #tpu.memory_space<vmem>>, %arg19: memref<4x16x32xf32, #tpu.memory_space<vmem>>, %arg20: memref<4x16x1xf32, #tpu.memory_space<vmem>>, %arg21: memref<4x16x1xf32, #tpu.memory_space<vmem>>, %arg22: memref<4x16x32xf32, #tpu.memory_space<vmem>>) attributes {dimension_semantics = [#tpu.dimension_semantics<parallel>, #tpu.dimension_semantics<arbitrary>], iteration_bounds = array<i64: 2, 3>, scalar_prefetch = 0 : i64, scratch_operands = 4 : i64, tpu.core_type = #tpu.core_type<tc>, window_params = [{transform_indices = @transform_0, window_bounds = array<i64: 1, 16, 128>}, {transform_indices = @transform_1, window_bounds = array<i64: 1, 16, 128>}, {transform_indices = @transform_2, window_bounds = array<i64: 1, 128, 128>}, {transform_indices = @transform_3, window_bounds = array<i64: 1, 128, 128>}, {transform_indices = @transform_4, window_bounds = array<i64: 1, 1, 128>}, {transform_indices = @transform_5, window_bounds = array<i64: 16, 128>}, {pipeline_mode = #tpu.pipeline_mode<synchronous>, transform_indices = @transform_6, window_bounds = array<i64: 128, 128>}, {pipeline_mode = #tpu.pipeline_mode<synchronous>, transform_indices = @transform_7, window_bounds = array<i64: 1, 128>}, {pipeline_mode = #tpu.pipeline_mode<synchronous>, transform_indices = @transform_8, window_bounds = array<i64: 128, 128>}, {pipeline_mode = #tpu.pipeline_mode<synchronous>, transform_indices = @transform_9, window_bounds = array<i64: 1, 128>}, {pipeline_mode = #tpu.pipeline_mode<synchronous>, transform_indices = @transform_10, window_bounds = array<i64: 128, 128>}, {pipeline_mode = #tpu.pipeline_mode<synchronous>, transform_indices = @transform_11, window_bounds = array<i64: 1, 128>}, {pipeline_mode = #tpu.pipeline_mode<synchronous>, transform_indices = @transform_12, window_bounds = array<i64: 4, 32, 128>}, {pipeline_mode = #tpu.pipeline_mode<synchronous>, transform_indices = @transform_13, window_bounds = array<i64: 1, 128>}, {pipeline_mode = #tpu.pipeline_mode<synchronous>, transform_indices = @transform_14, window_bounds = array<i64: 1, 128>}, {pipeline_mode = #tpu.pipeline_mode<synchronous>, transform_indices = @transform_15, window_bounds = array<i64: 1, 128>}, {transform_indices = @transform_16, window_bounds = array<i64: 1, 16, 128>}]} {
    %c0 = arith.constant 0 : index
    %c0_0 = arith.constant 0 : index
    %0 = vector.load %arg16[%c0, %c0_0] : memref<1x128xf32, #tpu.memory_space<vmem>>, vector<1x128xf32>
    %c0_1 = arith.constant 0 : index
    %c0_2 = arith.constant 0 : index
    %1 = vector.load %arg17[%c0_1, %c0_2] : memref<1x128xf32, #tpu.memory_space<vmem>>, vector<1x128xf32>
    %c0_i32 = arith.constant 0 : i32
    %2 = arith.cmpi eq, %arg1, %c0_i32 : i32
    %3 = arith.extui %2 : i1 to i32
    %c0_i32_3 = arith.constant 0 : i32
    %4 = arith.cmpi ne, %3, %c0_i32_3 : i32
    scf.if %4 {
      %c0_125 = arith.constant 0 : index
      %c0_126 = arith.constant 0 : index
      %c0_127 = arith.constant 0 : index
      %178 = vector.load %arg2[%c0_125, %c0_126, %c0_127] : memref<1x16x128xf32, #tpu.memory_space<vmem>>, vector<1x16x128xf32>
      %179 = vector.shape_cast %178 : vector<1x16x128xf32> to vector<16x128xf32>
      %c0_128 = arith.constant 0 : index
      %c0_129 = arith.constant 0 : index
      %c0_130 = arith.constant 0 : index
      %180 = vector.load %arg3[%c0_128, %c0_129, %c0_130] : memref<1x16x128xf32, #tpu.memory_space<vmem>>, vector<1x16x128xf32>
      %181 = vector.shape_cast %180 : vector<1x16x128xf32> to vector<16x128xf32>
      %182 = arith.addf %179, %181 : vector<16x128xf32>
      %c0_131 = arith.constant 0 : index
      %c0_132 = arith.constant 0 : index
      %183 = vector.load %arg8[%c0_131, %c0_132] : memref<128x128xf32, #tpu.memory_space<vmem>>, vector<128x128xf32>
      %cst_133 = arith.constant dense<0.000000e+00> : vector<16x128xf32>
      %184 = tpu.matmul %182, %183, %cst_133 {dimension_numbers = #tpu.dot_dimension_numbers<[1], [0], [0], [1], [0, 0, 1, 1], [], []>} : vector<16x128xf32>, vector<128x128xf32>, vector<16x128xf32> -> vector<16x128xf32>
      %c0_134 = arith.constant 0 : index
      %c0_135 = arith.constant 0 : index
      %185 = vector.load %arg9[%c0_134, %c0_135] : memref<1x128xf32, #tpu.memory_space<vmem>>, vector<1x128xf32>
      %186 = vector.broadcast %185 : vector<1x128xf32> to vector<16x128xf32>
      %187 = arith.addf %184, %186 : vector<16x128xf32>
      %188 = vector.extract_strided_slice %187 {offsets = [0, 0], sizes = [16, 32], strides = [1, 1]} : vector<16x128xf32> to vector<16x32xf32>
      %c0_136 = arith.constant 0 : index
      %c0_137 = arith.constant 0 : index
      %c0_138 = arith.constant 0 : index
      %189 = vector.load %arg19[%c0_136, %c0_137, %c0_138] : memref<4x16x32xf32, #tpu.memory_space<vmem>>, vector<1x16x32xf32>
      %190 = vector.shape_cast %189 : vector<1x16x32xf32> to vector<16x32xf32>
      %191 = vector.shape_cast %188 : vector<16x32xf32> to vector<1x16x32xf32>
      tpu.vector_store %arg19[%c0_136, %c0_137, %c0_138], %191 {strides = array<i32>} : memref<4x16x32xf32, #tpu.memory_space<vmem>>, vector<1x16x32xf32>,
      %192 = vector.extract_strided_slice %187 {offsets = [0, 32], sizes = [16, 32], strides = [1, 1]} : vector<16x128xf32> to vector<16x32xf32>
      %c1_139 = arith.constant 1 : index
      %c0_140 = arith.constant 0 : index
      %c0_141 = arith.constant 0 : index
      %193 = vector.load %arg19[%c1_139, %c0_140, %c0_141] : memref<4x16x32xf32, #tpu.memory_space<vmem>>, vector<1x16x32xf32>
      %194 = vector.shape_cast %193 : vector<1x16x32xf32> to vector<16x32xf32>
      %195 = vector.shape_cast %192 : vector<16x32xf32> to vector<1x16x32xf32>
      tpu.vector_store %arg19[%c1_139, %c0_140, %c0_141], %195 {strides = array<i32>} : memref<4x16x32xf32, #tpu.memory_space<vmem>>, vector<1x16x32xf32>,
      %196 = vector.extract_strided_slice %187 {offsets = [0, 64], sizes = [16, 32], strides = [1, 1]} : vector<16x128xf32> to vector<16x32xf32>
      %c2_142 = arith.constant 2 : index
      %c0_143 = arith.constant 0 : index
      %c0_144 = arith.constant 0 : index
      %197 = vector.load %arg19[%c2_142, %c0_143, %c0_144] : memref<4x16x32xf32, #tpu.memory_space<vmem>>, vector<1x16x32xf32>
      %198 = vector.shape_cast %197 : vector<1x16x32xf32> to vector<16x32xf32>
      %199 = vector.shape_cast %196 : vector<16x32xf32> to vector<1x16x32xf32>
      tpu.vector_store %arg19[%c2_142, %c0_143, %c0_144], %199 {strides = array<i32>} : memref<4x16x32xf32, #tpu.memory_space<vmem>>, vector<1x16x32xf32>,
      %200 = vector.extract_strided_slice %187 {offsets = [0, 96], sizes = [16, 32], strides = [1, 1]} : vector<16x128xf32> to vector<16x32xf32>
      %c3_145 = arith.constant 3 : index
      %c0_146 = arith.constant 0 : index
      %c0_147 = arith.constant 0 : index
      %201 = vector.load %arg19[%c3_145, %c0_146, %c0_147] : memref<4x16x32xf32, #tpu.memory_space<vmem>>, vector<1x16x32xf32>
      %202 = vector.shape_cast %201 : vector<1x16x32xf32> to vector<16x32xf32>
      %203 = vector.shape_cast %200 : vector<16x32xf32> to vector<1x16x32xf32>
      tpu.vector_store %arg19[%c3_145, %c0_146, %c0_147], %203 {strides = array<i32>} : memref<4x16x32xf32, #tpu.memory_space<vmem>>, vector<1x16x32xf32>,
      %cst_148 = arith.constant 0xFF800000 : f32
      %204 = vector.broadcast %cst_148 : f32 to vector<4x16x1xf32>
      %c0_149 = arith.constant 0 : index
      %c0_150 = arith.constant 0 : index
      %c0_151 = arith.constant 0 : index
      %205 = vector.load %arg20[%c0_149, %c0_150, %c0_151] : memref<4x16x1xf32, #tpu.memory_space<vmem>>, vector<4x16x1xf32>
      tpu.vector_store %arg20[%c0_149, %c0_150, %c0_151], %204 {strides = array<i32>} : memref<4x16x1xf32, #tpu.memory_space<vmem>>, vector<4x16x1xf32>,
      %cst_152 = arith.constant 0.000000e+00 : f32
      %206 = vector.broadcast %cst_152 : f32 to vector<4x16x1xf32>
      %c0_153 = arith.constant 0 : index
      %c0_154 = arith.constant 0 : index
      %c0_155 = arith.constant 0 : index
      %207 = vector.load %arg21[%c0_153, %c0_154, %c0_155] : memref<4x16x1xf32, #tpu.memory_space<vmem>>, vector<4x16x1xf32>
      tpu.vector_store %arg21[%c0_153, %c0_154, %c0_155], %206 {strides = array<i32>} : memref<4x16x1xf32, #tpu.memory_space<vmem>>, vector<4x16x1xf32>,
      %cst_156 = arith.constant 0.000000e+00 : f32
      %208 = vector.broadcast %cst_156 : f32 to vector<4x16x32xf32>
      %c0_157 = arith.constant 0 : index
      %c0_158 = arith.constant 0 : index
      %c0_159 = arith.constant 0 : index
      %209 = vector.load %arg22[%c0_157, %c0_158, %c0_159] : memref<4x16x32xf32, #tpu.memory_space<vmem>>, vector<4x16x32xf32>
      tpu.vector_store %arg22[%c0_157, %c0_158, %c0_159], %208 {strides = array<i32>} : memref<4x16x32xf32, #tpu.memory_space<vmem>>, vector<4x16x32xf32>,
    } else {
    }
    %c0_4 = arith.constant 0 : index
    %c0_5 = arith.constant 0 : index
    %c0_6 = arith.constant 0 : index
    %5 = vector.load %arg6[%c0_4, %c0_5, %c0_6] : memref<1x1x128xf32, #tpu.memory_space<vmem>>, vector<1x1x128xf32>
    %6 = vector.shape_cast %5 : vector<1x1x128xf32> to vector<1x128xf32>
    %c0_7 = arith.constant 0 : index
    %c0_8 = arith.constant 0 : index
    %7 = vector.load %arg7[%c0_7, %c0_8] : memref<16x128xf32, #tpu.memory_space<vmem>>, vector<16x128xf32>
    %8 = vector.broadcast %6 : vector<1x128xf32> to vector<16x128xf32>
    %9 = arith.addf %8, %7 : vector<16x128xf32>
    %c0_9 = arith.constant 0 : index
    %c0_10 = arith.constant 0 : index
    %c0_11 = arith.constant 0 : index
    %10 = vector.load %arg4[%c0_9, %c0_10, %c0_11] : memref<1x128x128xf32, #tpu.memory_space<vmem>>, vector<1x128x128xf32>
    %11 = vector.shape_cast %10 : vector<1x128x128xf32> to vector<128x128xf32>
    %c0_12 = arith.constant 0 : index
    %c0_13 = arith.constant 0 : index
    %c0_14 = arith.constant 0 : index
    %12 = vector.load %arg5[%c0_12, %c0_13, %c0_14] : memref<1x128x128xf32, #tpu.memory_space<vmem>>, vector<1x128x128xf32>
    %13 = vector.shape_cast %12 : vector<1x128x128xf32> to vector<128x128xf32>
    %14 = arith.addf %11, %13 : vector<128x128xf32>
    %c0_15 = arith.constant 0 : index
    %c0_16 = arith.constant 0 : index
    %c0_17 = arith.constant 0 : index
    %15 = vector.load %arg4[%c0_15, %c0_16, %c0_17] : memref<1x128x128xf32, #tpu.memory_space<vmem>>, vector<1x128x128xf32>
    %16 = vector.shape_cast %15 : vector<1x128x128xf32> to vector<128x128xf32>
    %c0_18 = arith.constant 0 : index
    %c0_19 = arith.constant 0 : index
    %17 = vector.load %arg10[%c0_18, %c0_19] : memref<128x128xf32, #tpu.memory_space<vmem>>, vector<128x128xf32>
    %cst = arith.constant dense<0.000000e+00> : vector<128x128xf32>
    %18 = tpu.matmul %14, %17, %cst {dimension_numbers = #tpu.dot_dimension_numbers<[1], [0], [0], [1], [0, 0, 1, 1], [], []>} : vector<128x128xf32>, vector<128x128xf32>, vector<128x128xf32> -> vector<128x128xf32>
    %c0_20 = arith.constant 0 : index
    %c0_21 = arith.constant 0 : index
    %19 = vector.load %arg11[%c0_20, %c0_21] : memref<1x128xf32, #tpu.memory_space<vmem>>, vector<1x128xf32>
    %20 = vector.broadcast %19 : vector<1x128xf32> to vector<128x128xf32>
    %21 = arith.addf %18, %20 : vector<128x128xf32>
    %c0_22 = arith.constant 0 : index
    %c0_23 = arith.constant 0 : index
    %22 = vector.load %arg12[%c0_22, %c0_23] : memref<128x128xf32, #tpu.memory_space<vmem>>, vector<128x128xf32>
    %cst_24 = arith.constant dense<0.000000e+00> : vector<128x128xf32>
    %23 = tpu.matmul %16, %22, %cst_24 {dimension_numbers = #tpu.dot_dimension_numbers<[1], [0], [0], [1], [0, 0, 1, 1], [], []>} : vector<128x128xf32>, vector<128x128xf32>, vector<128x128xf32> -> vector<128x128xf32>
    %c0_25 = arith.constant 0 : index
    %c0_26 = arith.constant 0 : index
    %24 = vector.load %arg13[%c0_25, %c0_26] : memref<1x128xf32, #tpu.memory_space<vmem>>, vector<1x128xf32>
    %25 = vector.broadcast %24 : vector<1x128xf32> to vector<128x128xf32>
    %26 = arith.addf %23, %25 : vector<128x128xf32>
    %c0_27 = arith.constant 0 : index
    %c0_28 = arith.constant 0 : index
    %c0_29 = arith.constant 0 : index
    %27 = vector.load %arg19[%c0_27, %c0_28, %c0_29] : memref<4x16x32xf32, #tpu.memory_space<vmem>>, vector<1x16x32xf32>
    %28 = vector.shape_cast %27 : vector<1x16x32xf32> to vector<16x32xf32>
    %29 = vector.extract_strided_slice %21 {offsets = [0, 0], sizes = [128, 32], strides = [1, 1]} : vector<128x128xf32> to vector<128x32xf32>
    %30 = vector.extract_strided_slice %26 {offsets = [0, 0], sizes = [128, 32], strides = [1, 1]} : vector<128x128xf32> to vector<128x32xf32>
    %cst_30 = arith.constant dense<0.000000e+00> : vector<16x128xf32>
    %31 = tpu.matmul %28, %29, %cst_30 {dimension_numbers = #tpu.dot_dimension_numbers<[1], [1], [0], [0], [0, 0, 1, 0], [], []>} : vector<16x32xf32>, vector<128x32xf32>, vector<16x128xf32> -> vector<16x128xf32>
    %32 = arith.addf %31, %9 : vector<16x128xf32>
    %c0_31 = arith.constant 0 : index
    %c0_32 = arith.constant 0 : index
    %c0_33 = arith.constant 0 : index
    %33 = vector.load %arg20[%c0_31, %c0_32, %c0_33] : memref<4x16x1xf32, #tpu.memory_space<vmem>>, vector<1x16x1xf32>
    %34 = vector.shape_cast %33 : vector<1x16x1xf32> to vector<16x1xf32>
    %cst_34 = arith.constant dense<0xFF800000> : vector<16xf32>
    %35 = vector.multi_reduction <maximumf>, %32, %cst_34 [1] : vector<16x128xf32> to vector<16xf32>
    %36 = vector.shape_cast %35 : vector<16xf32> to vector<16x1xf32>
    %37 = arith.maximumf %34, %36 : vector<16x1xf32>
    %38 = arith.subf %34, %37 : vector<16x1xf32>
    %39 = math.exp %38 : vector<16x1xf32>
    %40 = vector.broadcast %37 : vector<16x1xf32> to vector<16x128xf32>
    %41 = arith.subf %32, %40 : vector<16x128xf32>
    %42 = math.exp %41 : vector<16x128xf32>
    %c0_35 = arith.constant 0 : index
    %c0_36 = arith.constant 0 : index
    %c0_37 = arith.constant 0 : index
    %43 = vector.load %arg21[%c0_35, %c0_36, %c0_37] : memref<4x16x1xf32, #tpu.memory_space<vmem>>, vector<1x16x1xf32>
    %44 = vector.shape_cast %43 : vector<1x16x1xf32> to vector<16x1xf32>
    %45 = arith.mulf %39, %44 : vector<16x1xf32>
    %cst_38 = arith.constant dense<0.000000e+00> : vector<16xf32>
    %46 = vector.multi_reduction <add>, %42, %cst_38 [1] : vector<16x128xf32> to vector<16xf32>
    %47 = vector.shape_cast %46 : vector<16xf32> to vector<16x1xf32>
    %48 = arith.addf %45, %47 : vector<16x1xf32>
    %c0_39 = arith.constant 0 : index
    %c0_40 = arith.constant 0 : index
    %c0_41 = arith.constant 0 : index
    %49 = vector.load %arg21[%c0_39, %c0_40, %c0_41] : memref<4x16x1xf32, #tpu.memory_space<vmem>>, vector<1x16x1xf32>
    %50 = vector.shape_cast %49 : vector<1x16x1xf32> to vector<16x1xf32>
    %51 = vector.shape_cast %48 : vector<16x1xf32> to vector<1x16x1xf32>
    tpu.vector_store %arg21[%c0_39, %c0_40, %c0_41], %51 {strides = array<i32>} : memref<4x16x1xf32, #tpu.memory_space<vmem>>, vector<1x16x1xf32>,
    %c0_42 = arith.constant 0 : index
    %c0_43 = arith.constant 0 : index
    %c0_44 = arith.constant 0 : index
    %52 = vector.load %arg22[%c0_42, %c0_43, %c0_44] : memref<4x16x32xf32, #tpu.memory_space<vmem>>, vector<1x16x32xf32>
    %53 = vector.shape_cast %52 : vector<1x16x32xf32> to vector<16x32xf32>
    %54 = vector.broadcast %39 : vector<16x1xf32> to vector<16x32xf32>
    %55 = arith.mulf %54, %53 : vector<16x32xf32>
    %cst_45 = arith.constant dense<0.000000e+00> : vector<16x32xf32>
    %56 = tpu.matmul %42, %30, %cst_45 {dimension_numbers = #tpu.dot_dimension_numbers<[1], [0], [0], [1], [0, 0, 1, 1], [], []>} : vector<16x128xf32>, vector<128x32xf32>, vector<16x32xf32> -> vector<16x32xf32>
    %57 = arith.addf %55, %56 : vector<16x32xf32>
    %c0_46 = arith.constant 0 : index
    %c0_47 = arith.constant 0 : index
    %c0_48 = arith.constant 0 : index
    %58 = vector.load %arg22[%c0_46, %c0_47, %c0_48] : memref<4x16x32xf32, #tpu.memory_space<vmem>>, vector<1x16x32xf32>
    %59 = vector.shape_cast %58 : vector<1x16x32xf32> to vector<16x32xf32>
    %60 = vector.shape_cast %57 : vector<16x32xf32> to vector<1x16x32xf32>
    tpu.vector_store %arg22[%c0_46, %c0_47, %c0_48], %60 {strides = array<i32>} : memref<4x16x32xf32, #tpu.memory_space<vmem>>, vector<1x16x32xf32>,
    %c0_49 = arith.constant 0 : index
    %c0_50 = arith.constant 0 : index
    %c0_51 = arith.constant 0 : index
    %61 = vector.load %arg20[%c0_49, %c0_50, %c0_51] : memref<4x16x1xf32, #tpu.memory_space<vmem>>, vector<1x16x1xf32>
    %62 = vector.shape_cast %61 : vector<1x16x1xf32> to vector<16x1xf32>
    %63 = vector.shape_cast %37 : vector<16x1xf32> to vector<1x16x1xf32>
    tpu.vector_store %arg20[%c0_49, %c0_50, %c0_51], %63 {strides = array<i32>} : memref<4x16x1xf32, #tpu.memory_space<vmem>>, vector<1x16x1xf32>,
    %c1 = arith.constant 1 : index
    %c0_52 = arith.constant 0 : index
    %c0_53 = arith.constant 0 : index
    %64 = vector.load %arg19[%c1, %c0_52, %c0_53] : memref<4x16x32xf32, #tpu.memory_space<vmem>>, vector<1x16x32xf32>
    %65 = vector.shape_cast %64 : vector<1x16x32xf32> to vector<16x32xf32>
    %66 = vector.extract_strided_slice %21 {offsets = [0, 32], sizes = [128, 32], strides = [1, 1]} : vector<128x128xf32> to vector<128x32xf32>
    %67 = vector.extract_strided_slice %26 {offsets = [0, 32], sizes = [128, 32], strides = [1, 1]} : vector<128x128xf32> to vector<128x32xf32>
    %cst_54 = arith.constant dense<0.000000e+00> : vector<16x128xf32>
    %68 = tpu.matmul %65, %66, %cst_54 {dimension_numbers = #tpu.dot_dimension_numbers<[1], [1], [0], [0], [0, 0, 1, 0], [], []>} : vector<16x32xf32>, vector<128x32xf32>, vector<16x128xf32> -> vector<16x128xf32>
    %69 = arith.addf %68, %9 : vector<16x128xf32>
    %c1_55 = arith.constant 1 : index
    %c0_56 = arith.constant 0 : index
    %c0_57 = arith.constant 0 : index
    %70 = vector.load %arg20[%c1_55, %c0_56, %c0_57] : memref<4x16x1xf32, #tpu.memory_space<vmem>>, vector<1x16x1xf32>
    %71 = vector.shape_cast %70 : vector<1x16x1xf32> to vector<16x1xf32>
    %cst_58 = arith.constant dense<0xFF800000> : vector<16xf32>
    %72 = vector.multi_reduction <maximumf>, %69, %cst_58 [1] : vector<16x128xf32> to vector<16xf32>
    %73 = vector.shape_cast %72 : vector<16xf32> to vector<16x1xf32>
    %74 = arith.maximumf %71, %73 : vector<16x1xf32>
    %75 = arith.subf %71, %74 : vector<16x1xf32>
    %76 = math.exp %75 : vector<16x1xf32>
    %77 = vector.broadcast %74 : vector<16x1xf32> to vector<16x128xf32>
    %78 = arith.subf %69, %77 : vector<16x128xf32>
    %79 = math.exp %78 : vector<16x128xf32>
    %c1_59 = arith.constant 1 : index
    %c0_60 = arith.constant 0 : index
    %c0_61 = arith.constant 0 : index
    %80 = vector.load %arg21[%c1_59, %c0_60, %c0_61] : memref<4x16x1xf32, #tpu.memory_space<vmem>>, vector<1x16x1xf32>
    %81 = vector.shape_cast %80 : vector<1x16x1xf32> to vector<16x1xf32>
    %82 = arith.mulf %76, %81 : vector<16x1xf32>
    %cst_62 = arith.constant dense<0.000000e+00> : vector<16xf32>
    %83 = vector.multi_reduction <add>, %79, %cst_62 [1] : vector<16x128xf32> to vector<16xf32>
    %84 = vector.shape_cast %83 : vector<16xf32> to vector<16x1xf32>
    %85 = arith.addf %82, %84 : vector<16x1xf32>
    %c1_63 = arith.constant 1 : index
    %c0_64 = arith.constant 0 : index
    %c0_65 = arith.constant 0 : index
    %86 = vector.load %arg21[%c1_63, %c0_64, %c0_65] : memref<4x16x1xf32, #tpu.memory_space<vmem>>, vector<1x16x1xf32>
    %87 = vector.shape_cast %86 : vector<1x16x1xf32> to vector<16x1xf32>
    %88 = vector.shape_cast %85 : vector<16x1xf32> to vector<1x16x1xf32>
    tpu.vector_store %arg21[%c1_63, %c0_64, %c0_65], %88 {strides = array<i32>} : memref<4x16x1xf32, #tpu.memory_space<vmem>>, vector<1x16x1xf32>,
    %c1_66 = arith.constant 1 : index
    %c0_67 = arith.constant 0 : index
    %c0_68 = arith.constant 0 : index
    %89 = vector.load %arg22[%c1_66, %c0_67, %c0_68] : memref<4x16x32xf32, #tpu.memory_space<vmem>>, vector<1x16x32xf32>
    %90 = vector.shape_cast %89 : vector<1x16x32xf32> to vector<16x32xf32>
    %91 = vector.broadcast %76 : vector<16x1xf32> to vector<16x32xf32>
    %92 = arith.mulf %91, %90 : vector<16x32xf32>
    %cst_69 = arith.constant dense<0.000000e+00> : vector<16x32xf32>
    %93 = tpu.matmul %79, %67, %cst_69 {dimension_numbers = #tpu.dot_dimension_numbers<[1], [0], [0], [1], [0, 0, 1, 1], [], []>} : vector<16x128xf32>, vector<128x32xf32>, vector<16x32xf32> -> vector<16x32xf32>
    %94 = arith.addf %92, %93 : vector<16x32xf32>
    %c1_70 = arith.constant 1 : index
    %c0_71 = arith.constant 0 : index
    %c0_72 = arith.constant 0 : index
    %95 = vector.load %arg22[%c1_70, %c0_71, %c0_72] : memref<4x16x32xf32, #tpu.memory_space<vmem>>, vector<1x16x32xf32>
    %96 = vector.shape_cast %95 : vector<1x16x32xf32> to vector<16x32xf32>
    %97 = vector.shape_cast %94 : vector<16x32xf32> to vector<1x16x32xf32>
    tpu.vector_store %arg22[%c1_70, %c0_71, %c0_72], %97 {strides = array<i32>} : memref<4x16x32xf32, #tpu.memory_space<vmem>>, vector<1x16x32xf32>,
    %c1_73 = arith.constant 1 : index
    %c0_74 = arith.constant 0 : index
    %c0_75 = arith.constant 0 : index
    %98 = vector.load %arg20[%c1_73, %c0_74, %c0_75] : memref<4x16x1xf32, #tpu.memory_space<vmem>>, vector<1x16x1xf32>
    %99 = vector.shape_cast %98 : vector<1x16x1xf32> to vector<16x1xf32>
    %100 = vector.shape_cast %74 : vector<16x1xf32> to vector<1x16x1xf32>
    tpu.vector_store %arg20[%c1_73, %c0_74, %c0_75], %100 {strides = array<i32>} : memref<4x16x1xf32, #tpu.memory_space<vmem>>, vector<1x16x1xf32>,
    %c2 = arith.constant 2 : index
    %c0_76 = arith.constant 0 : index
    %c0_77 = arith.constant 0 : index
    %101 = vector.load %arg19[%c2, %c0_76, %c0_77] : memref<4x16x32xf32, #tpu.memory_space<vmem>>, vector<1x16x32xf32>
    %102 = vector.shape_cast %101 : vector<1x16x32xf32> to vector<16x32xf32>
    %103 = vector.extract_strided_slice %21 {offsets = [0, 64], sizes = [128, 32], strides = [1, 1]} : vector<128x128xf32> to vector<128x32xf32>
    %104 = vector.extract_strided_slice %26 {offsets = [0, 64], sizes = [128, 32], strides = [1, 1]} : vector<128x128xf32> to vector<128x32xf32>
    %cst_78 = arith.constant dense<0.000000e+00> : vector<16x128xf32>
    %105 = tpu.matmul %102, %103, %cst_78 {dimension_numbers = #tpu.dot_dimension_numbers<[1], [1], [0], [0], [0, 0, 1, 0], [], []>} : vector<16x32xf32>, vector<128x32xf32>, vector<16x128xf32> -> vector<16x128xf32>
    %106 = arith.addf %105, %9 : vector<16x128xf32>
    %c2_79 = arith.constant 2 : index
    %c0_80 = arith.constant 0 : index
    %c0_81 = arith.constant 0 : index
    %107 = vector.load %arg20[%c2_79, %c0_80, %c0_81] : memref<4x16x1xf32, #tpu.memory_space<vmem>>, vector<1x16x1xf32>
    %108 = vector.shape_cast %107 : vector<1x16x1xf32> to vector<16x1xf32>
    %cst_82 = arith.constant dense<0xFF800000> : vector<16xf32>
    %109 = vector.multi_reduction <maximumf>, %106, %cst_82 [1] : vector<16x128xf32> to vector<16xf32>
    %110 = vector.shape_cast %109 : vector<16xf32> to vector<16x1xf32>
    %111 = arith.maximumf %108, %110 : vector<16x1xf32>
    %112 = arith.subf %108, %111 : vector<16x1xf32>
    %113 = math.exp %112 : vector<16x1xf32>
    %114 = vector.broadcast %111 : vector<16x1xf32> to vector<16x128xf32>
    %115 = arith.subf %106, %114 : vector<16x128xf32>
    %116 = math.exp %115 : vector<16x128xf32>
    %c2_83 = arith.constant 2 : index
    %c0_84 = arith.constant 0 : index
    %c0_85 = arith.constant 0 : index
    %117 = vector.load %arg21[%c2_83, %c0_84, %c0_85] : memref<4x16x1xf32, #tpu.memory_space<vmem>>, vector<1x16x1xf32>
    %118 = vector.shape_cast %117 : vector<1x16x1xf32> to vector<16x1xf32>
    %119 = arith.mulf %113, %118 : vector<16x1xf32>
    %cst_86 = arith.constant dense<0.000000e+00> : vector<16xf32>
    %120 = vector.multi_reduction <add>, %116, %cst_86 [1] : vector<16x128xf32> to vector<16xf32>
    %121 = vector.shape_cast %120 : vector<16xf32> to vector<16x1xf32>
    %122 = arith.addf %119, %121 : vector<16x1xf32>
    %c2_87 = arith.constant 2 : index
    %c0_88 = arith.constant 0 : index
    %c0_89 = arith.constant 0 : index
    %123 = vector.load %arg21[%c2_87, %c0_88, %c0_89] : memref<4x16x1xf32, #tpu.memory_space<vmem>>, vector<1x16x1xf32>
    %124 = vector.shape_cast %123 : vector<1x16x1xf32> to vector<16x1xf32>
    %125 = vector.shape_cast %122 : vector<16x1xf32> to vector<1x16x1xf32>
    tpu.vector_store %arg21[%c2_87, %c0_88, %c0_89], %125 {strides = array<i32>} : memref<4x16x1xf32, #tpu.memory_space<vmem>>, vector<1x16x1xf32>,
    %c2_90 = arith.constant 2 : index
    %c0_91 = arith.constant 0 : index
    %c0_92 = arith.constant 0 : index
    %126 = vector.load %arg22[%c2_90, %c0_91, %c0_92] : memref<4x16x32xf32, #tpu.memory_space<vmem>>, vector<1x16x32xf32>
    %127 = vector.shape_cast %126 : vector<1x16x32xf32> to vector<16x32xf32>
    %128 = vector.broadcast %113 : vector<16x1xf32> to vector<16x32xf32>
    %129 = arith.mulf %128, %127 : vector<16x32xf32>
    %cst_93 = arith.constant dense<0.000000e+00> : vector<16x32xf32>
    %130 = tpu.matmul %116, %104, %cst_93 {dimension_numbers = #tpu.dot_dimension_numbers<[1], [0], [0], [1], [0, 0, 1, 1], [], []>} : vector<16x128xf32>, vector<128x32xf32>, vector<16x32xf32> -> vector<16x32xf32>
    %131 = arith.addf %129, %130 : vector<16x32xf32>
    %c2_94 = arith.constant 2 : index
    %c0_95 = arith.constant 0 : index
    %c0_96 = arith.constant 0 : index
    %132 = vector.load %arg22[%c2_94, %c0_95, %c0_96] : memref<4x16x32xf32, #tpu.memory_space<vmem>>, vector<1x16x32xf32>
    %133 = vector.shape_cast %132 : vector<1x16x32xf32> to vector<16x32xf32>
    %134 = vector.shape_cast %131 : vector<16x32xf32> to vector<1x16x32xf32>
    tpu.vector_store %arg22[%c2_94, %c0_95, %c0_96], %134 {strides = array<i32>} : memref<4x16x32xf32, #tpu.memory_space<vmem>>, vector<1x16x32xf32>,
    %c2_97 = arith.constant 2 : index
    %c0_98 = arith.constant 0 : index
    %c0_99 = arith.constant 0 : index
    %135 = vector.load %arg20[%c2_97, %c0_98, %c0_99] : memref<4x16x1xf32, #tpu.memory_space<vmem>>, vector<1x16x1xf32>
    %136 = vector.shape_cast %135 : vector<1x16x1xf32> to vector<16x1xf32>
    %137 = vector.shape_cast %111 : vector<16x1xf32> to vector<1x16x1xf32>
    tpu.vector_store %arg20[%c2_97, %c0_98, %c0_99], %137 {strides = array<i32>} : memref<4x16x1xf32, #tpu.memory_space<vmem>>, vector<1x16x1xf32>,
    %c3 = arith.constant 3 : index
    %c0_100 = arith.constant 0 : index
    %c0_101 = arith.constant 0 : index
    %138 = vector.load %arg19[%c3, %c0_100, %c0_101] : memref<4x16x32xf32, #tpu.memory_space<vmem>>, vector<1x16x32xf32>
    %139 = vector.shape_cast %138 : vector<1x16x32xf32> to vector<16x32xf32>
    %140 = vector.extract_strided_slice %21 {offsets = [0, 96], sizes = [128, 32], strides = [1, 1]} : vector<128x128xf32> to vector<128x32xf32>
    %141 = vector.extract_strided_slice %26 {offsets = [0, 96], sizes = [128, 32], strides = [1, 1]} : vector<128x128xf32> to vector<128x32xf32>
    %cst_102 = arith.constant dense<0.000000e+00> : vector<16x128xf32>
    %142 = tpu.matmul %139, %140, %cst_102 {dimension_numbers = #tpu.dot_dimension_numbers<[1], [1], [0], [0], [0, 0, 1, 0], [], []>} : vector<16x32xf32>, vector<128x32xf32>, vector<16x128xf32> -> vector<16x128xf32>
    %143 = arith.addf %142, %9 : vector<16x128xf32>
    %c3_103 = arith.constant 3 : index
    %c0_104 = arith.constant 0 : index
    %c0_105 = arith.constant 0 : index
    %144 = vector.load %arg20[%c3_103, %c0_104, %c0_105] : memref<4x16x1xf32, #tpu.memory_space<vmem>>, vector<1x16x1xf32>
    %145 = vector.shape_cast %144 : vector<1x16x1xf32> to vector<16x1xf32>
    %cst_106 = arith.constant dense<0xFF800000> : vector<16xf32>
    %146 = vector.multi_reduction <maximumf>, %143, %cst_106 [1] : vector<16x128xf32> to vector<16xf32>
    %147 = vector.shape_cast %146 : vector<16xf32> to vector<16x1xf32>
    %148 = arith.maximumf %145, %147 : vector<16x1xf32>
    %149 = arith.subf %145, %148 : vector<16x1xf32>
    %150 = math.exp %149 : vector<16x1xf32>
    %151 = vector.broadcast %148 : vector<16x1xf32> to vector<16x128xf32>
    %152 = arith.subf %143, %151 : vector<16x128xf32>
    %153 = math.exp %152 : vector<16x128xf32>
    %c3_107 = arith.constant 3 : index
    %c0_108 = arith.constant 0 : index
    %c0_109 = arith.constant 0 : index
    %154 = vector.load %arg21[%c3_107, %c0_108, %c0_109] : memref<4x16x1xf32, #tpu.memory_space<vmem>>, vector<1x16x1xf32>
    %155 = vector.shape_cast %154 : vector<1x16x1xf32> to vector<16x1xf32>
    %156 = arith.mulf %150, %155 : vector<16x1xf32>
    %cst_110 = arith.constant dense<0.000000e+00> : vector<16xf32>
    %157 = vector.multi_reduction <add>, %153, %cst_110 [1] : vector<16x128xf32> to vector<16xf32>
    %158 = vector.shape_cast %157 : vector<16xf32> to vector<16x1xf32>
    %159 = arith.addf %156, %158 : vector<16x1xf32>
    %c3_111 = arith.constant 3 : index
    %c0_112 = arith.constant 0 : index
    %c0_113 = arith.constant 0 : index
    %160 = vector.load %arg21[%c3_111, %c0_112, %c0_113] : memref<4x16x1xf32, #tpu.memory_space<vmem>>, vector<1x16x1xf32>
    %161 = vector.shape_cast %160 : vector<1x16x1xf32> to vector<16x1xf32>
    %162 = vector.shape_cast %159 : vector<16x1xf32> to vector<1x16x1xf32>
    tpu.vector_store %arg21[%c3_111, %c0_112, %c0_113], %162 {strides = array<i32>} : memref<4x16x1xf32, #tpu.memory_space<vmem>>, vector<1x16x1xf32>,
    %c3_114 = arith.constant 3 : index
    %c0_115 = arith.constant 0 : index
    %c0_116 = arith.constant 0 : index
    %163 = vector.load %arg22[%c3_114, %c0_115, %c0_116] : memref<4x16x32xf32, #tpu.memory_space<vmem>>, vector<1x16x32xf32>
    %164 = vector.shape_cast %163 : vector<1x16x32xf32> to vector<16x32xf32>
    %165 = vector.broadcast %150 : vector<16x1xf32> to vector<16x32xf32>
    %166 = arith.mulf %165, %164 : vector<16x32xf32>
    %cst_117 = arith.constant dense<0.000000e+00> : vector<16x32xf32>
    %167 = tpu.matmul %153, %141, %cst_117 {dimension_numbers = #tpu.dot_dimension_numbers<[1], [0], [0], [1], [0, 0, 1, 1], [], []>} : vector<16x128xf32>, vector<128x32xf32>, vector<16x32xf32> -> vector<16x32xf32>
    %168 = arith.addf %166, %167 : vector<16x32xf32>
    %c3_118 = arith.constant 3 : index
    %c0_119 = arith.constant 0 : index
    %c0_120 = arith.constant 0 : index
    %169 = vector.load %arg22[%c3_118, %c0_119, %c0_120] : memref<4x16x32xf32, #tpu.memory_space<vmem>>, vector<1x16x32xf32>
    %170 = vector.shape_cast %169 : vector<1x16x32xf32> to vector<16x32xf32>
    %171 = vector.shape_cast %168 : vector<16x32xf32> to vector<1x16x32xf32>
    tpu.vector_store %arg22[%c3_118, %c0_119, %c0_120], %171 {strides = array<i32>} : memref<4x16x32xf32, #tpu.memory_space<vmem>>, vector<1x16x32xf32>,
    %c3_121 = arith.constant 3 : index
    %c0_122 = arith.constant 0 : index
    %c0_123 = arith.constant 0 : index
    %172 = vector.load %arg20[%c3_121, %c0_122, %c0_123] : memref<4x16x1xf32, #tpu.memory_space<vmem>>, vector<1x16x1xf32>
    %173 = vector.shape_cast %172 : vector<1x16x1xf32> to vector<16x1xf32>
    %174 = vector.shape_cast %148 : vector<16x1xf32> to vector<1x16x1xf32>
    tpu.vector_store %arg20[%c3_121, %c0_122, %c0_123], %174 {strides = array<i32>} : memref<4x16x1xf32, #tpu.memory_space<vmem>>, vector<1x16x1xf32>,
    %c2_i32 = arith.constant 2 : i32
    %175 = arith.cmpi eq, %arg1, %c2_i32 : i32
    %176 = arith.extui %175 : i1 to i32
    %c0_i32_124 = arith.constant 0 : i32
    %177 = arith.cmpi ne, %176, %c0_i32_124 : i32
    scf.if %177 {
      %c0_125 = arith.constant 0 : index
      %c0_126 = arith.constant 0 : index
      %c0_127 = arith.constant 0 : index
      %178 = vector.load %arg2[%c0_125, %c0_126, %c0_127] : memref<1x16x128xf32, #tpu.memory_space<vmem>>, vector<1x16x128xf32>
      %179 = vector.shape_cast %178 : vector<1x16x128xf32> to vector<16x128xf32>
      %c0_128 = arith.constant 0 : index
      %c0_129 = arith.constant 0 : index
      %180 = vector.load %arg15[%c0_128, %c0_129] : memref<1x128xf32, #tpu.memory_space<vmem>>, vector<1x128xf32>
      %c0_130 = arith.constant 0 : index
      %c0_131 = arith.constant 0 : index
      %c0_132 = arith.constant 0 : index
      %181 = vector.load %arg21[%c0_130, %c0_131, %c0_132] : memref<4x16x1xf32, #tpu.memory_space<vmem>>, vector<1x16x1xf32>
      %182 = vector.shape_cast %181 : vector<1x16x1xf32> to vector<16x1xf32>
      %cst_133 = arith.constant 1.000000e+00 : f32
      %183 = vector.broadcast %cst_133 : f32 to vector<16x1xf32>
      %184 = arith.divf %183, %182 : vector<16x1xf32>
      %c0_134 = arith.constant 0 : index
      %c0_135 = arith.constant 0 : index
      %c0_136 = arith.constant 0 : index
      %185 = vector.load %arg22[%c0_134, %c0_135, %c0_136] : memref<4x16x32xf32, #tpu.memory_space<vmem>>, vector<1x16x32xf32>
      %186 = vector.shape_cast %185 : vector<1x16x32xf32> to vector<16x32xf32>
      %187 = vector.broadcast %184 : vector<16x1xf32> to vector<16x32xf32>
      %188 = arith.mulf %186, %187 : vector<16x32xf32>
      %c0_137 = arith.constant 0 : index
      %c0_138 = arith.constant 0 : index
      %c0_139 = arith.constant 0 : index
      %189 = vector.load %arg14[%c0_137, %c0_138, %c0_139] : memref<4x32x128xf32, #tpu.memory_space<vmem>>, vector<1x32x128xf32>
      %190 = vector.shape_cast %189 : vector<1x32x128xf32> to vector<32x128xf32>
      %cst_140 = arith.constant dense<0.000000e+00> : vector<16x128xf32>
      %191 = tpu.matmul %188, %190, %cst_140 {dimension_numbers = #tpu.dot_dimension_numbers<[1], [0], [0], [1], [0, 0, 1, 1], [], []>} : vector<16x32xf32>, vector<32x128xf32>, vector<16x128xf32> -> vector<16x128xf32>
      %192 = vector.broadcast %180 : vector<1x128xf32> to vector<16x128xf32>
      %193 = arith.addf %192, %191 : vector<16x128xf32>
      %c1_141 = arith.constant 1 : index
      %c0_142 = arith.constant 0 : index
      %c0_143 = arith.constant 0 : index
      %194 = vector.load %arg21[%c1_141, %c0_142, %c0_143] : memref<4x16x1xf32, #tpu.memory_space<vmem>>, vector<1x16x1xf32>
      %195 = vector.shape_cast %194 : vector<1x16x1xf32> to vector<16x1xf32>
      %cst_144 = arith.constant 1.000000e+00 : f32
      %196 = vector.broadcast %cst_144 : f32 to vector<16x1xf32>
      %197 = arith.divf %196, %195 : vector<16x1xf32>
      %c1_145 = arith.constant 1 : index
      %c0_146 = arith.constant 0 : index
      %c0_147 = arith.constant 0 : index
      %198 = vector.load %arg22[%c1_145, %c0_146, %c0_147] : memref<4x16x32xf32, #tpu.memory_space<vmem>>, vector<1x16x32xf32>
      %199 = vector.shape_cast %198 : vector<1x16x32xf32> to vector<16x32xf32>
      %200 = vector.broadcast %197 : vector<16x1xf32> to vector<16x32xf32>
      %201 = arith.mulf %199, %200 : vector<16x32xf32>
      %c1_148 = arith.constant 1 : index
      %c0_149 = arith.constant 0 : index
      %c0_150 = arith.constant 0 : index
      %202 = vector.load %arg14[%c1_148, %c0_149, %c0_150] : memref<4x32x128xf32, #tpu.memory_space<vmem>>, vector<1x32x128xf32>
      %203 = vector.shape_cast %202 : vector<1x32x128xf32> to vector<32x128xf32>
      %cst_151 = arith.constant dense<0.000000e+00> : vector<16x128xf32>
      %204 = tpu.matmul %201, %203, %cst_151 {dimension_numbers = #tpu.dot_dimension_numbers<[1], [0], [0], [1], [0, 0, 1, 1], [], []>} : vector<16x32xf32>, vector<32x128xf32>, vector<16x128xf32> -> vector<16x128xf32>
      %205 = arith.addf %193, %204 : vector<16x128xf32>
      %c2_152 = arith.constant 2 : index
      %c0_153 = arith.constant 0 : index
      %c0_154 = arith.constant 0 : index
      %206 = vector.load %arg21[%c2_152, %c0_153, %c0_154] : memref<4x16x1xf32, #tpu.memory_space<vmem>>, vector<1x16x1xf32>
      %207 = vector.shape_cast %206 : vector<1x16x1xf32> to vector<16x1xf32>
      %cst_155 = arith.constant 1.000000e+00 : f32
      %208 = vector.broadcast %cst_155 : f32 to vector<16x1xf32>
      %209 = arith.divf %208, %207 : vector<16x1xf32>
      %c2_156 = arith.constant 2 : index
      %c0_157 = arith.constant 0 : index
      %c0_158 = arith.constant 0 : index
      %210 = vector.load %arg22[%c2_156, %c0_157, %c0_158] : memref<4x16x32xf32, #tpu.memory_space<vmem>>, vector<1x16x32xf32>
      %211 = vector.shape_cast %210 : vector<1x16x32xf32> to vector<16x32xf32>
      %212 = vector.broadcast %209 : vector<16x1xf32> to vector<16x32xf32>
      %213 = arith.mulf %211, %212 : vector<16x32xf32>
      %c2_159 = arith.constant 2 : index
      %c0_160 = arith.constant 0 : index
      %c0_161 = arith.constant 0 : index
      %214 = vector.load %arg14[%c2_159, %c0_160, %c0_161] : memref<4x32x128xf32, #tpu.memory_space<vmem>>, vector<1x32x128xf32>
      %215 = vector.shape_cast %214 : vector<1x32x128xf32> to vector<32x128xf32>
      %cst_162 = arith.constant dense<0.000000e+00> : vector<16x128xf32>
      %216 = tpu.matmul %213, %215, %cst_162 {dimension_numbers = #tpu.dot_dimension_numbers<[1], [0], [0], [1], [0, 0, 1, 1], [], []>} : vector<16x32xf32>, vector<32x128xf32>, vector<16x128xf32> -> vector<16x128xf32>
      %217 = arith.addf %205, %216 : vector<16x128xf32>
      %c3_163 = arith.constant 3 : index
      %c0_164 = arith.constant 0 : index
      %c0_165 = arith.constant 0 : index
      %218 = vector.load %arg21[%c3_163, %c0_164, %c0_165] : memref<4x16x1xf32, #tpu.memory_space<vmem>>, vector<1x16x1xf32>
      %219 = vector.shape_cast %218 : vector<1x16x1xf32> to vector<16x1xf32>
      %cst_166 = arith.constant 1.000000e+00 : f32
      %220 = vector.broadcast %cst_166 : f32 to vector<16x1xf32>
      %221 = arith.divf %220, %219 : vector<16x1xf32>
      %c3_167 = arith.constant 3 : index
      %c0_168 = arith.constant 0 : index
      %c0_169 = arith.constant 0 : index
      %222 = vector.load %arg22[%c3_167, %c0_168, %c0_169] : memref<4x16x32xf32, #tpu.memory_space<vmem>>, vector<1x16x32xf32>
      %223 = vector.shape_cast %222 : vector<1x16x32xf32> to vector<16x32xf32>
      %224 = vector.broadcast %221 : vector<16x1xf32> to vector<16x32xf32>
      %225 = arith.mulf %223, %224 : vector<16x32xf32>
      %c3_170 = arith.constant 3 : index
      %c0_171 = arith.constant 0 : index
      %c0_172 = arith.constant 0 : index
      %226 = vector.load %arg14[%c3_170, %c0_171, %c0_172] : memref<4x32x128xf32, #tpu.memory_space<vmem>>, vector<1x32x128xf32>
      %227 = vector.shape_cast %226 : vector<1x32x128xf32> to vector<32x128xf32>
      %cst_173 = arith.constant dense<0.000000e+00> : vector<16x128xf32>
      %228 = tpu.matmul %225, %227, %cst_173 {dimension_numbers = #tpu.dot_dimension_numbers<[1], [0], [0], [1], [0, 0, 1, 1], [], []>} : vector<16x32xf32>, vector<32x128xf32>, vector<16x128xf32> -> vector<16x128xf32>
      %229 = arith.addf %217, %228 : vector<16x128xf32>
      %230 = arith.addf %179, %229 : vector<16x128xf32>
      %cst_174 = arith.constant dense<0.000000e+00> : vector<16xf32>
      %231 = vector.multi_reduction <add>, %230, %cst_174 [1] : vector<16x128xf32> to vector<16xf32>
      %232 = vector.shape_cast %231 : vector<16xf32> to vector<16x1xf32>
      %cst_175 = arith.constant 1.280000e+02 : f32
      %233 = vector.broadcast %cst_175 : f32 to vector<16x1xf32>
      %234 = arith.divf %232, %233 : vector<16x1xf32>
      %235 = vector.broadcast %234 : vector<16x1xf32> to vector<16x128xf32>
      %236 = arith.subf %230, %235 : vector<16x128xf32>
      %237 = arith.mulf %236, %236 : vector<16x128xf32>
      %cst_176 = arith.constant dense<0.000000e+00> : vector<16xf32>
      %238 = vector.multi_reduction <add>, %237, %cst_176 [1] : vector<16x128xf32> to vector<16xf32>
      %239 = vector.shape_cast %238 : vector<16xf32> to vector<16x1xf32>
      %cst_177 = arith.constant 1.280000e+02 : f32
      %240 = vector.broadcast %cst_177 : f32 to vector<16x1xf32>
      %241 = arith.divf %239, %240 : vector<16x1xf32>
      %cst_178 = arith.constant 9.99999974E-6 : f32
      %242 = vector.broadcast %cst_178 : f32 to vector<16x1xf32>
      %243 = arith.addf %241, %242 : vector<16x1xf32>
      %244 = math.rsqrt %243 : vector<16x1xf32>
      %245 = vector.broadcast %244 : vector<16x1xf32> to vector<16x128xf32>
      %246 = arith.mulf %236, %245 : vector<16x128xf32>
      %247 = vector.broadcast %0 : vector<1x128xf32> to vector<16x128xf32>
      %248 = arith.mulf %246, %247 : vector<16x128xf32>
      %249 = vector.broadcast %1 : vector<1x128xf32> to vector<16x128xf32>
      %250 = arith.addf %248, %249 : vector<16x128xf32>
      %c0_179 = arith.constant 0 : index
      %c0_180 = arith.constant 0 : index
      %c0_181 = arith.constant 0 : index
      %251 = vector.load %arg18[%c0_179, %c0_180, %c0_181] : memref<1x16x128xf32, #tpu.memory_space<vmem>>, vector<1x16x128xf32>
      %252 = vector.shape_cast %251 : vector<1x16x128xf32> to vector<16x128xf32>
      %253 = vector.shape_cast %250 : vector<16x128xf32> to vector<1x16x128xf32>
      tpu.vector_store %arg18[%c0_179, %c0_180, %c0_181], %253 {strides = array<i32>} : memref<1x16x128xf32, #tpu.memory_space<vmem>>, vector<1x16x128xf32>,
    } else {
    }
    return
  }
  func.func @transform_0(%arg0: i32, %arg1: i32) -> (i32, i32, i32) {
    %c0_i32 = arith.constant 0 : i32
    %c0_i32_0 = arith.constant 0 : i32
    %c0_i32_1 = arith.constant 0 : i32
    return %arg0, %c0_i32, %c0_i32_0 : i32, i32, i32
  }
  func.func @transform_1(%arg0: i32, %arg1: i32) -> (i32, i32, i32) {
    %c0_i32 = arith.constant 0 : i32
    %c0_i32_0 = arith.constant 0 : i32
    %c0_i32_1 = arith.constant 0 : i32
    return %arg0, %c0_i32, %c0_i32_0 : i32, i32, i32
  }
  func.func @transform_2(%arg0: i32, %arg1: i32) -> (i32, i32, i32) {
    %c0_i32 = arith.constant 0 : i32
    %c0_i32_0 = arith.constant 0 : i32
    return %arg0, %arg1, %c0_i32 : i32, i32, i32
  }
  func.func @transform_3(%arg0: i32, %arg1: i32) -> (i32, i32, i32) {
    %c0_i32 = arith.constant 0 : i32
    %c0_i32_0 = arith.constant 0 : i32
    return %arg0, %arg1, %c0_i32 : i32, i32, i32
  }
  func.func @transform_4(%arg0: i32, %arg1: i32) -> (i32, i32, i32) {
    %c0_i32 = arith.constant 0 : i32
    %c0_i32_0 = arith.constant 0 : i32
    return %arg0, %c0_i32, %arg1 : i32, i32, i32
  }
  func.func @transform_5(%arg0: i32, %arg1: i32) -> (i32, i32) {
    %c0_i32 = arith.constant 0 : i32
    %c0_i32_0 = arith.constant 0 : i32
    return %c0_i32, %arg1 : i32, i32
  }
  func.func @transform_6(%arg0: i32, %arg1: i32) -> (i32, i32) {
    %c0_i32 = arith.constant 0 : i32
    %c0_i32_0 = arith.constant 0 : i32
    %c0_i32_1 = arith.constant 0 : i32
    return %c0_i32, %c0_i32_0 : i32, i32
  }
  func.func @transform_7(%arg0: i32, %arg1: i32) -> (i32, i32) {
    %c0_i32 = arith.constant 0 : i32
    %c0_i32_0 = arith.constant 0 : i32
    %c0_i32_1 = arith.constant 0 : i32
    return %c0_i32, %c0_i32_0 : i32, i32
  }
  func.func @transform_8(%arg0: i32, %arg1: i32) -> (i32, i32) {
    %c0_i32 = arith.constant 0 : i32
    %c0_i32_0 = arith.constant 0 : i32
    %c0_i32_1 = arith.constant 0 : i32
    return %c0_i32, %c0_i32_0 : i32, i32
  }
  func.func @transform_9(%arg0: i32, %arg1: i32) -> (i32, i32) {
    %c0_i32 = arith.constant 0 : i32
    %c0_i32_0 = arith.constant 0 : i32
    %c0_i32_1 = arith.constant 0 : i32
    return %c0_i32, %c0_i32_0 : i32, i32
  }
  func.func @transform_10(%arg0: i32, %arg1: i32) -> (i32, i32) {
    %c0_i32 = arith.constant 0 : i32
    %c0_i32_0 = arith.constant 0 : i32
    %c0_i32_1 = arith.constant 0 : i32
    return %c0_i32, %c0_i32_0 : i32, i32
  }
  func.func @transform_11(%arg0: i32, %arg1: i32) -> (i32, i32) {
    %c0_i32 = arith.constant 0 : i32
    %c0_i32_0 = arith.constant 0 : i32
    %c0_i32_1 = arith.constant 0 : i32
    return %c0_i32, %c0_i32_0 : i32, i32
  }
  func.func @transform_12(%arg0: i32, %arg1: i32) -> (i32, i32, i32) {
    %c0_i32 = arith.constant 0 : i32
    %c0_i32_0 = arith.constant 0 : i32
    %c0_i32_1 = arith.constant 0 : i32
    %c0_i32_2 = arith.constant 0 : i32
    return %c0_i32, %c0_i32_0, %c0_i32_1 : i32, i32, i32
  }
  func.func @transform_13(%arg0: i32, %arg1: i32) -> (i32, i32) {
    %c0_i32 = arith.constant 0 : i32
    %c0_i32_0 = arith.constant 0 : i32
    %c0_i32_1 = arith.constant 0 : i32
    return %c0_i32, %c0_i32_0 : i32, i32
  }
  func.func @transform_14(%arg0: i32, %arg1: i32) -> (i32, i32) {
    %c0_i32 = arith.constant 0 : i32
    %c0_i32_0 = arith.constant 0 : i32
    %c0_i32_1 = arith.constant 0 : i32
    return %c0_i32, %c0_i32_0 : i32, i32
  }
  func.func @transform_15(%arg0: i32, %arg1: i32) -> (i32, i32) {
    %c0_i32 = arith.constant 0 : i32
    %c0_i32_0 = arith.constant 0 : i32
    %c0_i32_1 = arith.constant 0 : i32
    return %c0_i32, %c0_i32_0 : i32, i32
  }
  func.func @transform_16(%arg0: i32, %arg1: i32) -> (i32, i32, i32) {
    %c0_i32 = arith.constant 0 : i32
    %c0_i32_0 = arith.constant 0 : i32
    %c0_i32_1 = arith.constant 0 : i32
    return %arg0, %c0_i32, %c0_i32_0 : i32, i32, i32
  }
}

</mosaic_0001>

<bundles_post_ra>
// kernel: tpu_custom_call.1
= control target key start
LH: loop header
LB: loop body
LE: loop exit
PB: predicated region body
PF: predicated region fallthrough
CT: control target
= control target key end

     0   :  { %s6385_s0 = inlined_call_operand.hbm [shape: f32[2,16,128], index: 0, kind: input, shape index: {}]   ;;  %s6386_s1 = inlined_call_operand.hbm [shape: f32[2,16,128], index: 1, kind: input, shape index: {}]   ;;  %s6387_s2 = inlined_call_operand.hbm [shape: f32[2,384,128], index: 2, kind: input, shape index: {}]   ;;  %s6388_s3 = inlined_call_operand.hbm [shape: f32[2,384,128], index: 3, kind: input, shape index: {}]   ;;  %s6389_s4 = inlined_call_operand.vmem [shape: f32[2,1,384], index: 4, kind: input, shape index: {}]   ;;  %s6390_s5 = inlined_call_operand.hbm [shape: f32[16,384], index: 5, kind: input, shape index: {}]   ;;  %s6391_s6 = inlined_call_operand.hbm [shape: f32[128,128], index: 6, kind: input, shape index: {}]   ;;  %s6392_s7 = inlined_call_operand.vmem [shape: f32[1,128], index: 7, kind: input, shape index: {}]   ;;  %s6393_s8 = inlined_call_operand.hbm [shape: f32[128,128], index: 8, kind: input, shape index: {}]   ;;  %s6394_s9 = inlined_call_operand.vmem [shape: f32[1,128], index: 9, kind: input, shape index: {}]   ;;  %s6395_s10 = inlined_call_operand.hbm [shape: f32[128,128], index: 10, kind: input, shape index: {}]   ;;  %s6396_s11 = inlined_call_operand.vmem [shape: f32[1,128], index: 11, kind: input, shape index: {}]   ;;  %s6397_s12 = inlined_call_operand.hbm [shape: f32[4,32,128], index: 12, kind: input, shape index: {}]   ;;  %s6398_s13 = inlined_call_operand.vmem [shape: f32[1,128], index: 13, kind: input, shape index: {}]   ;;  %s6399_s14 = inlined_call_operand.vmem [shape: f32[1,128], index: 14, kind: input, shape index: {}]   ;;  %s6400_s15 = inlined_call_operand.vmem [shape: f32[1,128], index: 15, kind: input, shape index: {}]   ;;  %s6401_s16 = inlined_call_operand.hbm [shape: f32[2,16,128], index: 16, kind: output, shape index: {}]  }
   0x1   :  { %6440 = sst [smem:[#allocation48_spill]] %s6385_s0 }
   0x2   :  { %6441 = sst [smem:[#allocation49_spill]] %s6386_s1 }
   0x3   :  { %6442 = sst [smem:[#allocation50_spill]] %s6387_s2 }
   0x4   :  { %6443 = sst [smem:[#allocation51_spill]] %s6388_s3 }
   0x5   :  { %6444 = sst [smem:[#allocation52_spill]] %s6389_s4 }
   0x6   :  { %6445 = sst [smem:[#allocation53_spill]] %s6390_s5 }
   0x7   :  { %6446 = sst [smem:[#allocation54_spill]] %s6391_s6 }
   0x8   :  { %6447 = sst [smem:[#allocation55_spill]] %s6392_s7 }
   0x9   :  { %6448 = sst [smem:[#allocation56_spill]] %s6393_s8 }
   0xa   :  { %6449 = sst [smem:[#allocation57_spill]] %s6394_s9 }
   0xb   :  { %6450 = sst [smem:[#allocation58_spill]] %s6395_s10 }
   0xc   :  { %6451 = sst [smem:[#allocation59_spill]] %s6396_s11 }
   0xd   :  { %6452 = sst [smem:[#allocation60_spill]] %s6397_s12 }
   0xe   :  { %6453 = sst [smem:[#allocation61_spill]] %s6398_s13 }
   0xf   :  { %6454 = sst [smem:[#allocation62_spill]] %s6399_s14 }
  0x10   :  { %6455 = sst [smem:[#allocation63_spill]] %s6400_s15 }
  0x11   :  { %6456 = sst [smem:[#allocation64_spill]] %s6401_s16 }
  0x12   :  { %21 = vsyncpa [#allocation7], 0 }
  0x13   :  { %23 = vsyncpa [#allocation7 + $0x1], 0 }
  0x14   :  { %24 = vsyncpa [#allocation10], 0 }
  0x15   :  { %26 = vsyncpa [#allocation10 + $0x1], 0 }
  0x16   :  { %27 = vsyncpa [#allocation13], 0 }
  0x17   :  { %29 = vsyncpa [#allocation13 + $0x1], 0 }
  0x18   :  { %30 = vsyncpa [#allocation16], 0 }
  0x19   :  { %31 = vsyncpa [#allocation19], 0 }
  0x1a   :  { %32 = vsyncpa [#allocation8], 0 }
  0x1b   :  { %34 = vsyncpa [#allocation8 + $0x1], 0  ;;  %s5023_s21 = smov 0   ;;  %s5025_s22 = smov 0  }
  0x1c   :  { %s5027_s23 = smov 0   ;;  %s5029_s24 = smov 0  }
  0x1d   :  { %s5031_s25 = smov 0   ;;  %s5033_s26 = smov 0  }
  0x1e   :  { %s5035_s27 = smov 0   ;;  %s5037_s28 = smov 0  }
  0x1f   :  { %s5039_s29 = smov 0   ;;  %s5041_s30 = smov 0  }
  0x20   :  { %s5043_s0 = smov 0   ;;  %s5045_s17 = smov 0  }
  0x21   :  { %s5047_s18 = smov 0   ;;  %s5049_s19 = smov 0  }
  0x22 LB: > { %6457 = sst [smem:[#allocation30_spill]] %s4859_s21  ;;  %s5094_s20 = sadd.s32 4294967295, %s4911_s19   ;;  %s4911_s19 = sphi %s5049_s19, %s40_s19   ;;  %s4907_s18 = sphi %s5047_s18, %s6578_s18   ;;  %s4903_s17 = sphi %s5045_s17, %s6577_s17   ;;  %s4899_s0 = sphi %s5043_s0, %s6576_s0   ;;  %s4895_s30 = sphi %s5041_s30, %s6575_s30   ;;  %s4891_s29 = sphi %s5039_s29, %s6574_s29   ;;  %s4887_s28 = sphi %s5037_s28, %s6573_s28   ;;  %s4883_s27 = sphi %s5035_s27, %s6564_s27   ;;  %s4879_s26 = sphi %s5033_s26, %s6572_s26   ;;  %s4875_s25 = sphi %s5031_s25, %s6571_s25   ;;  %s4871_s24 = sphi %s5029_s24, %s6562_s24   ;;  %s4867_s23 = sphi %s5027_s23, %s6570_s23   ;;  %s4863_s22 = sphi %s5025_s22, %s6569_s22   ;;  %s4859_s21 = sphi %s5023_s21, %s6568_s21  }
  0x23   : > { %6458 = sst [smem:[#allocation31_spill]] %s4863_s22  ;;  %p3389_p0 = scmp.ge.s32.totalorder %s4911_s19, 1 }
  0x24   : > { %6459 = sst [smem:[#allocation32_spill]] %s4867_s23  ;;  %p6420_p1 = scmp.eq.s32.totalorder %s5094_s20, 0 }
  0x25   : > { %6460 = sst [smem:[#allocation33_spill]] %s4875_s25  ;;  %p455_p2 = scmp.lt.s32.totalorder %s4911_s19, 7 }
  0x26   : > { %6461 = sst [smem:[#allocation34_spill]] %s4883_s27  ;;  %s4913_s13 = smov [#allocation15]  }
  0x27   : > { %6462 = sst [smem:[#allocation35_spill]] %s4887_s28  ;;  %p5099_p3 = pnand %p3389_p0, %p455_p2 }
  0x28   : > { %6463 = sst [smem:[#allocation36_spill]] %s4895_s30  ;;  %s467_s11 = sshll.u32 %s4913_s13, 4  ;;  %s468_s11 = int_to_ptr.vmem [resolvable:$true] %s467_s11 }
  0x29   : > { %6464 = sst [smem:[#allocation37_spill]] %s4899_s0  ;;  %p4269_p4 = pneg %p5099_p3 }
  0x2a   : > { %6465 = sst [smem:[#allocation38_spill]] %s5094_s20  ;;  %s4914_s7 = smov [#allocation18]  }
  0x2b   : > { %s6466_s16 = scalar_select %p5099_p3, 1, 0 }
  0x2c   : > { %p5107_p5 = pnand %p4269_p4, %p6420_p1  ;;  %s499_s4 = sshll.u32 %s4914_s7, 4  ;;  %s500_s4 = int_to_ptr.vmem [resolvable:$true] %s499_s4 }
  0x2d   : > { %6467 = sst [smem:[#allocation39_spill]] %s6466_s16  ;;  %s4510_s15 = scalar_lea.vmem %s468_s11, 2048 }
  0x2e   : > { %p6406_p6 = pneg %p5107_p5  ;;  %p4511_p7 = scmp.ne.s32.totalorder %s468_s11, %s4510_s15 }
  0x2f   : > { %p4518_p10 = scmp.lt.s32.totalorder %s468_s11, %s468_s11  ;;  %p4519_p11 = scmp.lt.s32.totalorder %s4510_s15, %s4510_s15 }
  0x30   : > { %p4513_p8 = pnand %p4511_p7, %p6406_p6 }
  0x31   : > { %p4520_p12 = por %p4519_p11, %p4518_p10 }
  0x32   : > { %p4514_p9 = pneg %p4513_p8 }
  0x34   : > { %p4521_p13 = pnand %p4520_p12, %p4514_p9 }
  0x36   : > { %4524 = shalt.err (!%p4521_p13)
}
  0x37   : > { %s6407_s13 = smov 128   ;;  %s6409_s14 = smov 8  }
  0x38   : > { %s6469_s6 = sld [smem:[#allocation54_spill]]  ;;  %s4536_s0 = scalar_lea.vmem %s500_s4, 2048 }
  0x39   : > { %p4537_p0 = scmp.ne.s32.totalorder %s500_s4, %s4536_s0  ;;  %p4544_p7 = scmp.lt.s32.totalorder %s500_s4, %s500_s4 }
  0x3a   : > { %p4545_p8 = scmp.lt.s32.totalorder %s4536_s0, %s4536_s0 }
  0x3b   : > { %p4539_p2 = pnand %p4537_p0, %p6406_p6 }
  0x3c   : > { %p4546_p9 = por %p4545_p8, %p4544_p7 }
  0x3d   : > { %p4540_p4 = pneg %p4539_p2 }
  0x3e   : > { %4272 = dma.hbm_to_vmem [thread:$0]  (!%p5107_p5), %s6469_s6, 2048, %s468_s11, [#allocation16], %s6407_s13, %s6407_s13, %s6409_s14  }
  0x3f   : > { %p4547_p10 = pnand %p4546_p9, %p4540_p4 }
  0x41   : > { %4550 = shalt.err (!%p4547_p10)
}
  0x42   : > { %s6470_s10 = sld [smem:[#allocation58_spill]]  ;;  %s3388_s11 = sadd.s32 4294967294, %s4911_s19  }
  0x43   : > { %p66_p11 = scmp.ne.s32.totalorder %s4891_s29, %s4887_s28  ;;  %p6421_p12 = scmp.eq.s32.totalorder %s4911_s19, 0 }
  0x44   : > { %p72_p13 = scmp.ne.s32.totalorder %s4887_s28, %s4883_s27  ;;  %p442_p0 = scmp.eq.s32.totalorder %s5094_s20, 5 }
  0x45   : > { %p448_p2 = scmp.eq.s32.totalorder %s3388_s11, 5  ;;  %p68_p4 = por %p6421_p12, %p66_p11 }
  0x46   : > { %p5148_p7 = por %p6420_p1, %p72_p13  ;;  %p5152_p8 = por %p442_p0, %p66_p11 }
  0x47   : > { %p5156_p9 = por %p448_p2, %p72_p13  ;;  %p6419_p10 = scmp.lt.s32.totalorder %s4911_s19, 6 }
  0x48   : > { %4278 = dma.hbm_to_vmem [thread:$0]  (!%p5107_p5), %s6470_s10, 2048, %s500_s4, [#allocation19], %s6407_s13, %s6407_s13, %s6409_s14  }
  0x49   : > { %s6471_s0 = scalar_select %p5148_p7, 1, 0 }
  0x4a   : > { %s6473_s4 = scalar_select %p5152_p8, 1, 0 }
  0x4b   : > { %6472 = sst [smem:[#allocation40_spill]] %s6471_s0  ;;  %s6413_s15 = sand.u32 1, %s4891_s29  }
  0x4c   : > { %6474 = sst [smem:[#allocation41_spill]] %s6473_s4  ;;  %s5164_s16 = sshll.u32 %s6413_s15, 4 }
  0x4d   : > { %s6475_s7 = scalar_select %p5156_p9, 1, 0 }
  0x4e   : > { %6477 = sst [smem:[#allocation43_spill]] %s5164_s16  ;;  %s6423_s11 = sshll.u32 %s4907_s18, 8 }
  0x4f   : > { %6476 = sst [smem:[#allocation42_spill]] %s6475_s7  ;;  %p5169_p6 = pnand %p6419_p10, %p68_p4 }
  0x50   : > { %s6424_s13 = sand.u32 1, %s4911_s19   ;;  %s6480_s1 = sld [smem:[#allocation49_spill]] }
  0x51   : > { %s6478_s30 = scalar_select %p5169_p6, 1, 0 }
  0x52   : > { %s563_s7 = scalar_lea.vmem [#allocation9], %s5164_s16  ;;  %s5182_s15 = scalar_lea.sflag [#allocation10], %s6424_s13 }
  0x53   : > { %6479 = sst [smem:[#allocation44_spill]] %s6478_s30  ;;  %s570_s27 = sshll.u32 %s563_s7, 4  ;;  %s571_s27 = int_to_ptr.vmem [resolvable:$true] %s570_s27 }
  0x54   : > { %6481 = sst [smem:[#allocation45_spill]] %s5182_s15  ;;  %p6422_p11 = pneg %p5169_p6 }
  0x55   : > { %s4564_s4 = scalar_lea.vmem %s571_s27, 256  ;;  %s4917_s0 = smov [#allocation9]  }
  0x56   : > { %s569_s10 = scalar_lea.hbm %s6480_s1, %s6423_s11  ;;  %p4565_p13 = scmp.ne.s32.totalorder %s571_s27, %s4564_s4 }
  0x57   : > { %s4569_s28 = sshll.u32 %s4917_s0, 4  ;;  %s4570_s28 = int_to_ptr.vmem [resolvable:$false] %s4569_s28 }
  0x58   : > { %p4567_p0 = pnand %p4565_p13, %p6422_p11  ;;  %s4571_s5 = scalar_lea.vmem %s4570_s28, 512 }
  0x59   : > { %p4572_p4 = scmp.lt.s32.totalorder %s571_s27, %s4570_s28  ;;  %p4573_p10 = scmp.lt.s32.totalorder %s4571_s5, %s4564_s4 }
  0x5a   : > { %p4568_p2 = pneg %p4567_p0 }
  0x5b   : > { %p4574_p1 = por %p4573_p10, %p4572_p4 }
  0x5d   : > { %p4575_p12 = pnand %p4574_p1, %p4568_p2 }
  0x5f   : > { %4578 = shalt.err (!%p4575_p12)
}
  0x60   : > { %s6482_s6 = smov 8   ;;  %s6483_s14 = smov 128  }
  0x61   : > { %4288 = dma.hbm_to_vmem [thread:$0]  (!%p5169_p6), %s569_s10, 256, %s571_s27, %s5182_s15, %s6483_s14, %s6483_s14, %s6482_s6  }
  0x62   : > { %s49_s5 = sadd.s32 1, %s4903_s17  ;;  %s113_s28 = sadd.s32 1, %s4879_s26 }
  0x63   : > { %p50_p1 = scmp.ge.s32.totalorder %s49_s5, 3  ;;  %p120_p12 = scmp.ne.s32.totalorder %s4879_s26, %s4875_s25 }
  0x64   : > { %p126_p10 = scmp.ne.s32.totalorder %s4875_s25, %s4871_s24  ;;  %s582_s0 = sand.u32 1, %s4879_s26  }
  0x65   : > { %s6580_s5 = smov (%p50_p1, %s49_s5), 0  ;;  %s6485_s4 = sadd.s32 1, %s4907_s18 }
  0x66   : > { %6484 = sst [smem:[#allocation46_spill]] %s6580_s5  ;;  %s6582_s4 = smov (!%p50_p1, %s6485_s4), %s4907_s18 }
  0x67   : > { %s5209_s7 = ssub.s32 %s4903_s17, %s6580_s5  ;;  %p6486_p13 = scmp.eq.s32.totalorder %s4911_s19, 0 }
  0x68   : > { %p54_p2 = scmp.ge.s32.totalorder %s6582_s4, 2  ;;  %p6488_p4 = scmp.eq.s32.totalorder %s5094_s20, 0 }
  0x69   : > { %p5213_p0 = por %p120_p12, %p6486_p13  ;;  %s3401_s27 = sshll.u32 %s582_s0, 7 }
  0x6a   : > { %p5219_p11 = por %p126_p10, %p6488_p4  ;;  %s6584_s4 = smov (%p54_p2, %s6582_s4), 0 }
  0x6b   : > { %s3402_s11 = sshll.u32 %s4903_s17, 4  ;;  %s56_s13 = ssub.s32 %s4907_s18, %s6584_s4 }
  0x6c   : > { %s6489_s24 = scalar_select %p5219_p11, 1, 0 }
  0x6d   : > { %s4238_s1 = smul.u32 48, %s4907_s18  ;;  %p57_p1 = scmp.eq.s32.totalorder %s56_s13, 0 }
  0x6e   : > { %6490 = sst [smem:[#allocation47_spill]] %s6489_s24  ;;  %s110_s5 = sor.u32 %s5209_s7, %s56_s13 }
  0x6f   : > { %p111_p12 = scmp.eq.s32.totalorder %s110_s5, 0  ;;  %s590_s25 = sadd.s32 %s4238_s1, %s3402_s11 }
  0x70   : > { %s6491_s20 = sadd.s32 1, %s4891_s29  ;;  %s3403_s24 = sshll.u32 %s590_s25, 7 }
  0x71   : > { %s5234_s21 = scalar_select %p57_p1, %s4891_s29, %s6491_s20  }
  0x72   : > { %s5237_s22 = scalar_select %p111_p12, %s4879_s26, %s113_s28  }
  0x73   : > { %s584_s0 = scalar_lea.vmem [#allocation11], %s3401_s27  ;;  %s6492_s2 = sld [smem:[#allocation50_spill]] }
  0x74   : > { %s593_s23 = sshll.u32 %s584_s0, 4  ;;  %p6493_p10 = scmp.lt.s32.totalorder %s4911_s19, 6  ;;  %s5244_s23 = int_to_ptr.vmem [resolvable:$true] %s593_s23 }
  0x75   : > { %s6495_s3 = sld [smem:[#allocation51_spill]]  ;;  %s607_s11 = scalar_lea.vmem [#allocation12], %s3401_s27 }
  0x76   : > { %p5250_p13 = pnand %p6493_p10, %p5213_p0  ;;  %s616_s5 = sshll.u32 %s607_s11, 4  ;;  %s617_s5 = int_to_ptr.vmem [resolvable:$true] %s616_s5 }
  0x77   : > { %s6496_s30 = sand.u32 1, %s4911_s19   ;;  %s4592_s28 = scalar_lea.vmem %s617_s5, 2048 }
  0x78   : > { %s5259_s15 = scalar_lea.sflag [#allocation13], %s6496_s30  ;;  %p6438_p2 = pneg %p5250_p13 }
  0x79   : > { %s5242_s16 = scalar_lea.hbm %s6492_s2, %s3403_s24  ;;  %p4593_p4 = scmp.ne.s32.totalorder %s617_s5, %s4592_s28 }
  0x7a   : > { %s4918_s10 = smov [#allocation12]  }
  0x7b   : > { %s615_s25 = scalar_lea.hbm %s6495_s3, %s3403_s24  ;;  %p4595_p0 = pnand %p4593_p4, %p6438_p2 }
  0x7c   : > { %s4597_s0 = sshll.u32 %s4918_s10, 4  ;;  %s4598_s0 = int_to_ptr.vmem [resolvable:$false] %s4597_s0 }
  0x7d   : > { %p4596_p1 = pneg %p4595_p0  ;;  %s4599_s1 = scalar_lea.vmem %s4598_s0, 4096 }
  0x7e   : > { %p4600_p12 = scmp.lt.s32.totalorder %s617_s5, %s4598_s0  ;;  %p4601_p10 = scmp.lt.s32.totalorder %s4599_s1, %s4592_s28 }
  0x80   : > { %p4602_p9 = por %p4601_p10, %p4600_p12 }
  0x82   : > { %p4603_p8 = pnand %p4602_p9, %p4596_p1 }
  0x84   : > { %4606 = shalt.err (!%p4603_p8)
}
  0x85   : > { %4294 = dma.hbm_to_vmem [thread:$0]  (!%p5250_p13), %s615_s25, 2048, %s617_s5, %s5259_s15, %s6483_s14, %s6483_s14, %s6482_s6  }
  0x86   : > { %s4919_s24 = smov [#allocation17]   ;;  %s4920_s20 = smov [#allocation20]  }
  0x87   : > { %s483_s27 = sshll.u32 %s4919_s24, 4  ;;  %s515_s11 = sshll.u32 %s4920_s20, 4  ;;  %s484_s27 = int_to_ptr.vmem [resolvable:$true] %s483_s27  ;;  %s516_s11 = int_to_ptr.vmem [resolvable:$true] %s515_s11 }
  0x88   : > { %s4618_s30 = scalar_lea.vmem %s484_s27, 2048  ;;  %p6497_p0 = pneg %p5107_p5 }
  0x89   : > { %p4619_p4 = scmp.ne.s32.totalorder %s484_s27, %s4618_s30  ;;  %p4626_p8 = scmp.lt.s32.totalorder %s484_s27, %s484_s27 }
  0x8a   : > { %p4627_p1 = scmp.lt.s32.totalorder %s4618_s30, %s4618_s30 }
  0x8b   : > { %p4621_p12 = pnand %p4619_p4, %p6497_p0 }
  0x8c   : > { %p4628_p10 = por %p4627_p1, %p4626_p8 }
  0x8d   : > { %p4622_p9 = pneg %p4621_p12 }
  0x8f   : > { %p4629_p2 = pnand %p4628_p10, %p4622_p9 }
  0x91   : > { %4632 = shalt.err (!%p4629_p2)
}
  0x92   : > { %s6498_s8 = sld [smem:[#allocation56_spill]]  ;;  %s4644_s28 = scalar_lea.vmem %s516_s11, 2048 }
  0x93   : > { %p4645_p11 = scmp.ne.s32.totalorder %s516_s11, %s4644_s28  ;;  %p6499_p4 = pmov %p6497_p0 }
  0x94   : > { %p4652_p8 = scmp.lt.s32.totalorder %s516_s11, %s516_s11  ;;  %p4653_p9 = scmp.lt.s32.totalorder %s4644_s28, %s4644_s28 }
  0x95   : > { %p4647_p0 = pnand %p4645_p11, %p6499_p4 }
  0x96   : > { %p4654_p2 = por %p4653_p9, %p4652_p8 }
  0x97   : > { %p4648_p12 = pneg %p4647_p0 }
  0x98   : > { %4275 = dma.hbm_to_vmem [thread:$0]  (!%p5107_p5), %s6498_s8, 2048, %s484_s27, [#allocation16], %s6483_s14, %s6483_s14, %s6482_s6  }
  0x99   : > { %p4655_p1 = pnand %p4654_p2, %p4648_p12 }
  0x9b   : > { %4658 = shalt.err (!%p4655_p1)
}
  0x9c   : > { %s6500_s12 = sld [smem:[#allocation60_spill]]  ;;  %s6503_s27 = sshll.u32 %s4907_s18, 8 }
  0x9d   : > { %s6501_s1 = sld [smem:[#allocation43_spill]]  ;;  %s6505_s9 = sand.u32 1, %s4891_s29  }
  0x9e   : > { %s6504_s25 = sld [smem:[#allocation48_spill]]  ;;  %s539_s3 = scalar_lea.sflag [#allocation7], %s6505_s9 }
  0x9f   : > { %p6506_p10 = pneg %p5169_p6  ;;  %s4921_s10 = smov [#allocation6]  }
  0xa0   : > { %s4677_s0 = sshll.u32 %s4921_s10, 4  ;;  %s4678_s0 = int_to_ptr.vmem [resolvable:$false] %s4677_s0 }
  0xa2   : > { %4281 = dma.hbm_to_vmem [thread:$0]  (!%p5107_p5), %s6500_s12, 2048, %s516_s11, [#allocation19], %s6483_s14, %s6483_s14, %s6482_s6  }
  0xa3   : > { %s542_s28 = scalar_lea.vmem [#allocation6], %s6501_s1  ;;  %s4679_s11 = scalar_lea.vmem %s4678_s0, 512 }
  0xa4   : > { %s548_s5 = scalar_lea.hbm %s6504_s25, %s6503_s27  ;;  %s549_s2 = sshll.u32 %s542_s28, 4  ;;  %s550_s2 = int_to_ptr.vmem [resolvable:$true] %s549_s2 }
  0xa5   : > { %s4672_s8 = scalar_lea.vmem %s550_s2, 256  ;;  %p4680_p5 = scmp.lt.s32.totalorder %s550_s2, %s4678_s0 }
  0xa6   : > { %p4673_p11 = scmp.ne.s32.totalorder %s550_s2, %s4672_s8  ;;  %p4681_p12 = scmp.lt.s32.totalorder %s4679_s11, %s4672_s8 }
  0xa8   : > { %p4675_p4 = pnand %p4673_p11, %p6506_p10  ;;  %p4682_p8 = por %p4681_p12, %p4680_p5 }
  0xaa   : > { %p4676_p0 = pneg %p4675_p4 }
  0xac   : > { %p4683_p9 = pnand %p4682_p8, %p4676_p0 }
  0xae   : > { %4686 = shalt.err (!%p4683_p9)
}
  0xaf   : > { %4285 = dma.hbm_to_vmem [thread:$0]  (!%p5169_p6), %s548_s5, 256, %s550_s2, %s539_s3, %s6483_s14, %s6483_s14, %s6482_s6  }
  0xb0   : > { %s4700_s1 = scalar_lea.vmem %s5244_s23, 2048  ;;  %p6507_p1 = pneg %p5250_p13 }
  0xb1   : > { %p4701_p2 = scmp.ne.s32.totalorder %s5244_s23, %s4700_s1  ;;  %s4922_s8 = smov [#allocation11]  }
  0xb2   : > { %s4705_s27 = sshll.u32 %s4922_s8, 4  ;;  %s4706_s27 = int_to_ptr.vmem [resolvable:$false] %s4705_s27 }
  0xb3   : > { %p4703_p11 = pnand %p4701_p2, %p6507_p1  ;;  %s4707_s20 = scalar_lea.vmem %s4706_s27, 4096 }
  0xb4   : > { %p4708_p4 = scmp.lt.s32.totalorder %s5244_s23, %s4706_s27  ;;  %p4709_p0 = scmp.lt.s32.totalorder %s4707_s20, %s4700_s1 }
  0xb5   : > { %p4704_p10 = pneg %p4703_p11 }
  0xb6   : > { %p4710_p5 = por %p4709_p0, %p4708_p4 }
  0xb8   : > { %p4711_p12 = pnand %p4710_p5, %p4704_p10 }
  0xba   : > { %4714 = shalt.err (!%p4711_p12)
}
  0xbb   : > { %s6508_s2 = sld [smem:[#allocation45_spill]]  ;;  %p6513_p8 = scmp.eq.s32.totalorder %s5209_s7, 0 }
  0xbc   : > { %s6509_s3 = sld [smem:[#allocation32_spill]]  ;;  %p6514_p9 = scmp.eq.s32.totalorder %s4911_s19, 0 }
  0xbd   : > { %s6510_s24 = sld [smem:[#allocation31_spill]]  ;;  %s3408_s9 = sshll.u32 %s4903_s17, 7 }
  0xbe   : > { %s6511_s30 = sld [smem:[#allocation30_spill]] }
  0xbf   : > { %s6512_s25 = sld [smem:[#allocation38_spill]] }
  0xc0   : > { %s6517_s8 = sld [smem:[#allocation53_spill]] }
  0xc1   : > { %4291 = dma.hbm_to_vmem [thread:$0]  (!%p5250_p13), %s5242_s16, 2048, %s5244_s23, %s6508_s2, %s6483_s14, %s6483_s14, %s6482_s6  }
  0xc2   : > { %s195_s13 = sadd.s32 1, %s6509_s3  ;;  %s638_s28 = sand.u32 1, %s6509_s3  }
  0xc3   : > { %p202_p6 = scmp.ne.s32.totalorder %s6509_s3, %s6510_s24  ;;  %s3407_s0 = sshll.u32 %s638_s28, 4 }
  0xc4   : > { %s5330_s5 = scalar_select %p6513_p8, %s6509_s3, %s195_s13  }
  0xc5   : > { %p204_p2 = por %p202_p6, %p6514_p9  ;;  %p208_p1 = scmp.ne.s32.totalorder %s6510_s24, %s6511_s30 }
  0xc6   : > { %p6515_p11 = scmp.eq.s32.totalorder %s6512_s25, 0  ;;  %s645_s23 = scalar_lea.hbm %s6517_s8, %s3408_s9 }
  0xc7   : > { %s640_s16 = scalar_lea.vmem [#allocation14], %s3407_s0  ;;  %p6518_p13 = scmp.lt.s32.totalorder %s4911_s19, 6 }
  0xc8   : > { %p5340_p10 = por %p208_p1, %p6515_p11  ;;  %s646_s27 = sshll.u32 %s640_s16, 4  ;;  %s647_s27 = int_to_ptr.vmem [resolvable:$true] %s646_s27 }
  0xc9   : > { %p5349_p4 = pnand %p6518_p13, %p204_p2  ;;  %s4728_s20 = scalar_lea.vmem %s647_s27, 256 }
  0xca   : > { %p4729_p5 = scmp.ne.s32.totalorder %s647_s27, %s4728_s20  ;;  %s4923_s2 = smov [#allocation14]  }
  0xcb   : > { %p4717_p0 = pneg %p5349_p4  ;;  %s4733_s3 = sshll.u32 %s4923_s2, 4  ;;  %s4734_s3 = int_to_ptr.vmem [resolvable:$false] %s4733_s3 }
  0xcc   : > { %s4735_s24 = scalar_lea.vmem %s4734_s3, 512  ;;  %p4736_p8 = scmp.lt.s32.totalorder %s647_s27, %s4734_s3 }
  0xcd   : > { %p4731_p12 = pnand %p4729_p5, %p4717_p0  ;;  %p4737_p9 = scmp.lt.s32.totalorder %s4735_s24, %s4728_s20 }
  0xcf   : > { %p4732_p6 = pneg %p4731_p12  ;;  %p4738_p1 = por %p4737_p9, %p4736_p8 }
  0xd1   : > { %p4739_p11 = pnand %p4738_p1, %p4732_p6 }
  0xd3   : > { %4742 = shalt.err (!%p4739_p11)
}
  0xd4   : > { %s4924_s30 = smov 384   ;;  %658 = sbr.rel (%p5099_p3) target bundleno = 3975 (0xf87), region = 84 }
  0xd5   : > { %4297 = dma.hbm_to_vmem [thread:$0]  (!%p5349_p4), %s645_s23, 256, %s647_s27, %s5259_s15, %s4924_s30, %s6483_s14, %s6482_s6  }
  0xd6   : > { %s6521_s13 = sld [smem:[#allocation35_spill]] (!%p5099_p3) }
  0xdc   : > { %s5363_s9 = sand.u32 1, %s6521_s13  }
  0xdd   : > { %s5366_s0 = sshll.u32 %s5363_s9, 4  ;;  %s661_s11 = scalar_lea.sflag [#allocation7], %s5363_s9 }
  0xde   : > { %s5370_s1 = scalar_lea.vmem [#allocation6], %s5366_s0 }
  0xdf   : > { %4826 = dma.done.wait (%p5148_p7), %s661_s11, 256  }
  0xe0   : > { %4828 = vsyncadd (%p5148_p7), %s661_s11, 4294967040  ;;  %s6523_s6 = sld [smem:[#allocation38_spill]] }
  0xe6   : > { %s669_s14 = sand.u32 1, %s6523_s6  }
  0xe7   : > { %s670_s15 = scalar_lea.sflag [#allocation10], %s669_s14 }
  0xe8   : > { %4830 = dma.done.wait (%p5148_p7), %s670_s15, 256  }
  0xe9   : > { %4832 = vsyncadd (%p5148_p7), %s670_s15, 4294967040  ;;  %s6524_s23 = sld [smem:[#allocation33_spill]] }
  0xea   : > { %s6525_s16 = sld [smem:[#allocation47_spill]] }
  0xef   : > { %s680_s27 = sand.u32 1, %s6524_s23  }
  0xf0   : > { %s3412_s7 = sshll.u32 %s680_s27, 7  ;;  %p6526_p3 = scmp.ne.s32.totalorder %s6525_s16, 0 }
  0xf1   : > { %s5383_s20 = scalar_lea.vmem [#allocation11], %s3412_s7 }
  0xf2   : > { %4834 = dma.done.wait (%p6526_p3), %s670_s15, 2048  }
  0xf3   : > { %4836 = vsyncadd (%p6526_p3), %s670_s15, 4294965248  ;;  %s688_s2 = scalar_lea.sflag [#allocation13], %s669_s14  ;;  %s5389_s3 = scalar_lea.vmem [#allocation12], %s3412_s7 }
  0xf4   : > { %4838 = dma.done.wait (%p6526_p3), %s688_s2, 2048  }
  0xf5   : > { %4840 = vsyncadd (%p6526_p3), %s688_s2, 4294965248  ;;  %s6527_s24 = sld [smem:[#allocation31_spill]] }
  0xfb   : > { %s698_s30 = sand.u32 1, %s6527_s24  }
  0xfc   : > { %s5396_s25 = sshll.u32 %s698_s30, 4 }
  0xfd   : > { %4842 = dma.done.wait (%p5340_p10), %s688_s2, 256  }
  0xfe   : > { %4844 = vsyncadd (%p5340_p10), %s688_s2, 4294967040  ;;  %p6528_p7 = scmp.eq.s32.totalorder %s6523_s6, 0 }
 0x100   : > { %4846 = dma.done.wait (%p6528_p7), [#allocation16], 4096   ;;  %p6529_p2 = pmov %p6528_p7 }
 0x102   : > { %4848 = vsyncadd (%p6529_p2), [#allocation16], 4294963200  ;;  %p6530_p13 = pmov %p6529_p2 }
 0x103   : > { %p6531_p4 = pmov %p6529_p2 }
 0x104   : > { %4850 = dma.done.wait (%p6530_p13), [#allocation19], 4096  }
 0x105   : > { %4852 = vsyncadd (%p6531_p4), [#allocation19], 4294963200  ;;  %s6532_s28 = sld [smem:[#allocation37_spill]]  ;;  %s5432_s12 = scalar_lea.vmem [#allocation21], %s5366_s0 }
 0x106   : > { %s6533_s11 = sld [smem:[#allocation36_spill]] }
 0x107   : > { %s6534_s27 = sld [smem:[#allocation62_spill]] }
 0x108   : > { %s6535_s2 = sld [smem:[#allocation63_spill]] }
 0x109   : > { %s6536_s13 = sld [smem:[#allocation52_spill]] }
 0x10b   : > { %p794_p0 = scmp.lt.s32.totalorder %s6532_s28, 1 }
 0x10c   : > { %p796_p5 = scmp.lt.s32.totalorder %s6533_s11, 2  ;;  %p3420_p10 = scmp.ne.s32.totalorder %s6533_s11, 0 }
 0x10d   : > { %s6586_s28 = smov (!%p794_p0, %s6532_s28), 1  ;;  %v5420_v0 = vld [vmem:[%s6534_s27] ss:$0 sm:$0xff]  ;;  %s4928_s23 = smov (!%p3420_p10), 96  }
 0x10e   : > { %s797_s10 = scalar_select %p796_p5, %s6533_s11, 2  ;;  %v5425_v1 = vld [vmem:[%s6535_s2] ss:$0 sm:$0xff] }
 0x10f   : > { %s4240_s14 = smul.u32 3, %s6586_s28  ;;  %s6537_s28 = scalar_lea.vmem (!%p3420_p10), [#allocation9], %s5366_s0 }
 0x110   : > { %806 = sbr.rel (%p3420_p10) target bundleno = 629 (0x275), region = 124  ;;  %s4929_s16 = smov (!%p3420_p10), 32  }
 0x111   : > { %s5415_s15 = sadd.s32 %s4240_s14, %s797_s10  ;;  %s6539_s10 = sld [smem:[#allocation55_spill]] (!%p3420_p10) }
 0x112   : > { %s800_s8 = scalar_lea.vmem %s6536_s13, %s5415_s15  ;;  %s6538_s13 = smov (!%p3420_p10), %s6537_s28 }
 0x113   : > { %s4927_s14 = smov (!%p3420_p10), 64  }
 0x115   : > { %v828_v2 = vld [vmem:[#allocation15 + $0x78] sm:$0xff]  ;;  %v827_v3 = vld [vmem:[#allocation15 + $0x70] sm:$0xff]  ;;  %v826_v4 = vld [vmem:[#allocation15 + $0x68] sm:$0xff]  ;;  %vm911_vm0 = vcmask 261120   ;;  %vm943_vm1 = vcmask 7168   ;;  %v4925_v24 = vmov -inf  }
 0x116   : > { %3767 = vmatprep.subr.mxu0 %v828_v2  ;;  %v825_v5 = vld [vmem:[#allocation15 + $0x60] sm:$0xff]  ;;  %v824_v8 = vld [vmem:[#allocation15 + $0x58] sm:$0xff]  ;;  %v823_v10 = vld [vmem:[#allocation15 + $0x50] sm:$0xff]  ;;  %944 = vst.msk [vmem:[#allocation3] sm:$0xff] %vm943_vm1, %v4925_v24  ;;  %v4926_v25 = vmov 0.0  }
 0x117   : > { %3768 = vmatpush3.msra.mxu0 %v828_v2  ;;  %v807_v6 = vld [vmem:[%s5370_s1] sm:$0xff]  ;;  %v822_v11 = vld [vmem:[#allocation15 + $0x48] sm:$0xff]  ;;  %v820_v13 = vld [vmem:[#allocation15 + $0x38] sm:$0xff]  ;;  %945 = vst.msk [vmem:[#allocation3 + $0x8] sm:$0xff] %vm943_vm1, %v4925_v24 }
 0x118   : > { %3769 = vmatprep.subr.mxu0 %v827_v3  ;;  %v809_v7 = vld [vmem:[%s6537_s28] sm:$0xff]  ;;  %v818_v15 = vld [vmem:[#allocation15 + $0x28] sm:$0xff]  ;;  %v816_v17 = vld [vmem:[#allocation15 + $0x18] sm:$0xff]  ;;  %946 = vst.msk [vmem:[#allocation3 + $0x10] sm:$0xff] %vm943_vm1, %v4925_v24 }
 0x119   : > { %3770 = vmatpush3.msra.mxu0 %v827_v3  ;;  %v811_v9 = vadd.f32 %v809_v7, %v807_v6  ;;  %v821_v12 = vld [vmem:[#allocation15 + $0x40] sm:$0xff]  ;;  %v819_v14 = vld [vmem:[#allocation15 + $0x30] sm:$0xff]  ;;  %v814_v19 = vld [vmem:[#allocation15 + $0x8] sm:$0xff]  ;;  %947 = vst.msk [vmem:[#allocation3 + $0x18] sm:$0xff] %vm943_vm1, %v4925_v24 }
 0x11a   : > { %3771 = vmatprep.subr.mxu0 %v826_v4  ;;  %v817_v16 = vld [vmem:[#allocation15 + $0x20] sm:$0xff]  ;;  %v815_v18 = vld [vmem:[#allocation15 + $0x10] sm:$0xff]  ;;  %v808_v20 = vld [vmem:[%s5370_s1 + $0x8] sm:$0xff]  ;;  %948 = vst.msk [vmem:[#allocation3 + $0x20] sm:$0xff] %vm943_vm1, %v4925_v24 }
 0x11b   : > { %3772 = vmatpush3.msra.mxu0 %v826_v4  ;;  %3799 = vmatprep.mubr.f32.mxu0 %v811_v9  ;;  %v810_v21 = vld [vmem:[%s6538_s13 + $0x8] sm:$0xff]  ;;  %v813_v22 = vld [vmem:[#allocation15] sm:$0xff]  ;;  %949 = vst.msk [vmem:[#allocation3 + $0x28] sm:$0xff] %vm943_vm1, %v4925_v24  ;;  %950 = vst.msk [vmem:[#allocation3 + $0x30] sm:$0xff] %vm943_vm1, %v4925_v24 }
 0x11c   : > { %3773 = vmatprep.subr.mxu0 %v825_v5  ;;  %v812_v23 = vadd.f32 %v810_v21, %v808_v20  ;;  %951 = vst.msk [vmem:[#allocation3 + $0x38] sm:$0xff] %vm943_vm1, %v4925_v24  ;;  %952 = vst.msk [vmem:[#allocation4] sm:$0xff] %vm943_vm1, %v4926_v25  ;;  %v3421_v26 = vld [vmem:[%s6539_s10] ss:$0 sm:$0xff] }
 0x11d   : > { %3774 = vmatpush3.msra.mxu0 %v825_v5  ;;  %953 = vst.msk [vmem:[#allocation4 + $0x8] sm:$0xff] %vm943_vm1, %v4926_v25  ;;  %954 = vst.msk [vmem:[#allocation4 + $0x10] sm:$0xff] %vm943_vm1, %v4926_v25 }
 0x11e   : > { %3775 = vmatprep.subr.mxu0 %v824_v8  ;;  %955 = vst.msk [vmem:[#allocation4 + $0x18] sm:$0xff] %vm943_vm1, %v4926_v25  ;;  %956 = vst.msk [vmem:[#allocation4 + $0x20] sm:$0xff] %vm943_vm1, %v4926_v25 }
 0x11f   : > { %3776 = vmatpush3.msra.mxu0 %v824_v8  ;;  %957 = vst.msk [vmem:[#allocation4 + $0x28] sm:$0xff] %vm943_vm1, %v4926_v25  ;;  %958 = vst.msk [vmem:[#allocation4 + $0x30] sm:$0xff] %vm943_vm1, %v4926_v25 }
 0x120   : > { %3777 = vmatprep.subr.mxu0 %v823_v10  ;;  %959 = vst.msk [vmem:[#allocation4 + $0x38] sm:$0xff] %vm943_vm1, %v4926_v25 }
 0x121   : > { %3778 = vmatpush3.msra.mxu0 %v823_v10  ;;  %960 = vst.msk [vmem:[#allocation5] sm:$0xff] %vm911_vm0, %v4926_v25  ;;  %961 = vst.msk [vmem:[#allocation5 + $0x8] sm:$0xff] %vm911_vm0, %v4926_v25 }
 0x122   : > { %3779 = vmatprep.subr.mxu0 %v822_v11  ;;  %962 = vst.msk [vmem:[#allocation5 + $0x10] sm:$0xff] %vm911_vm0, %v4926_v25  ;;  %963 = vst.msk [vmem:[#allocation5 + $0x18] sm:$0xff] %vm911_vm0, %v4926_v25 }
 0x123   : > { %3780 = vmatpush3.msra.mxu0 %v822_v11  ;;  %964 = vst.msk [vmem:[#allocation5 + $0x20] sm:$0xff] %vm911_vm0, %v4926_v25  ;;  %965 = vst.msk [vmem:[#allocation5 + $0x28] sm:$0xff] %vm911_vm0, %v4926_v25 }
 0x124   : > { %3781 = vmatprep.subr.mxu0 %v821_v12  ;;  %966 = vst.msk [vmem:[#allocation5 + $0x30] sm:$0xff] %vm911_vm0, %v4926_v25  ;;  %967 = vst.msk [vmem:[#allocation5 + $0x38] sm:$0xff] %vm911_vm0, %v4926_v25 }
 0x125   : > { %3782 = vmatpush3.msra.mxu0 %v821_v12 }
 0x126   : > { %3783 = vmatprep.subr.mxu0 %v820_v13 }
 0x127   : > { %3784 = vmatpush3.msra.mxu0 %v820_v13 }
 0x128   : > { %3785 = vmatprep.subr.mxu0 %v819_v14 }
 0x129   : > { %3786 = vmatpush3.msra.mxu0 %v819_v14 }
 0x12a   : > { %3787 = vmatprep.subr.mxu0 %v818_v15 }
 0x12b   : > { %3788 = vmatpush3.msra.mxu0 %v818_v15 }
 0x12c   : > { %3789 = vmatprep.subr.mxu0 %v817_v16 }
 0x12d   : > { %3790 = vmatpush3.msra.mxu0 %v817_v16 }
 0x12e   : > { %3791 = vmatprep.subr.mxu0 %v816_v17 }
 0x12f   : > { %3792 = vmatpush3.msra.mxu0 %v816_v17 }
 0x130   : > { %3793 = vmatprep.subr.mxu0 %v815_v18 }
 0x131   : > { %3794 = vmatpush3.msra.mxu0 %v815_v18 }
 0x132   : > { %3795 = vmatprep.subr.mxu0 %v814_v19 }
 0x133   : > { %3796 = vmatpush3.msra.mxu0 %v814_v19 }
 0x134   : > { %3797 = vmatprep.subr.mxu0 %v813_v22 }
 0x135   : > { %3798 = vmatpush3.msra.mxu0 %v813_v22 }
 0x136   : > { %3800 = vmatmul.mubr.f32.vlgmr.msra.gmra.mxu0 %v812_v23 }
 0x1f6   : > { %v3801_v27 = vpop.f32.mrf.mxu0 }
 0x1f7   : > { %v908_v28 = vadd.f32 %v3801_v27, %v3421_v26 }
 0x1f8   : > { %v902_v29 = vpop.f32.mrf.mxu0 }
 0x1f9   : > { %913 = vst.msk [vmem:[#allocation2 + $0x8] sm:$0xff] %vm911_vm0, %v908_v28  ;;  %v903_v30 = vadd.f32 %v3421_v26, %v902_v29  ;;  %927 = vrot.lane.b32.xlu1 %v908_v28, %s4927_s14  ;;  %918 = vrot.lane.b32.xlu0 %v908_v28, %s4928_s23 }
 0x1fb   : > { %912 = vst.msk [vmem:[#allocation2] sm:$0xff] %vm911_vm0, %v903_v30 }
 0x1fd   : > { %925 = vrot.lane.b32.xlu1 %v903_v30, %s4927_s14  ;;  %916 = vrot.lane.b32.xlu0 %v903_v30, %s4928_s23 }
 0x201   : > { %936 = vrot.lane.b32.xlu1 %v908_v28, %s4929_s16  ;;  %934 = vrot.lane.b32.xlu0 %v903_v30, %s4929_s16 }
 0x26b   : > { %v928_v31 = vpop.permute.xlu1 %927  ;;  %v919_v32 = vpop.permute.xlu0 %918 }
 0x26c   : > { %933 = vst.msk [vmem:[#allocation2 + $0x28] sm:$0xff] %vm911_vm0, %v928_v31  ;;  %924 = vst.msk [vmem:[#allocation2 + $0x18] sm:$0xff] %vm911_vm0, %v919_v32 }
 0x26f   : > { %v926_v33 = vpop.permute.xlu1 %925  ;;  %v917_v34 = vpop.permute.xlu0 %916 }
 0x270   : > { %932 = vst.msk [vmem:[#allocation2 + $0x20] sm:$0xff] %vm911_vm0, %v926_v33  ;;  %923 = vst.msk [vmem:[#allocation2 + $0x10] sm:$0xff] %vm911_vm0, %v917_v34 }
 0x273   : > { %v937_v35 = vpop.permute.xlu1 %936  ;;  %v935_v36 = vpop.permute.xlu0 %934 }
 0x274   : > { %942 = vst.msk [vmem:[#allocation2 + $0x38] sm:$0xff] %vm911_vm0, %v937_v35  ;;  %941 = vst.msk [vmem:[#allocation2 + $0x30] sm:$0xff] %vm911_vm0, %v935_v36 }
 0x275 PF: > { %v1042_v37 = vld [vmem:[#allocation17 + $0x78] sm:$0xff]  ;;  %v1041_v38 = vld [vmem:[#allocation17 + $0x70] sm:$0xff]  ;;  %v1040_v39 = vld [vmem:[#allocation17 + $0x68] sm:$0xff]  ;;  %vm1365_vm2 = vcmask 261120   ;;  %s6540_s27 = sld [smem:[#allocation57_spill]]  ;;  %s6542_s24 = scalar_lea.vmem [#allocation14], %s5396_s25 }
 0x276   : > { %3802 = vmatprep.subr.mxu0 %v1042_v37  ;;  %v1039_v40 = vld [vmem:[#allocation17 + $0x60] sm:$0xff]  ;;  %v1038_v43 = vld [vmem:[#allocation17 + $0x58] sm:$0xff]  ;;  %v1037_v45 = vld [vmem:[#allocation17 + $0x50] sm:$0xff]  ;;  %s6541_s2 = sld [smem:[#allocation59_spill]]  ;;  %s6544_s0 = smov %s6542_s24  ;;  %vm1535_vm3 = vcmask 7168  }
 0x277   : > { %3803 = vmatpush3.msra.mxu0 %v1042_v37  ;;  %v979_v41 = vld [vmem:[%s5383_s20] sm:$0xff]  ;;  %v1036_v46 = vld [vmem:[#allocation17 + $0x48] sm:$0xff]  ;;  %v1034_v48 = vld [vmem:[#allocation17 + $0x38] sm:$0xff]  ;;  %s4931_s11 = smov 96   ;;  %s4933_s25 = smov 32  }
 0x278   : > { %3804 = vmatprep.subr.mxu0 %v1041_v38  ;;  %v995_v42 = vld [vmem:[%s5389_s3] sm:$0xff]  ;;  %3890 = vmatprep.mubr.f32.mxu1 %v979_v41  ;;  %v1033_v49 = vld [vmem:[#allocation17 + $0x30] sm:$0xff]  ;;  %v1032_v50 = vld [vmem:[#allocation17 + $0x28] sm:$0xff]  ;;  %s6550_s15 = sld [smem:[#allocation36_spill]] }
 0x279   : > { %3805 = vmatpush3.msra.mxu0 %v1041_v38  ;;  %v1011_v44 = vadd.f32 %v995_v42, %v979_v41  ;;  %v1035_v47 = vld [vmem:[#allocation17 + $0x40] sm:$0xff]  ;;  %v1030_v52 = vld [vmem:[#allocation17 + $0x18] sm:$0xff]  ;;  %v1029_v53 = vld [vmem:[#allocation17 + $0x10] sm:$0xff] }
 0x27a   : > { %3806 = vmatprep.subr.mxu0 %v1040_v39  ;;  %v1031_v51 = vld [vmem:[#allocation17 + $0x20] sm:$0xff]  ;;  %v1028_v54 = vld [vmem:[#allocation17 + $0x8] sm:$0xff]  ;;  %v5483_v57 = vld [vmem:[%s5383_s20 + $0x10] sm:$0xff] }
 0x27b   : > { %3807 = vmatpush3.msra.mxu0 %v1040_v39  ;;  %3834 = vmatprep.mubr.f32.mxu0 %v1011_v44  ;;  %v5479_v55 = vld [vmem:[%s5383_s20 + $0x8] sm:$0xff]  ;;  %v997_v58 = vld [vmem:[%s5389_s3 + $0x10] sm:$0xff]  ;;  %v1027_v59 = vld [vmem:[#allocation17] sm:$0xff] }
 0x27c   : > { %3808 = vmatprep.subr.mxu0 %v1039_v40  ;;  %v996_v56 = vld [vmem:[%s5389_s3 + $0x8] sm:$0xff]  ;;  %v1013_v61 = vadd.f32 %v997_v58, %v5483_v57  ;;  %v5489_v62 = vld [vmem:[%s5383_s20 + $0x18] sm:$0xff]  ;;  %v5493_v2 = vld [vmem:[%s5383_s20 + $0x20] sm:$0xff] }
 0x27d   : > { %3809 = vmatpush3.msra.mxu0 %v1039_v40  ;;  %v1012_v60 = vadd.f32 %v996_v56, %v5479_v55  ;;  %v998_v63 = vld [vmem:[%s5389_s3 + $0x18] sm:$0xff]  ;;  %v999_v3 = vld [vmem:[%s5389_s3 + $0x20] sm:$0xff]  ;;  %v5499_v6 = vld [vmem:[%s5383_s20 + $0x28] sm:$0xff] }
 0x27e   : > { %3810 = vmatprep.subr.mxu0 %v1038_v43  ;;  %v1014_v4 = vadd.f32 %v998_v63, %v5489_v62  ;;  %v1015_v5 = vadd.f32 %v999_v3, %v5493_v2  ;;  %v1000_v7 = vld [vmem:[%s5389_s3 + $0x28] sm:$0xff]  ;;  %v5503_v8 = vld [vmem:[%s5383_s20 + $0x30] sm:$0xff]  ;;  %v5509_v12 = vld [vmem:[%s5383_s20 + $0x38] sm:$0xff]  ;;  %p3497_p12 = scmp.ne.s32.totalorder %s6550_s15, 2 }
 0x27f   : > { %3811 = vmatpush3.msra.mxu0 %v1038_v43  ;;  %v1001_v9 = vld [vmem:[%s5389_s3 + $0x30] sm:$0xff]  ;;  %v1016_v10 = vadd.f32 %v1000_v7, %v5499_v6  ;;  %v1002_v13 = vld [vmem:[%s5389_s3 + $0x38] sm:$0xff]  ;;  %v5513_v14 = vld [vmem:[%s5383_s20 + $0x40] sm:$0xff]  ;;  %s6551_s23 = sld [smem:[#allocation61_spill]] (!%p3497_p12) }
 0x280   : > { %3812 = vmatprep.subr.mxu0 %v1037_v45  ;;  %v1017_v11 = vadd.f32 %v1001_v9, %v5503_v8  ;;  %v1003_v15 = vld [vmem:[%s5389_s3 + $0x40] sm:$0xff]  ;;  %v1018_v16 = vadd.f32 %v1002_v13, %v5509_v12  ;;  %v5519_v18 = vld [vmem:[%s5383_s20 + $0x48] sm:$0xff]  ;;  %v5523_v20 = vld [vmem:[%s5383_s20 + $0x50] sm:$0xff] }
 0x281   : > { %3813 = vmatpush3.msra.mxu0 %v1037_v45  ;;  %v1019_v17 = vadd.f32 %v1003_v15, %v5513_v14  ;;  %v1004_v19 = vld [vmem:[%s5389_s3 + $0x48] sm:$0xff]  ;;  %v1005_v21 = vld [vmem:[%s5389_s3 + $0x50] sm:$0xff]  ;;  %v5529_v24 = vld [vmem:[%s5383_s20 + $0x58] sm:$0xff] }
 0x282   : > { %3814 = vmatprep.subr.mxu0 %v1036_v46  ;;  %v1020_v22 = vadd.f32 %v1004_v19, %v5519_v18  ;;  %v1021_v23 = vadd.f32 %v1005_v21, %v5523_v20  ;;  %v1006_v25 = vld [vmem:[%s5389_s3 + $0x58] sm:$0xff]  ;;  %v5533_v26 = vld [vmem:[%s5383_s20 + $0x60] sm:$0xff]  ;;  %v5539_v30 = vld [vmem:[%s5383_s20 + $0x68] sm:$0xff] }
 0x283   : > { %3815 = vmatpush3.msra.mxu0 %v1036_v46  ;;  %v1007_v27 = vld [vmem:[%s5389_s3 + $0x60] sm:$0xff]  ;;  %v1022_v28 = vadd.f32 %v1006_v25, %v5529_v24  ;;  %v1008_v31 = vld [vmem:[%s5389_s3 + $0x68] sm:$0xff]  ;;  %v5543_v32 = vld [vmem:[%s5383_s20 + $0x70] sm:$0xff] }
 0x284   : > { %3816 = vmatprep.subr.mxu0 %v1035_v47  ;;  %v1023_v29 = vadd.f32 %v1007_v27, %v5533_v26  ;;  %v1009_v33 = vld [vmem:[%s5389_s3 + $0x70] sm:$0xff]  ;;  %v1024_v34 = vadd.f32 %v1008_v31, %v5539_v30  ;;  %v5549_v36 = vld [vmem:[%s5383_s20 + $0x78] sm:$0xff]  ;;  %v1363_v39 = vld [vmem:[#allocation2] sm:$0xff] }
 0x285   : > { %3817 = vmatpush3.msra.mxu0 %v1035_v47  ;;  %v1025_v35 = vadd.f32 %v1009_v33, %v5543_v32  ;;  %v1010_v37 = vld [vmem:[%s5389_s3 + $0x78] sm:$0xff]  ;;  %v1209_v41 = vld [vmem:[#allocation18 + $0x70] sm:$0xff]  ;;  %v1208_v42 = vld [vmem:[#allocation18 + $0x68] sm:$0xff] }
 0x286   : > { %3818 = vmatprep.subr.mxu0 %v1034_v48  ;;  %v1026_v38 = vadd.f32 %v1010_v37, %v5549_v36  ;;  %v1210_v40 = vld [vmem:[#allocation18 + $0x78] sm:$0xff]  ;;  %v1207_v43 = vld [vmem:[#allocation18 + $0x60] sm:$0xff]  ;;  %v1205_v45 = vld [vmem:[#allocation18 + $0x50] sm:$0xff] }
 0x287   : > { %3819 = vmatpush3.msra.mxu0 %v1034_v48  ;;  %3858 = vmatprep.subr.mxu1 %v1210_v40  ;;  %v1206_v44 = vld [vmem:[#allocation18 + $0x58] sm:$0xff]  ;;  %v1204_v46 = vld [vmem:[#allocation18 + $0x48] sm:$0xff]  ;;  %v1203_v47 = vld [vmem:[#allocation18 + $0x40] sm:$0xff] }
 0x288   : > { %3820 = vmatprep.subr.mxu0 %v1033_v49  ;;  %3859 = vmatpush3.msra.mxu1 %v1210_v40  ;;  %v1202_v48 = vld [vmem:[#allocation18 + $0x38] sm:$0xff]  ;;  %v1195_v56 = vld [vmem:[#allocation18] sm:$0xff]  ;;  %v1364_v27 = vld [vmem:[#allocation2 + $0x8] sm:$0xff] }
 0x289   : > { %3821 = vmatpush3.msra.mxu0 %v1033_v49  ;;  %3860 = vmatprep.subr.mxu1 %v1209_v41  ;;  %v1201_v49 = vld [vmem:[#allocation18 + $0x30] sm:$0xff] }
 0x28a   : > { %3822 = vmatprep.subr.mxu0 %v1032_v50  ;;  %3861 = vmatpush3.msra.mxu1 %v1209_v41  ;;  %v3424_v41 = vld [vmem:[%s6541_s2] ss:$0 sm:$0xff] }
 0x28b   : > { %3823 = vmatpush3.msra.mxu0 %v1032_v50  ;;  %3862 = vmatprep.subr.mxu1 %v1208_v42  ;;  %v1200_v50 = vld [vmem:[#allocation18 + $0x28] sm:$0xff] }
 0x28c   : > { %3824 = vmatprep.subr.mxu0 %v1031_v51  ;;  %3863 = vmatpush3.msra.mxu1 %v1208_v42 }
 0x28d   : > { %3825 = vmatpush3.msra.mxu0 %v1031_v51  ;;  %3864 = vmatprep.subr.mxu1 %v1207_v43  ;;  %v1199_v51 = vld [vmem:[#allocation18 + $0x20] sm:$0xff] }
 0x28e   : > { %3826 = vmatprep.subr.mxu0 %v1030_v52  ;;  %3865 = vmatpush3.msra.mxu1 %v1207_v43 }
 0x28f   : > { %3827 = vmatpush3.msra.mxu0 %v1030_v52  ;;  %3866 = vmatprep.subr.mxu1 %v1206_v44  ;;  %v1198_v52 = vld [vmem:[#allocation18 + $0x18] sm:$0xff] }
 0x290   : > { %3828 = vmatprep.subr.mxu0 %v1029_v53  ;;  %3867 = vmatpush3.msra.mxu1 %v1206_v44 }
 0x291   : > { %3829 = vmatpush3.msra.mxu0 %v1029_v53  ;;  %3868 = vmatprep.subr.mxu1 %v1205_v45  ;;  %v1197_v53 = vld [vmem:[#allocation18 + $0x10] sm:$0xff] }
 0x292   : > { %3830 = vmatprep.subr.mxu0 %v1028_v54  ;;  %3869 = vmatpush3.msra.mxu1 %v1205_v45 }
 0x293   : > { %3831 = vmatpush3.msra.mxu0 %v1028_v54  ;;  %3870 = vmatprep.subr.mxu1 %v1204_v46  ;;  %v1196_v54 = vld [vmem:[#allocation18 + $0x8] sm:$0xff] }
 0x294   : > { %3832 = vmatprep.subr.mxu0 %v1027_v59  ;;  %3871 = vmatpush3.msra.mxu1 %v1204_v46 }
 0x295   : > { %3833 = vmatpush3.msra.mxu0 %v1027_v59  ;;  %3872 = vmatprep.subr.mxu1 %v1203_v47 }
 0x296   : > { %3835 = vmatmul.mubr.f32.vlgmr.msra.gmra.mxu0 %v1012_v60  ;;  %3873 = vmatpush3.msra.mxu1 %v1203_v47 }
 0x297   : > { %3837 = vmatprep.mubr.f32.mxu0 %v1013_v61  ;;  %3874 = vmatprep.subr.mxu1 %v1202_v48 }
 0x298   : > { %3875 = vmatpush3.msra.mxu1 %v1202_v48 }
 0x299   : > { %3876 = vmatprep.subr.mxu1 %v1201_v49 }
 0x29a   : > { %3838 = vmatmul.mubr.f32.gmra.mxu0 %v1014_v4  ;;  %3877 = vmatpush3.msra.mxu1 %v1201_v49 }
 0x29b   : > { %3840 = vmatprep.mubr.f32.mxu0 %v1015_v5  ;;  %3878 = vmatprep.subr.mxu1 %v1200_v50 }
 0x29c   : > { %3879 = vmatpush3.msra.mxu1 %v1200_v50 }
 0x29d   : > { %3880 = vmatprep.subr.mxu1 %v1199_v51 }
 0x29e   : > { %3841 = vmatmul.mubr.f32.gmra.mxu0 %v1016_v10  ;;  %3881 = vmatpush3.msra.mxu1 %v1199_v51 }
 0x29f   : > { %3843 = vmatprep.mubr.f32.mxu0 %v1017_v11  ;;  %3882 = vmatprep.subr.mxu1 %v1198_v52 }
 0x2a0   : > { %3883 = vmatpush3.msra.mxu1 %v1198_v52 }
 0x2a1   : > { %3884 = vmatprep.subr.mxu1 %v1197_v53 }
 0x2a2   : > { %3844 = vmatmul.mubr.f32.gmra.mxu0 %v1018_v16  ;;  %3885 = vmatpush3.msra.mxu1 %v1197_v53 }
 0x2a3   : > { %3846 = vmatprep.mubr.f32.mxu0 %v1019_v17  ;;  %3886 = vmatprep.subr.mxu1 %v1196_v54 }
 0x2a4   : > { %3887 = vmatpush3.msra.mxu1 %v1196_v54 }
 0x2a5   : > { %3888 = vmatprep.subr.mxu1 %v1195_v56 }
 0x2a6   : > { %3847 = vmatmul.mubr.f32.gmra.mxu0 %v1020_v22  ;;  %3889 = vmatpush3.msra.mxu1 %v1195_v56 }
 0x2a7   : > { %3849 = vmatprep.mubr.f32.mxu0 %v1021_v23  ;;  %3891 = vmatmul.mubr.f32.vlgmr.msra.gmra.mxu1 %v5479_v55 }
 0x2a8   : > { %3893 = vmatprep.mubr.f32.mxu1 %v5483_v57 }
 0x2aa   : > { %3850 = vmatmul.mubr.f32.gmra.mxu0 %v1022_v28 }
 0x2ab   : > { %3852 = vmatprep.mubr.f32.mxu0 %v1023_v29  ;;  %3894 = vmatmul.mubr.f32.gmra.mxu1 %v5489_v62 }
 0x2ac   : > { %3896 = vmatprep.mubr.f32.mxu1 %v5493_v2 }
 0x2ae   : > { %3853 = vmatmul.mubr.f32.gmra.mxu0 %v1024_v34 }
 0x2af   : > { %3855 = vmatprep.mubr.f32.mxu0 %v1025_v35  ;;  %3897 = vmatmul.mubr.f32.gmra.mxu1 %v5499_v6 }
 0x2b0   : > { %3899 = vmatprep.mubr.f32.mxu1 %v5503_v8  ;;  %v3423_v8 = vld [vmem:[%s6540_s27] ss:$0 sm:$0xff] }
 0x2b2   : > { %3856 = vmatmul.mubr.f32.gmra.mxu0 %v1026_v38 }
 0x2b3   : > { %3946 = vmatprep.mubr.msk.f32.mxu0 %vm1365_vm2, %v1363_v39  ;;  %3900 = vmatmul.mubr.f32.gmra.mxu1 %v5509_v12 }
 0x2b4   : > { %3902 = vmatprep.mubr.f32.mxu1 %v5513_v14 }
 0x2b7   : > { %3903 = vmatmul.mubr.f32.gmra.mxu1 %v5519_v18 }
 0x2b8   : > { %3905 = vmatprep.mubr.f32.mxu1 %v5523_v20 }
 0x2bb   : > { %3906 = vmatmul.mubr.f32.gmra.mxu1 %v5529_v24 }
 0x2bc   : > { %3908 = vmatprep.mubr.f32.mxu1 %v5533_v26 }
 0x2bf   : > { %3909 = vmatmul.mubr.f32.gmra.mxu1 %v5539_v30 }
 0x2c0   : > { %3911 = vmatprep.mubr.f32.mxu1 %v5543_v32 }
 0x2c3   : > { %3912 = vmatmul.mubr.f32.gmra.mxu1 %v5549_v36 }
 0x356   : > { %v5554_v58 = vpop.f32.mrf.mxu0 }
 0x357   : > { %v5665_v25 = vadd.f32 %v5554_v58, %v3423_v8 }
 0x358   : > { %v5558_v59 = vpop.f32.mrf.mxu0 }
 0x359   : > { %v5672_v26 = vadd.f32 %v3423_v8, %v5558_v59 }
 0x35a   : > { %v5560_v60 = vpop.f32.mrf.mxu0 }
 0x35b   : > { %v5651_v23 = vadd.f32 %v5560_v60, %v3423_v8 }
 0x35c   : > { %v5564_v61 = vpop.f32.mrf.mxu0 }
 0x35d   : > { %v5658_v24 = vadd.f32 %v3423_v8, %v5564_v61 }
 0x35e   : > { %v3842_v63 = vpop.f32.mrf.mxu0 }
 0x35f   : > { %v5638_v21 = vadd.f32 %v3842_v63, %v3423_v8 }
 0x360   : > { %v1136_v3 = vpop.f32.mrf.mxu0 }
 0x361   : > { %v5644_v22 = vadd.f32 %v3423_v8, %v1136_v3  ;;  %v969_v3 = vld [vmem:[%s6542_s24] sm:$0xff] }
 0x362   : > { %v3845_v4 = vpop.f32.mrf.mxu0 }
 0x363   : > { %v5626_v19 = vadd.f32 %v3845_v4, %v3423_v8  ;;  %v3422_v4 = vld [vmem:[%s800_s8] ss:$0 sm:$0xff]  ;;  %s4932_s8 = smov 64  }
 0x364   : > { %v1146_v55 = vpop.f32.mrf.mxu0 }
 0x365   : > { %v5632_v20 = vadd.f32 %v3423_v8, %v1146_v55  ;;  %v5755_v55 = vadd.f32 %v3422_v4, %v969_v3 }
 0x366   : > { %v3848_v57 = vpop.f32.mrf.mxu0 }
 0x367   : > { %v5614_v17 = vadd.f32 %v3848_v57, %v3423_v8  ;;  %v3892_v28 = vpop.f32.mrf.mxu1  ;;  %v970_v57 = vld [vmem:[%s6544_s0 + $0x8] sm:$0xff] }
 0x368   : > { %v1156_v62 = vpop.f32.mrf.mxu0  ;;  %v5736_v61 = vadd.f32 %v3892_v28, %v3424_v41  ;;  %v5780_v28 = vld [vmem:[#allocation3 + $0x8] sm:$0xff] }
 0x369   : > { %v5620_v18 = vadd.f32 %v3423_v8, %v1156_v62  ;;  %v1284_v29 = vpop.f32.mrf.mxu1 }
 0x36a   : > { %v3851_v2 = vpop.f32.mrf.mxu0  ;;  %v5740_v63 = vadd.f32 %v3424_v41, %v1284_v29 }
 0x36b   : > { %v5602_v15 = vadd.f32 %v3851_v2, %v3423_v8  ;;  %v3895_v30 = vpop.f32.mrf.mxu1 }
 0x36c   : > { %v1166_v5 = vpop.f32.mrf.mxu0  ;;  %v5728_v59 = vadd.f32 %v3895_v30, %v3424_v41 }
 0x36d   : > { %v5608_v16 = vadd.f32 %v3423_v8, %v1166_v5  ;;  %v1294_v31 = vpop.f32.mrf.mxu1  ;;  %v5759_v5 = vadd.f32 %v3422_v4, %v970_v57 }
 0x36e   : > { %v3854_v6 = vpop.f32.mrf.mxu0  ;;  %v5732_v60 = vadd.f32 %v3424_v41, %v1294_v31 }
 0x36f   : > { %v5590_v13 = vadd.f32 %v3854_v6, %v3423_v8  ;;  %v3898_v32 = vpop.f32.mrf.mxu1 }
 0x370   : > { %v1176_v7 = vpop.f32.mrf.mxu0  ;;  %v5720_v56 = vadd.f32 %v3898_v32, %v3424_v41 }
 0x371   : > { %v5596_v14 = vadd.f32 %v3423_v8, %v1176_v7  ;;  %v1304_v33 = vpop.f32.mrf.mxu1 }
 0x372   : > { %v3857_v9 = vpop.f32.mrf.mxu0  ;;  %v5724_v58 = vadd.f32 %v3424_v41, %v1304_v33 }
 0x373   : > { %v5580_v10 = vadd.f32 %v3857_v9, %v3423_v8  ;;  %v3901_v34 = vpop.f32.mrf.mxu1  ;;  %v5775_v9 = vld [vmem:[#allocation3] sm:$0xff] }
 0x374   : > { %v1186_v11 = vpop.f32.mrf.mxu0  ;;  %v5712_v53 = vadd.f32 %v3901_v34, %v3424_v41 }
 0x375   : > { %v5582_v12 = vadd.f32 %v3423_v8, %v1186_v11  ;;  %3914 = vmatprep.subr.msk.mxu0 %vm1365_vm2, %v5580_v10  ;;  %v1314_v35 = vpop.f32.mrf.mxu1  ;;  %v4930_v8 = vmov 0  }
 0x376   : > { %3915 = vmatpush3.xpose.msk.msra.mxu0 %vm1365_vm2, %v5580_v10  ;;  %v5716_v54 = vadd.f32 %v3424_v41, %v1314_v35  ;;  %4443 = vset.pattern.permute.xlu1 %v4930_v8 }
 0x377   : > { %3916 = vmatprep.subr.msk.mxu0 %vm1365_vm2, %v5582_v12  ;;  %v3904_v36 = vpop.f32.mrf.mxu1  ;;  %4444 = vset.pattern.permute.xlu0 %v4930_v8 }
 0x378   : > { %v5704_v51 = vadd.f32 %v3904_v36, %v3424_v41 }
 0x379   : > { %v1324_v37 = vpop.f32.mrf.mxu1 }
 0x37a   : > { %3917 = vmatpush3.xpose.msk.msra.mxu0 %vm1365_vm2, %v5582_v12  ;;  %v5708_v52 = vadd.f32 %v3424_v41, %v1324_v37 }
 0x37b   : > { %3918 = vmatprep.subr.msk.mxu0 %vm1365_vm2, %v5590_v13  ;;  %v3907_v38 = vpop.f32.mrf.mxu1 }
 0x37c   : > { %v5696_v49 = vadd.f32 %v3907_v38, %v3424_v41 }
 0x37d   : > { %v1334_v39 = vpop.f32.mrf.mxu1 }
 0x37e   : > { %3919 = vmatpush3.xpose.msk.msra.mxu0 %vm1365_vm2, %v5590_v13  ;;  %v5700_v50 = vadd.f32 %v3424_v41, %v1334_v39 }
 0x37f   : > { %3920 = vmatprep.subr.msk.mxu0 %vm1365_vm2, %v5596_v14  ;;  %v3910_v40 = vpop.f32.mrf.mxu1 }
 0x380   : > { %v5686_v46 = vadd.f32 %v3910_v40, %v3424_v41 }
 0x381   : > { %v1344_v42 = vpop.f32.mrf.mxu1 }
 0x382   : > { %3921 = vmatpush3.xpose.msk.msra.mxu0 %vm1365_vm2, %v5596_v14  ;;  %v5692_v48 = vadd.f32 %v3424_v41, %v1344_v42 }
 0x383   : > { %3922 = vmatprep.subr.msk.mxu0 %vm1365_vm2, %v5602_v15  ;;  %v3913_v43 = vpop.f32.mrf.mxu1 }
 0x384   : > { %v5684_v44 = vadd.f32 %v3913_v43, %v3424_v41  ;;  %v1634_v43 = vld [vmem:[#allocation2 + $0x10] sm:$0xff] }
 0x385   : > { %v1354_v45 = vpop.f32.mrf.mxu1 }
 0x386   : > { %3923 = vmatpush3.xpose.msk.msra.mxu0 %vm1365_vm2, %v5602_v15  ;;  %v5688_v47 = vadd.f32 %v3424_v41, %v1354_v45  ;;  %3949 = vmatprep.subr.mxu1 %v5684_v44 }
 0x387   : > { %3924 = vmatprep.subr.msk.mxu0 %vm1365_vm2, %v5608_v16  ;;  %3950 = vmatpush3.msra.mxu1 %v5684_v44 }
 0x388   : > { %3951 = vmatprep.subr.mxu1 %v5688_v47 }
 0x389   : > { %3952 = vmatpush3.msra.mxu1 %v5688_v47 }
 0x38a   : > { %3925 = vmatpush3.xpose.msk.msra.mxu0 %vm1365_vm2, %v5608_v16  ;;  %3953 = vmatprep.subr.mxu1 %v5686_v46 }
 0x38b   : > { %3926 = vmatprep.subr.msk.mxu0 %vm1365_vm2, %v5614_v17  ;;  %3954 = vmatpush3.msra.mxu1 %v5686_v46 }
 0x38c   : > { %3955 = vmatprep.subr.mxu1 %v5692_v48 }
 0x38d   : > { %3956 = vmatpush3.msra.mxu1 %v5692_v48 }
 0x38e   : > { %3927 = vmatpush3.xpose.msk.msra.mxu0 %vm1365_vm2, %v5614_v17  ;;  %3957 = vmatprep.subr.mxu1 %v5696_v49 }
 0x38f   : > { %3928 = vmatprep.subr.msk.mxu0 %vm1365_vm2, %v5620_v18  ;;  %3958 = vmatpush3.msra.mxu1 %v5696_v49 }
 0x390   : > { %3959 = vmatprep.subr.mxu1 %v5700_v50 }
 0x391   : > { %3960 = vmatpush3.msra.mxu1 %v5700_v50 }
 0x392   : > { %3929 = vmatpush3.xpose.msk.msra.mxu0 %vm1365_vm2, %v5620_v18  ;;  %3961 = vmatprep.subr.mxu1 %v5704_v51 }
 0x393   : > { %3930 = vmatprep.subr.msk.mxu0 %vm1365_vm2, %v5626_v19  ;;  %3962 = vmatpush3.msra.mxu1 %v5704_v51 }
 0x394   : > { %3963 = vmatprep.subr.mxu1 %v5708_v52 }
 0x395   : > { %3964 = vmatpush3.msra.mxu1 %v5708_v52 }
 0x396   : > { %3931 = vmatpush3.xpose.msk.msra.mxu0 %vm1365_vm2, %v5626_v19  ;;  %3965 = vmatprep.subr.mxu1 %v5712_v53 }
 0x397   : > { %3932 = vmatprep.subr.msk.mxu0 %vm1365_vm2, %v5632_v20  ;;  %3966 = vmatpush3.msra.mxu1 %v5712_v53 }
 0x398   : > { %3967 = vmatprep.subr.mxu1 %v5716_v54 }
 0x399   : > { %3968 = vmatpush3.msra.mxu1 %v5716_v54 }
 0x39a   : > { %3933 = vmatpush3.xpose.msk.msra.mxu0 %vm1365_vm2, %v5632_v20  ;;  %3969 = vmatprep.subr.mxu1 %v5720_v56 }
 0x39b   : > { %3934 = vmatprep.subr.msk.mxu0 %vm1365_vm2, %v5638_v21  ;;  %3970 = vmatpush3.msra.mxu1 %v5720_v56 }
 0x39c   : > { %3971 = vmatprep.subr.mxu1 %v5724_v58 }
 0x39d   : > { %3972 = vmatpush3.msra.mxu1 %v5724_v58 }
 0x39e   : > { %3935 = vmatpush3.xpose.msk.msra.mxu0 %vm1365_vm2, %v5638_v21  ;;  %3973 = vmatprep.subr.mxu1 %v5728_v59 }
 0x39f   : > { %3936 = vmatprep.subr.msk.mxu0 %vm1365_vm2, %v5644_v22  ;;  %3974 = vmatpush3.msra.mxu1 %v5728_v59 }
 0x3a0   : > { %3975 = vmatprep.subr.mxu1 %v5732_v60 }
 0x3a1   : > { %3976 = vmatpush3.msra.mxu1 %v5732_v60 }
 0x3a2   : > { %3937 = vmatpush3.xpose.msk.msra.mxu0 %vm1365_vm2, %v5644_v22  ;;  %3977 = vmatprep.subr.mxu1 %v5736_v61 }
 0x3a3   : > { %3938 = vmatprep.subr.msk.mxu0 %vm1365_vm2, %v5651_v23  ;;  %3978 = vmatpush3.msra.mxu1 %v5736_v61 }
 0x3a4   : > { %3979 = vmatprep.subr.mxu1 %v5740_v63 }
 0x3a5   : > { %3980 = vmatpush3.msra.mxu1 %v5740_v63 }
 0x3a6   : > { %3939 = vmatpush3.xpose.msk.msra.mxu0 %vm1365_vm2, %v5651_v23 }
 0x3a7   : > { %3940 = vmatprep.subr.msk.mxu0 %vm1365_vm2, %v5658_v24 }
 0x3aa   : > { %3941 = vmatpush3.xpose.msk.msra.mxu0 %vm1365_vm2, %v5658_v24 }
 0x3ab   : > { %3942 = vmatprep.subr.msk.mxu0 %vm1365_vm2, %v5665_v25 }
 0x3ae   : > { %3943 = vmatpush3.xpose.msk.msra.mxu0 %vm1365_vm2, %v5665_v25 }
 0x3af   : > { %3944 = vmatprep.subr.msk.mxu0 %vm1365_vm2, %v5672_v26 }
 0x3b2   : > { %3945 = vmatpush3.xpose.msk.msra.mxu0 %vm1365_vm2, %v5672_v26 }
 0x3b5   : > { %3947 = vmatmul.mubr.msk.f32.vlgmr.msra.gmra.mxu0 %vm1365_vm2, %v1364_v27 }
 0x475   : > { %v3948_v62 = vpop.f32.mrf.mxu0 }
 0x476   : > { %v1492_v7 = vadd.f32 %v3948_v62, %v5759_v5 }
 0x477   : > { %v1486_v2 = vpop.f32.mrf.mxu0 }
 0x478   : > { %v1487_v6 = vadd.f32 %v1486_v2, %v5755_v55 }
 0x47a   : > { %1497 = vmax.xlane.f32.xlu0 %v1487_v6 }
 0x47e   : > { %1499 = vmax.xlane.f32.xlu0 %v1492_v7 }
 0x494   : > { %1666 = vrot.lane.b32.xlu0 %v5580_v10, %s4931_s11 }
 0x498   : > { %1652 = vrot.lane.b32.xlu0 %v5620_v18, %s4931_s11 }
 0x49c   : > { %1648 = vrot.lane.b32.xlu0 %v5632_v20, %s4931_s11 }
 0x4a0   : > { %1644 = vrot.lane.b32.xlu0 %v5644_v22, %s4931_s11 }
 0x4a4   : > { %1640 = vrot.lane.b32.xlu0 %v5658_v24, %s4931_s11 }
 0x4a8   : > { %1636 = vrot.lane.b32.xlu0 %v5672_v26, %s4931_s11 }
 0x503   : > { %v1498_v11 = vpop.xlane.xlu0 %1497 }
 0x504   : > { %v5778_v27 = vmax.f32 %v5775_v9, %v1498_v11 }
 0x506   : > { %1631 = vst.msk [vmem:[#allocation3] sm:$0xff] %vm1535_vm3, %v5778_v27  ;;  %1511 = vperm.xlu1 %4443, %v5778_v27  }
 0x507   : > { %v1500_v30 = vpop.xlane.xlu0 %1499 }
 0x508   : > { %v5788_v31 = vmax.f32 %v5780_v28, %v1500_v30 }
 0x50a   : > { %v1504_v32 = vsub.f32 %v5780_v28, %v5788_v31  ;;  %1632 = vst.msk [vmem:[#allocation3 + $0x8] sm:$0xff] %vm1535_vm3, %v5788_v31  ;;  %1516 = vperm.xlu1 %4443, %v5788_v31  }
 0x50b   : > { %v1667_v33 = vpop.permute.xlu0 %1666 }
 0x50c   : > { %3984 = vmatprep.subr.msk.mxu1 %vm1365_vm2, %v1667_v33 }
 0x50e   : > { %1664 = vrot.lane.b32.xlu1 %v5582_v12, %s4931_s11 }
 0x50f   : > { %v1653_v2 = vpop.permute.xlu0 %1652 }
 0x512   : > { %1662 = vrot.lane.b32.xlu1 %v5590_v13, %s4931_s11 }
 0x516   : > { %1660 = vrot.lane.b32.xlu1 %v5596_v14, %s4931_s11 }
 0x51a   : > { %1658 = vrot.lane.b32.xlu1 %v5602_v15, %s4931_s11 }
 0x51e   : > { %1656 = vrot.lane.b32.xlu1 %v5608_v16, %s4931_s11 }
 0x522   : > { %1654 = vrot.lane.b32.xlu1 %v5614_v17, %s4931_s11 }
 0x526   : > { %1650 = vrot.lane.b32.xlu1 %v5626_v19, %s4931_s11 }
 0x52a   : > { %1646 = vrot.lane.b32.xlu1 %v5638_v21, %s4931_s11 }
 0x52e   : > { %1642 = vrot.lane.b32.xlu1 %v5651_v23, %s4931_s11 }
 0x532   : > { %1638 = vrot.lane.b32.xlu1 %v5665_v25, %s4931_s11 }
 0x581   : > { %v1512_v34 = vpop.permute.xlu1 %1511 }
 0x582   : > { %v1519_v35 = vsub.f32 %v1487_v6, %v1512_v34 }
 0x584   : > { %v1521_v36 = vmul.f32 1.442695, %v1519_v35 }
 0x585   : > { %v1517_v37 = vpop.permute.xlu1 %1516 }
 0x586   : > { %4445 = vpow2.f32 %v1521_v36  ;;  %v1520_v38 = vsub.f32 %v1492_v7, %v1517_v37  ;;  %v1649_v7 = vpop.permute.xlu0 %1648  ;;  %v1635_v36 = vld [vmem:[#allocation2 + $0x18] sm:$0xff] }
 0x588   : > { %v1523_v39 = vmul.f32 1.442695, %v1520_v38 }
 0x589   : > { %v1665_v40 = vpop.permute.xlu1 %1664 }
 0x58a   : > { %4447 = vpow2.f32 %v1523_v39  ;;  %v1645_v11 = vpop.permute.xlu0 %1644 }
 0x58d   : > { %v1663_v42 = vpop.permute.xlu1 %1662 }
 0x591   : > { %v1661_v3 = vpop.permute.xlu1 %1660 }
 0x593   : > { %v5816_v41 = vpop.eup %4445 }
 0x594   : > { %3981 = vmatprep.mubr.f32.mxu1 %v5816_v41 }
 0x595   : > { %v1659_v4 = vpop.permute.xlu1 %1658 }
 0x597   : > { %v5819_v45 = vpop.eup %4447 }
 0x598   : > { %3982 = vmatmul.mubr.f32.vlgmr.msra.gmra.mxu1 %v5819_v45 }
 0x599   : > { %3985 = vmatpush3.xpose.msk.msra.mxu1 %vm1365_vm2, %v1667_v33  ;;  %4016 = vmatprep.mubr.msk.f32.mxu1 %vm1365_vm2, %v1634_v43  ;;  %v1657_v57 = vpop.permute.xlu1 %1656  ;;  %v1641_v33 = vpop.permute.xlu0 %1640 }
 0x59a   : > { %3986 = vmatprep.subr.msk.mxu1 %vm1365_vm2, %v1665_v40 }
 0x59d   : > { %3987 = vmatpush3.xpose.msk.msra.mxu1 %vm1365_vm2, %v1665_v40  ;;  %v1655_v62 = vpop.permute.xlu1 %1654  ;;  %v1637_v35 = vpop.permute.xlu0 %1636 }
 0x59e   : > { %3988 = vmatprep.subr.msk.mxu1 %vm1365_vm2, %v1663_v42 }
 0x5a1   : > { %3989 = vmatpush3.xpose.msk.msra.mxu1 %vm1365_vm2, %v1663_v42  ;;  %v1651_v6 = vpop.permute.xlu1 %1650 }
 0x5a2   : > { %3990 = vmatprep.subr.msk.mxu1 %vm1365_vm2, %v1661_v3 }
 0x5a5   : > { %3991 = vmatpush3.xpose.msk.msra.mxu1 %vm1365_vm2, %v1661_v3  ;;  %v1647_v8 = vpop.permute.xlu1 %1646  ;;  %v5879_v3 = vld [vmem:[#allocation3 + $0x18] sm:$0xff] }
 0x5a6   : > { %3992 = vmatprep.subr.msk.mxu1 %vm1365_vm2, %v1659_v4 }
 0x5a9   : > { %3993 = vmatpush3.xpose.msk.msra.mxu1 %vm1365_vm2, %v1659_v4  ;;  %v1643_v30 = vpop.permute.xlu1 %1642 }
 0x5aa   : > { %3994 = vmatprep.subr.msk.mxu1 %vm1365_vm2, %v1657_v57 }
 0x5ad   : > { %3995 = vmatpush3.xpose.msk.msra.mxu1 %vm1365_vm2, %v1657_v57  ;;  %v1639_v34 = vpop.permute.xlu1 %1638  ;;  %v5881_v57 = vld [vmem:[#allocation3 + $0x10] sm:$0xff] }
 0x5ae   : > { %3996 = vmatprep.subr.msk.mxu1 %vm1365_vm2, %v1655_v62 }
 0x5b1   : > { %3997 = vmatpush3.xpose.msk.msra.mxu1 %vm1365_vm2, %v1655_v62 }
 0x5b2   : > { %3998 = vmatprep.subr.msk.mxu1 %vm1365_vm2, %v1653_v2 }
 0x5b5   : > { %3999 = vmatpush3.xpose.msk.msra.mxu1 %vm1365_vm2, %v1653_v2 }
 0x5b6   : > { %4000 = vmatprep.subr.msk.mxu1 %vm1365_vm2, %v1651_v6 }
 0x5b9   : > { %4001 = vmatpush3.xpose.msk.msra.mxu1 %vm1365_vm2, %v1651_v6 }
 0x5ba   : > { %4002 = vmatprep.subr.msk.mxu1 %vm1365_vm2, %v1649_v7 }
 0x5bd   : > { %4003 = vmatpush3.xpose.msk.msra.mxu1 %vm1365_vm2, %v1649_v7 }
 0x5be   : > { %4004 = vmatprep.subr.msk.mxu1 %vm1365_vm2, %v1647_v8 }
 0x5c1   : > { %4005 = vmatpush3.xpose.msk.msra.mxu1 %vm1365_vm2, %v1647_v8 }
 0x5c2   : > { %4006 = vmatprep.subr.msk.mxu1 %vm1365_vm2, %v1645_v11 }
 0x5c5   : > { %4007 = vmatpush3.xpose.msk.msra.mxu1 %vm1365_vm2, %v1645_v11 }
 0x5c6   : > { %4008 = vmatprep.subr.msk.mxu1 %vm1365_vm2, %v1643_v30 }
 0x5c9   : > { %4009 = vmatpush3.xpose.msk.msra.mxu1 %vm1365_vm2, %v1643_v30 }
 0x5ca   : > { %4010 = vmatprep.subr.msk.mxu1 %vm1365_vm2, %v1641_v33 }
 0x5cd   : > { %4011 = vmatpush3.xpose.msk.msra.mxu1 %vm1365_vm2, %v1641_v33 }
 0x5ce   : > { %4012 = vmatprep.subr.msk.mxu1 %vm1365_vm2, %v1639_v34 }
 0x5d1   : > { %4013 = vmatpush3.xpose.msk.msra.mxu1 %vm1365_vm2, %v1639_v34 }
 0x5d2   : > { %4014 = vmatprep.subr.msk.mxu1 %vm1365_vm2, %v1637_v35 }
 0x5d5   : > { %4015 = vmatpush3.xpose.msk.msra.mxu1 %vm1365_vm2, %v1637_v35 }
 0x5d8   : > { %4017 = vmatmul.mubr.msk.f32.vlgmr.msra.gmra.mxu1 %vm1365_vm2, %v1635_v36 }
 0x658   : > { %v5855_v37 = vpop.f32.mrf.mxu1 }
 0x65a   : > { %v5857_v38 = vpop.f32.mrf.mxu1 }
 0x698   : > { %v4018_v39 = vpop.f32.mrf.mxu1 }
 0x699   : > { %v5860_v40 = vadd.f32 %v4018_v39, %v5759_v5 }
 0x69a   : > { %v1772_v42 = vpop.f32.mrf.mxu1 }
 0x69b   : > { %v5863_v43 = vadd.f32 %v1772_v42, %v5755_v55  ;;  %1786 = vmax.xlane.f32.xlu0 %v5860_v40 }
 0x69d   : > { %1784 = vmax.xlane.f32.xlu1 %v5863_v43 }
 0x6ae   : > { %1884 = vrot.lane.b32.xlu1 %v5688_v47, %s4931_s11 }
 0x6b1   : > { %1886 = vrot.lane.b32.xlu0 %v5684_v44, %s4931_s11 }
 0x6b2   : > { %1882 = vrot.lane.b32.xlu1 %v5686_v46, %s4931_s11 }
 0x6b5   : > { %1880 = vrot.lane.b32.xlu0 %v5692_v48, %s4931_s11 }
 0x6b6   : > { %1878 = vrot.lane.b32.xlu1 %v5696_v49, %s4931_s11 }
 0x6ba   : > { %1876 = vrot.lane.b32.xlu1 %v5700_v50, %s4931_s11 }
 0x724   : > { %v1787_v4 = vpop.xlane.xlu0 %1786 }
 0x725   : > { %v5884_v62 = vmax.f32 %v5879_v3, %v1787_v4 }
 0x726   : > { %v1785_v2 = vpop.xlane.xlu1 %1784 }
 0x727   : > { %1984 = vst.msk [vmem:[#allocation3 + $0x18] sm:$0xff] %vm1535_vm3, %v5884_v62  ;;  %v5891_v7 = vmax.f32 %v5881_v57, %v1785_v2  ;;  %1803 = vperm.xlu1 %4443, %v5884_v62  }
 0x728   : > { %v1887_v8 = vpop.permute.xlu0 %1886 }
 0x729   : > { %1983 = vst.msk [vmem:[#allocation3 + $0x10] sm:$0xff] %vm1535_vm3, %v5891_v7  ;;  %4019 = vmatprep.subr.mxu0 %v1887_v8  ;;  %1798 = vperm.xlu0 %4444, %v5891_v7  }
 0x72a   : > { %4020 = vmatpush3.msra.mxu0 %v1887_v8  ;;  %v1885_v30 = vpop.permute.xlu1 %1884 }
 0x72b   : > { %1872 = vrot.lane.b32.xlu1 %v5708_v52, %s4931_s11  ;;  %4021 = vmatprep.subr.mxu0 %v1885_v30 }
 0x72c   : > { %4022 = vmatpush3.msra.mxu0 %v1885_v30  ;;  %v1881_v34 = vpop.permute.xlu0 %1880 }
 0x72d   : > { %1874 = vrot.lane.b32.xlu0 %v5704_v51, %s4931_s11 }
 0x72e   : > { %v1883_v33 = vpop.permute.xlu1 %1882 }
 0x72f   : > { %1868 = vrot.lane.b32.xlu1 %v5716_v54, %s4931_s11  ;;  %4023 = vmatprep.subr.mxu0 %v1883_v33 }
 0x730   : > { %4024 = vmatpush3.msra.mxu0 %v1883_v33 }
 0x731   : > { %1870 = vrot.lane.b32.xlu0 %v5712_v53, %s4931_s11  ;;  %4025 = vmatprep.subr.mxu0 %v1881_v34 }
 0x732   : > { %4026 = vmatpush3.msra.mxu0 %v1881_v34  ;;  %v1879_v35 = vpop.permute.xlu1 %1878 }
 0x733   : > { %1864 = vrot.lane.b32.xlu1 %v5724_v58, %s4931_s11  ;;  %4027 = vmatprep.subr.mxu0 %v1879_v35 }
 0x734   : > { %4028 = vmatpush3.msra.mxu0 %v1879_v35 }
 0x735   : > { %1866 = vrot.lane.b32.xlu0 %v5720_v56, %s4931_s11 }
 0x736   : > { %v1877_v36 = vpop.permute.xlu1 %1876 }
 0x737   : > { %1860 = vrot.lane.b32.xlu1 %v5732_v60, %s4931_s11  ;;  %4029 = vmatprep.subr.mxu0 %v1877_v36 }
 0x738   : > { %4030 = vmatpush3.msra.mxu0 %v1877_v36 }
 0x739   : > { %1862 = vrot.lane.b32.xlu0 %v5728_v59, %s4931_s11 }
 0x73b   : > { %1856 = vrot.lane.b32.xlu1 %v5740_v63, %s4931_s11 }
 0x73d   : > { %1858 = vrot.lane.b32.xlu0 %v5736_v61, %s4931_s11 }
 0x73f   : > { %2016 = vrot.lane.b32.xlu1 %v5582_v12, %s4932_s8 }
 0x741   : > { %2018 = vrot.lane.b32.xlu0 %v5580_v10, %s4932_s8 }
 0x743   : > { %2012 = vrot.lane.b32.xlu1 %v5596_v14, %s4932_s8 }
 0x745   : > { %2014 = vrot.lane.b32.xlu0 %v5590_v13, %s4932_s8 }
 0x747   : > { %2008 = vrot.lane.b32.xlu1 %v5608_v16, %s4932_s8 }
 0x749   : > { %2010 = vrot.lane.b32.xlu0 %v5602_v15, %s4932_s8 }
 0x74b   : > { %2004 = vrot.lane.b32.xlu1 %v5620_v18, %s4932_s8 }
 0x74d   : > { %2006 = vrot.lane.b32.xlu0 %v5614_v17, %s4932_s8 }
 0x74f   : > { %2000 = vrot.lane.b32.xlu1 %v5632_v20, %s4932_s8 }
 0x751   : > { %2002 = vrot.lane.b32.xlu0 %v5626_v19, %s4932_s8 }
 0x753   : > { %1996 = vrot.lane.b32.xlu1 %v5644_v22, %s4932_s8 }
 0x755   : > { %1998 = vrot.lane.b32.xlu0 %v5638_v21, %s4932_s8 }
 0x757   : > { %1992 = vrot.lane.b32.xlu1 %v5658_v24, %s4932_s8 }
 0x759   : > { %1994 = vrot.lane.b32.xlu0 %v5651_v23, %s4932_s8 }
 0x75b   : > { %1988 = vrot.lane.b32.xlu1 %v5672_v26, %s4932_s8 }
 0x75d   : > { %1990 = vrot.lane.b32.xlu0 %v5665_v25, %s4932_s8 }
 0x7a2   : > { %v1804_v39 = vpop.permute.xlu1 %1803 }
 0x7a3   : > { %v1807_v8 = vsub.f32 %v5860_v40, %v1804_v39 }
 0x7a4   : > { %v1799_v42 = vpop.permute.xlu0 %1798 }
 0x7a5   : > { %v1806_v4 = vsub.f32 %v5863_v43, %v1799_v42  ;;  %v1810_v35 = vmul.f32 1.442695, %v1807_v8 }
 0x7a6   : > { %v1873_v2 = vpop.permute.xlu1 %1872 }
 0x7a7   : > { %v1808_v30 = vmul.f32 1.442695, %v1806_v4 }
 0x7a8   : > { %v1875_v33 = vpop.permute.xlu0 %1874 }
 0x7a9   : > { %4449 = vpow2.f32 %v1808_v30  ;;  %4031 = vmatprep.subr.mxu0 %v1875_v33 }
 0x7aa   : > { %4032 = vmatpush3.msra.mxu0 %v1875_v33  ;;  %v1869_v34 = vpop.permute.xlu1 %1868  ;;  %4451 = vpow2.f32 %v1810_v35 }
 0x7ab   : > { %4033 = vmatprep.subr.mxu0 %v1873_v2 }
 0x7ac   : > { %v1871_v36 = vpop.permute.xlu0 %1870  ;;  %4034 = vmatpush3.msra.mxu0 %v1873_v2  ;;  %v1986_v2 = vld [vmem:[#allocation2 + $0x20] sm:$0xff] }
 0x7ad   : > { %4035 = vmatprep.subr.mxu0 %v1871_v36 }
 0x7ae   : > { %4036 = vmatpush3.msra.mxu0 %v1871_v36  ;;  %v1865_v11 = vpop.permute.xlu1 %1864 }
 0x7af   : > { %4037 = vmatprep.subr.mxu0 %v1869_v34 }
 0x7b0   : > { %v1867_v29 = vpop.permute.xlu0 %1866  ;;  %4038 = vmatpush3.msra.mxu0 %v1869_v34 }
 0x7b1   : > { %4039 = vmatprep.subr.mxu0 %v1867_v29 }
 0x7b2   : > { %4040 = vmatpush3.msra.mxu0 %v1867_v29  ;;  %v1861_v40 = vpop.permute.xlu1 %1860 }
 0x7b3   : > { %4041 = vmatprep.subr.mxu0 %v1865_v11 }
 0x7b4   : > { %v1863_v43 = vpop.permute.xlu0 %1862  ;;  %4042 = vmatpush3.msra.mxu0 %v1865_v11 }
 0x7b5   : > { %4043 = vmatprep.subr.mxu0 %v1863_v43 }
 0x7b6   : > { %v5953_v39 = vpop.eup %4449  ;;  %4044 = vmatpush3.msra.mxu0 %v1863_v43  ;;  %v1857_v42 = vpop.permute.xlu1 %1856 }
 0x7b7   : > { %4045 = vmatprep.subr.mxu0 %v1861_v40  ;;  %4051 = vmatprep.mubr.f32.mxu0 %v5953_v39  ;;  %v5956_v8 = vpop.eup %4451 }
 0x7b8   : > { %v1859_v4 = vpop.permute.xlu0 %1858  ;;  %4046 = vmatpush3.msra.mxu0 %v1861_v40 }
 0x7b9   : > { %4047 = vmatprep.subr.mxu0 %v1859_v4 }
 0x7ba   : > { %4048 = vmatpush3.msra.mxu0 %v1859_v4  ;;  %v2017_v11 = vpop.permute.xlu1 %2016 }
 0x7bb   : > { %4049 = vmatprep.subr.mxu0 %v1857_v42 }
 0x7bc   : > { %v2019_v29 = vpop.permute.xlu0 %2018  ;;  %4050 = vmatpush3.msra.mxu0 %v1857_v42 }
 0x7bd   : > { %4052 = vmatmul.mubr.f32.vlgmr.msra.gmra.mxu0 %v5956_v8  ;;  %4054 = vmatprep.subr.msk.mxu0 %vm1365_vm2, %v2019_v29 }
 0x7be   : > { %4055 = vmatpush3.xpose.msk.msra.mxu0 %vm1365_vm2, %v2019_v29  ;;  %4086 = vmatprep.mubr.msk.f32.mxu0 %vm1365_vm2, %v1986_v2  ;;  %v2013_v33 = vpop.permute.xlu1 %2012 }
 0x7bf   : > { %4056 = vmatprep.subr.msk.mxu0 %vm1365_vm2, %v2017_v11 }
 0x7c0   : > { %v2015_v30 = vpop.permute.xlu0 %2014 }
 0x7c2   : > { %4057 = vmatpush3.xpose.msk.msra.mxu0 %vm1365_vm2, %v2017_v11  ;;  %v2009_v35 = vpop.permute.xlu1 %2008 }
 0x7c3   : > { %4058 = vmatprep.subr.msk.mxu0 %vm1365_vm2, %v2015_v30 }
 0x7c4   : > { %v2011_v34 = vpop.permute.xlu0 %2010 }
 0x7c6   : > { %4059 = vmatpush3.xpose.msk.msra.mxu0 %vm1365_vm2, %v2015_v30  ;;  %v2005_v40 = vpop.permute.xlu1 %2004 }
 0x7c7   : > { %4060 = vmatprep.subr.msk.mxu0 %vm1365_vm2, %v2013_v33 }
 0x7c8   : > { %v2007_v36 = vpop.permute.xlu0 %2006 }
 0x7ca   : > { %4061 = vmatpush3.xpose.msk.msra.mxu0 %vm1365_vm2, %v2013_v33  ;;  %v2001_v42 = vpop.permute.xlu1 %2000 }
 0x7cb   : > { %4062 = vmatprep.subr.msk.mxu0 %vm1365_vm2, %v2011_v34 }
 0x7cc   : > { %v2003_v43 = vpop.permute.xlu0 %2002 }
 0x7ce   : > { %4063 = vmatpush3.xpose.msk.msra.mxu0 %vm1365_vm2, %v2011_v34  ;;  %v1997_v2 = vpop.permute.xlu1 %1996  ;;  %v1987_v34 = vld [vmem:[#allocation2 + $0x28] sm:$0xff] }
 0x7cf   : > { %4064 = vmatprep.subr.msk.mxu0 %vm1365_vm2, %v2009_v35 }
 0x7d0   : > { %v1999_v4 = vpop.permute.xlu0 %1998 }
 0x7d2   : > { %4065 = vmatpush3.xpose.msk.msra.mxu0 %vm1365_vm2, %v2009_v35  ;;  %v1993_v11 = vpop.permute.xlu1 %1992 }
 0x7d3   : > { %4066 = vmatprep.subr.msk.mxu0 %vm1365_vm2, %v2007_v36 }
 0x7d4   : > { %v1995_v29 = vpop.permute.xlu0 %1994 }
 0x7d6   : > { %4067 = vmatpush3.xpose.msk.msra.mxu0 %vm1365_vm2, %v2007_v36  ;;  %v1989_v33 = vpop.permute.xlu1 %1988 }
 0x7d7   : > { %4068 = vmatprep.subr.msk.mxu0 %vm1365_vm2, %v2005_v40 }
 0x7d8   : > { %v1991_v30 = vpop.permute.xlu0 %1990 }
 0x7da   : > { %4069 = vmatpush3.xpose.msk.msra.mxu0 %vm1365_vm2, %v2005_v40 }
 0x7db   : > { %4070 = vmatprep.subr.msk.mxu0 %vm1365_vm2, %v2003_v43 }
 0x7de   : > { %4071 = vmatpush3.xpose.msk.msra.mxu0 %vm1365_vm2, %v2003_v43 }
 0x7df   : > { %4072 = vmatprep.subr.msk.mxu0 %vm1365_vm2, %v2001_v42 }
 0x7e2   : > { %4073 = vmatpush3.xpose.msk.msra.mxu0 %vm1365_vm2, %v2001_v42 }
 0x7e3   : > { %4074 = vmatprep.subr.msk.mxu0 %vm1365_vm2, %v1999_v4 }
 0x7e6   : > { %4075 = vmatpush3.xpose.msk.msra.mxu0 %vm1365_vm2, %v1999_v4 }
 0x7e7   : > { %4076 = vmatprep.subr.msk.mxu0 %vm1365_vm2, %v1997_v2 }
 0x7ea   : > { %4077 = vmatpush3.xpose.msk.msra.mxu0 %vm1365_vm2, %v1997_v2  ;;  %v6015_v2 = vld [vmem:[#allocation3 + $0x28] sm:$0xff] }
 0x7eb   : > { %4078 = vmatprep.subr.msk.mxu0 %vm1365_vm2, %v1995_v29 }
 0x7ee   : > { %4079 = vmatpush3.xpose.msk.msra.mxu0 %vm1365_vm2, %v1995_v29 }
 0x7ef   : > { %4080 = vmatprep.subr.msk.mxu0 %vm1365_vm2, %v1993_v11 }
 0x7f2   : > { %4081 = vmatpush3.xpose.msk.msra.mxu0 %vm1365_vm2, %v1993_v11  ;;  %v6017_v11 = vld [vmem:[#allocation3 + $0x20] sm:$0xff] }
 0x7f3   : > { %4082 = vmatprep.subr.msk.mxu0 %vm1365_vm2, %v1991_v30 }
 0x7f6   : > { %4083 = vmatpush3.xpose.msk.msra.mxu0 %vm1365_vm2, %v1991_v30 }
 0x7f7   : > { %4084 = vmatprep.subr.msk.mxu0 %vm1365_vm2, %v1989_v33 }
 0x7fa   : > { %4085 = vmatpush3.xpose.msk.msra.mxu0 %vm1365_vm2, %v1989_v33 }
 0x7fd   : > { %4087 = vmatmul.mubr.msk.f32.vlgmr.msra.gmra.mxu0 %vm1365_vm2, %v1987_v34 }
 0x87d   : > { %v5993_v35 = vpop.f32.mrf.mxu0 }
 0x87f   : > { %v5995_v36 = vpop.f32.mrf.mxu0 }
 0x8bd   : > { %v4088_v40 = vpop.f32.mrf.mxu0 }
 0x8be   : > { %v5998_v43 = vadd.f32 %v4088_v40, %v5759_v5 }
 0x8bf   : > { %v2124_v42 = vpop.f32.mrf.mxu0 }
 0x8c0   : > { %v6001_v4 = vadd.f32 %v2124_v42, %v5755_v55  ;;  %2138 = vmax.xlane.f32.xlu1 %v5998_v43 }
 0x8c2   : > { %2136 = vmax.xlane.f32.xlu0 %v6001_v4 }
 0x8d1   : > { %2220 = vrot.lane.b32.xlu1 %v5688_v47, %s4932_s8 }
 0x8d5   : > { %2216 = vrot.lane.b32.xlu1 %v5692_v48, %s4932_s8 }
 0x8d8   : > { %2222 = vrot.lane.b32.xlu0 %v5684_v44, %s4932_s8 }
 0x8dc   : > { %2218 = vrot.lane.b32.xlu0 %v5686_v46, %s4932_s8 }
 0x8e0   : > { %2214 = vrot.lane.b32.xlu0 %v5696_v49, %s4932_s8 }
 0x949   : > { %v2139_v29 = vpop.xlane.xlu1 %2138 }
 0x94a   : > { %v6020_v30 = vmax.f32 %v6015_v2, %v2139_v29 }
 0x94b   : > { %v2137_v33 = vpop.xlane.xlu0 %2136 }
 0x94c   : > { %2320 = vst.msk [vmem:[#allocation3 + $0x28] sm:$0xff] %vm1535_vm3, %v6020_v30  ;;  %v6027_v40 = vmax.f32 %v6017_v11, %v2137_v33  ;;  %2155 = vperm.xlu0 %4444, %v6020_v30  }
 0x94d   : > { %v2221_v29 = vpop.permute.xlu1 %2220 }
 0x94e   : > { %2319 = vst.msk [vmem:[#allocation3 + $0x20] sm:$0xff] %vm1535_vm3, %v6027_v40  ;;  %2150 = vperm.xlu1 %4443, %v6027_v40  }
 0x94f   : > { %v2223_v6 = vpop.permute.xlu0 %2222 }
 0x950   : > { %2210 = vrot.lane.b32.xlu0 %v5704_v51, %s4932_s8  ;;  %4089 = vmatprep.subr.mxu1 %v2223_v6 }
 0x951   : > { %4090 = vmatpush3.msra.mxu1 %v2223_v6  ;;  %v2217_v42 = vpop.permute.xlu1 %2216 }
 0x952   : > { %2212 = vrot.lane.b32.xlu1 %v5700_v50, %s4932_s8  ;;  %4091 = vmatprep.subr.mxu1 %v2221_v29 }
 0x953   : > { %4092 = vmatpush3.msra.mxu1 %v2221_v29  ;;  %v2219_v33 = vpop.permute.xlu0 %2218 }
 0x954   : > { %2206 = vrot.lane.b32.xlu0 %v5712_v53, %s4932_s8  ;;  %4093 = vmatprep.subr.mxu1 %v2219_v33 }
 0x955   : > { %4094 = vmatpush3.msra.mxu1 %v2219_v33 }
 0x956   : > { %2208 = vrot.lane.b32.xlu1 %v5708_v52, %s4932_s8  ;;  %4095 = vmatprep.subr.mxu1 %v2217_v42 }
 0x957   : > { %4096 = vmatpush3.msra.mxu1 %v2217_v42  ;;  %v2215_v34 = vpop.permute.xlu0 %2214 }
 0x958   : > { %2202 = vrot.lane.b32.xlu0 %v5720_v56, %s4932_s8  ;;  %4097 = vmatprep.subr.mxu1 %v2215_v34 }
 0x959   : > { %4098 = vmatpush3.msra.mxu1 %v2215_v34 }
 0x95a   : > { %2204 = vrot.lane.b32.xlu1 %v5716_v54, %s4932_s8 }
 0x95c   : > { %2198 = vrot.lane.b32.xlu0 %v5728_v59, %s4932_s8 }
 0x95e   : > { %2200 = vrot.lane.b32.xlu1 %v5724_v58, %s4932_s8 }
 0x960   : > { %2194 = vrot.lane.b32.xlu0 %v5736_v61, %s4932_s8 }
 0x962   : > { %2196 = vrot.lane.b32.xlu1 %v5732_v60, %s4932_s8 }
 0x964   : > { %2354 = vrot.lane.b32.xlu0 %v5580_v10, %s4933_s25 }
 0x966   : > { %2192 = vrot.lane.b32.xlu1 %v5740_v63, %s4932_s8 }
 0x968   : > { %2350 = vrot.lane.b32.xlu0 %v5590_v13, %s4933_s25 }
 0x96a   : > { %2352 = vrot.lane.b32.xlu1 %v5582_v12, %s4933_s25 }
 0x96c   : > { %2346 = vrot.lane.b32.xlu0 %v5602_v15, %s4933_s25 }
 0x96e   : > { %2348 = vrot.lane.b32.xlu1 %v5596_v14, %s4933_s25 }
 0x970   : > { %2342 = vrot.lane.b32.xlu0 %v5614_v17, %s4933_s25 }
 0x972   : > { %2344 = vrot.lane.b32.xlu1 %v5608_v16, %s4933_s25 }
 0x974   : > { %2338 = vrot.lane.b32.xlu0 %v5626_v19, %s4933_s25 }
 0x976   : > { %2340 = vrot.lane.b32.xlu1 %v5620_v18, %s4933_s25 }
 0x978   : > { %2334 = vrot.lane.b32.xlu0 %v5638_v21, %s4933_s25 }
 0x97a   : > { %2336 = vrot.lane.b32.xlu1 %v5632_v20, %s4933_s25 }
 0x97c   : > { %2330 = vrot.lane.b32.xlu0 %v5651_v23, %s4933_s25 }
 0x97e   : > { %2332 = vrot.lane.b32.xlu1 %v5644_v22, %s4933_s25 }
 0x980   : > { %2326 = vrot.lane.b32.xlu0 %v5665_v25, %s4933_s25 }
 0x982   : > { %2328 = vrot.lane.b32.xlu1 %v5658_v24, %s4933_s25 }
 0x986   : > { %2324 = vrot.lane.b32.xlu1 %v5672_v26, %s4933_s25 }
 0x9c7   : > { %v2156_v10 = vpop.permute.xlu0 %2155 }
 0x9c8   : > { %v2159_v17 = vsub.f32 %v5998_v43, %v2156_v10 }
 0x9c9   : > { %v2151_v12 = vpop.permute.xlu1 %2150 }
 0x9ca   : > { %v2158_v13 = vsub.f32 %v6001_v4, %v2151_v12  ;;  %v2162_v20 = vmul.f32 1.442695, %v2159_v17  ;;  %v2322_v4 = vld [vmem:[#allocation2 + $0x30] sm:$0xff] }
 0x9cb   : > { %v2211_v14 = vpop.permute.xlu0 %2210 }
 0x9cc   : > { %v2160_v15 = vmul.f32 1.442695, %v2158_v13 }
 0x9cd   : > { %v2213_v16 = vpop.permute.xlu1 %2212 }
 0x9ce   : > { %4453 = vpow2.f32 %v2160_v15  ;;  %4099 = vmatprep.subr.mxu1 %v2213_v16 }
 0x9cf   : > { %4100 = vmatpush3.msra.mxu1 %v2213_v16  ;;  %v2207_v18 = vpop.permute.xlu0 %2206  ;;  %4455 = vpow2.f32 %v2162_v20 }
 0x9d0   : > { %4101 = vmatprep.subr.mxu1 %v2211_v14 }
 0x9d1   : > { %v2209_v19 = vpop.permute.xlu1 %2208  ;;  %4102 = vmatpush3.msra.mxu1 %v2211_v14 }
 0x9d2   : > { %4103 = vmatprep.subr.mxu1 %v2209_v19 }
 0x9d3   : > { %4104 = vmatpush3.msra.mxu1 %v2209_v19  ;;  %v2203_v21 = vpop.permute.xlu0 %2202 }
 0x9d4   : > { %4105 = vmatprep.subr.mxu1 %v2207_v18 }
 0x9d5   : > { %v2205_v22 = vpop.permute.xlu1 %2204  ;;  %4106 = vmatpush3.msra.mxu1 %v2207_v18 }
 0x9d6   : > { %4107 = vmatprep.subr.mxu1 %v2205_v22 }
 0x9d7   : > { %4108 = vmatpush3.msra.mxu1 %v2205_v22  ;;  %v2199_v23 = vpop.permute.xlu0 %2198 }
 0x9d8   : > { %4109 = vmatprep.subr.mxu1 %v2203_v21 }
 0x9d9   : > { %v2201_v24 = vpop.permute.xlu1 %2200  ;;  %4110 = vmatpush3.msra.mxu1 %v2203_v21 }
 0x9da   : > { %4111 = vmatprep.subr.mxu1 %v2201_v24 }
 0x9db   : > { %v6091_v25 = vpop.eup %4453  ;;  %4112 = vmatpush3.msra.mxu1 %v2201_v24  ;;  %v2195_v26 = vpop.permute.xlu0 %2194  ;;  %v2323_v24 = vld [vmem:[#allocation2 + $0x38] sm:$0xff] }
 0x9dc   : > { %4113 = vmatprep.subr.mxu1 %v2199_v23  ;;  %4121 = vmatprep.mubr.f32.mxu1 %v6091_v25  ;;  %v6094_v34 = vpop.eup %4455 }
 0x9dd   : > { %v2197_v6 = vpop.permute.xlu1 %2196  ;;  %4114 = vmatpush3.msra.mxu1 %v2199_v23 }
 0x9de   : > { %4115 = vmatprep.subr.mxu1 %v2197_v6 }
 0x9df   : > { %4116 = vmatpush3.msra.mxu1 %v2197_v6  ;;  %v2355_v42 = vpop.permute.xlu0 %2354 }
 0x9e0   : > { %4117 = vmatprep.subr.mxu1 %v2195_v26 }
 0x9e1   : > { %v2193_v43 = vpop.permute.xlu1 %2192  ;;  %4118 = vmatpush3.msra.mxu1 %v2195_v26 }
 0x9e2   : > { %4119 = vmatprep.subr.mxu1 %v2193_v43 }
 0x9e3   : > { %4120 = vmatpush3.msra.mxu1 %v2193_v43  ;;  %v2351_v33 = vpop.permute.xlu0 %2350 }
 0x9e4   : > { %4122 = vmatmul.mubr.f32.vlgmr.msra.gmra.mxu1 %v6094_v34  ;;  %4124 = vmatprep.subr.msk.mxu1 %vm1365_vm2, %v2355_v42 }
 0x9e5   : > { %v2353_v29 = vpop.permute.xlu1 %2352  ;;  %4125 = vmatpush3.xpose.msk.msra.mxu1 %vm1365_vm2, %v2355_v42  ;;  %4156 = vmatprep.mubr.msk.f32.mxu1 %vm1365_vm2, %v2322_v4 }
 0x9e6   : > { %4126 = vmatprep.subr.msk.mxu1 %vm1365_vm2, %v2353_v29 }
 0x9e7   : > { %v2347_v12 = vpop.permute.xlu0 %2346 }
 0x9e9   : > { %4127 = vmatpush3.xpose.msk.msra.mxu1 %vm1365_vm2, %v2353_v29  ;;  %v2349_v10 = vpop.permute.xlu1 %2348 }
 0x9ea   : > { %4128 = vmatprep.subr.msk.mxu1 %vm1365_vm2, %v2351_v33 }
 0x9eb   : > { %v2343_v14 = vpop.permute.xlu0 %2342 }
 0x9ed   : > { %4129 = vmatpush3.xpose.msk.msra.mxu1 %vm1365_vm2, %v2351_v33  ;;  %v2345_v13 = vpop.permute.xlu1 %2344 }
 0x9ee   : > { %4130 = vmatprep.subr.msk.mxu1 %vm1365_vm2, %v2349_v10 }
 0x9ef   : > { %v2339_v16 = vpop.permute.xlu0 %2338 }
 0x9f1   : > { %4131 = vmatpush3.xpose.msk.msra.mxu1 %vm1365_vm2, %v2349_v10  ;;  %v2341_v15 = vpop.permute.xlu1 %2340 }
 0x9f2   : > { %4132 = vmatprep.subr.msk.mxu1 %vm1365_vm2, %v2347_v12 }
 0x9f3   : > { %v2335_v18 = vpop.permute.xlu0 %2334 }
 0x9f5   : > { %4133 = vmatpush3.xpose.msk.msra.mxu1 %vm1365_vm2, %v2347_v12  ;;  %v2337_v17 = vpop.permute.xlu1 %2336 }
 0x9f6   : > { %4134 = vmatprep.subr.msk.mxu1 %vm1365_vm2, %v2345_v13 }
 0x9f7   : > { %v2331_v20 = vpop.permute.xlu0 %2330 }
 0x9f9   : > { %4135 = vmatpush3.xpose.msk.msra.mxu1 %vm1365_vm2, %v2345_v13  ;;  %v2333_v19 = vpop.permute.xlu1 %2332 }
 0x9fa   : > { %4136 = vmatprep.subr.msk.mxu1 %vm1365_vm2, %v2343_v14 }
 0x9fb   : > { %v2327_v22 = vpop.permute.xlu0 %2326 }
 0x9fd   : > { %4137 = vmatpush3.xpose.msk.msra.mxu1 %vm1365_vm2, %v2343_v14  ;;  %v2329_v21 = vpop.permute.xlu1 %2328 }
 0x9fe   : > { %4138 = vmatprep.subr.msk.mxu1 %vm1365_vm2, %v2341_v15 }
 0xa01   : > { %4139 = vmatpush3.xpose.msk.msra.mxu1 %vm1365_vm2, %v2341_v15  ;;  %v2325_v23 = vpop.permute.xlu1 %2324 }
 0xa02   : > { %4140 = vmatprep.subr.msk.mxu1 %vm1365_vm2, %v2339_v16 }
 0xa05   : > { %4141 = vmatpush3.xpose.msk.msra.mxu1 %vm1365_vm2, %v2339_v16  ;;  %v2166_v16 = vld [vmem:[#allocation4 + $0x28] sm:$0xff] }
 0xa06   : > { %4142 = vmatprep.subr.msk.mxu1 %vm1365_vm2, %v2337_v17 }
 0xa09   : > { %4143 = vmatpush3.xpose.msk.msra.mxu1 %vm1365_vm2, %v2337_v17 }
 0xa0a   : > { %4144 = vmatprep.subr.msk.mxu1 %vm1365_vm2, %v2335_v18 }
 0xa0d   : > { %4145 = vmatpush3.xpose.msk.msra.mxu1 %vm1365_vm2, %v2335_v18 }
 0xa0e   : > { %4146 = vmatprep.subr.msk.mxu1 %vm1365_vm2, %v2333_v19 }
 0xa11   : > { %4147 = vmatpush3.xpose.msk.msra.mxu1 %vm1365_vm2, %v2333_v19 }
 0xa12   : > { %4148 = vmatprep.subr.msk.mxu1 %vm1365_vm2, %v2331_v20 }
 0xa15   : > { %4149 = vmatpush3.xpose.msk.msra.mxu1 %vm1365_vm2, %v2331_v20 }
 0xa16   : > { %4150 = vmatprep.subr.msk.mxu1 %vm1365_vm2, %v2329_v21 }
 0xa19   : > { %4151 = vmatpush3.xpose.msk.msra.mxu1 %vm1365_vm2, %v2329_v21  ;;  %v1539_v21 = vld [vmem:[#allocation5 + $0x8] sm:$0xff] }
 0xa1a   : > { %4152 = vmatprep.subr.msk.mxu1 %vm1365_vm2, %v2327_v22 }
 0xa1d   : > { %4153 = vmatpush3.xpose.msk.msra.mxu1 %vm1365_vm2, %v2327_v22 }
 0xa1e   : > { %4154 = vmatprep.subr.msk.mxu1 %vm1365_vm2, %v2325_v23 }
 0xa21   : > { %4155 = vmatpush3.xpose.msk.msra.mxu1 %vm1365_vm2, %v2325_v23 }
 0xa24   : > { %4157 = vmatmul.mubr.msk.f32.vlgmr.msra.gmra.mxu1 %vm1365_vm2, %v2323_v24  ;;  %v1827_v24 = vld [vmem:[#allocation5 + $0x18] sm:$0xff] }
 0xaa4   : > { %v6131_v26 = vpop.f32.mrf.mxu1 }
 0xaa6   : > { %v6133_v6 = vpop.f32.mrf.mxu1 }
 0xae4   : > { %v4158_v43 = vpop.f32.mrf.mxu1 }
 0xae5   : > { %v6136_v4 = vadd.f32 %v4158_v43, %v5759_v5 }
 0xae6   : > { %v2460_v42 = vpop.f32.mrf.mxu1 }
 0xae7   : > { %v6139_v29 = vadd.f32 %v2460_v42, %v5755_v55  ;;  %2474 = vmax.xlane.f32.xlu1 %v6136_v4 }
 0xae9   : > { %2472 = vmax.xlane.f32.xlu0 %v6139_v29 }
 0xaf8   : > { %2556 = vrot.lane.b32.xlu1 %v5688_v47, %s4933_s25 }
 0xafc   : > { %2552 = vrot.lane.b32.xlu1 %v5692_v48, %s4933_s25  ;;  %v6546_v48 = vsub.f32 %v6015_v2, %v6020_v30 }
 0xaff   : > { %2558 = vrot.lane.b32.xlu0 %v5684_v44, %s4933_s25  ;;  %v1507_v44 = vmul.f32 1.442695, %v1504_v32 }
 0xb00   : > { %2550 = vrot.lane.b32.xlu1 %v5696_v49, %s4933_s25  ;;  %v2146_v49 = vmul.f32 1.442695, %v6546_v48 }
 0xb01   : > { %4457 = vpow2.f32 %v1507_v44 }
 0xb03   : > { %2554 = vrot.lane.b32.xlu0 %v5686_v46, %s4933_s25  ;;  %v6545_v46 = vsub.f32 %v5879_v3, %v5884_v62 }
 0xb04   : > { %2548 = vrot.lane.b32.xlu1 %v5700_v50, %s4933_s25 }
 0xb05   : > { %v1794_v47 = vmul.f32 1.442695, %v6545_v46  ;;  %v2179_v46 = vld [vmem:[#allocation5 + $0x28] sm:$0xff] }
 0xb07   : > { %4459 = vpow2.f32 %v1794_v47 }
 0xb08   : > { %2544 = vrot.lane.b32.xlu1 %v5708_v52, %s4933_s25  ;;  %4461 = vpow2.f32 %v2146_v49 }
 0xb0c   : > { %2540 = vrot.lane.b32.xlu1 %v5716_v54, %s4933_s25 }
 0xb0e   : > { %v4458_v50 = vpop.eup %4457 }
 0xb10   : > { %2536 = vrot.lane.b32.xlu1 %v5724_v58, %s4933_s25  ;;  %v6180_v58 = vld [vmem:[#allocation3 + $0x38] sm:$0xff] }
 0xb14   : > { %2532 = vrot.lane.b32.xlu1 %v5732_v60, %s4933_s25  ;;  %v4460_v52 = vpop.eup %4459 }
 0xb15   : > { %v6177_v54 = vpop.eup %4461 }
 0xb18   : > { %2528 = vrot.lane.b32.xlu1 %v5740_v63, %s4933_s25  ;;  %v6182_v63 = vld [vmem:[#allocation3 + $0x30] sm:$0xff] }
 0xb3c   : > { %1531 = vadd.xlane.f32.xlu1 %v5819_v45 }
 0xb40   : > { %1819 = vadd.xlane.f32.xlu1 %v5956_v8 }
 0xb44   : > { %2171 = vadd.xlane.f32.xlu1 %v6094_v34 }
 0xb55   : > { %1547 = vperm.xlu1 %4443, %v4458_v50  }
 0xb59   : > { %1835 = vperm.xlu1 %4443, %v4460_v52  }
 0xb5d   : > { %2187 = vperm.xlu1 %4443, %v6177_v54  }
 0xb70   : > { %v2475_v60 = vpop.xlane.xlu1 %2474 }
 0xb71   : > { %v6185_v55 = vmax.f32 %v6180_v58, %v2475_v60 }
 0xb72   : > { %v2473_v5 = vpop.xlane.xlu0 %2472 }
 0xb73   : > { %v2479_v28 = vsub.f32 %v6180_v58, %v6185_v55  ;;  %2656 = vst.msk [vmem:[#allocation3 + $0x38] sm:$0xff] %vm1535_vm3, %v6185_v55  ;;  %v6192_v31 = vmax.f32 %v6182_v63, %v2473_v5  ;;  %2491 = vperm.xlu0 %4444, %v6185_v55  }
 0xb74   : > { %v2557_v32 = vpop.permute.xlu1 %2556 }
 0xb75   : > { %v2478_v45 = vsub.f32 %v6182_v63, %v6192_v31  ;;  %2655 = vst.msk [vmem:[#allocation3 + $0x30] sm:$0xff] %vm1535_vm3, %v6192_v31 }
 0xb76   : > { %v2559_v3 = vpop.permute.xlu0 %2558 }
 0xb77   : > { %2486 = vperm.xlu0 %4444, %v6192_v31   ;;  %4159 = vmatprep.subr.mxu0 %v2559_v3  ;;  %v2480_v58 = vmul.f32 1.442695, %v2478_v45  ;;  %v2165_v45 = vld [vmem:[#allocation4 + $0x20] sm:$0xff] }
 0xb78   : > { %v2553_v62 = vpop.permute.xlu1 %2552  ;;  %4160 = vmatpush3.msra.mxu0 %v2559_v3 }
 0xb79   : > { %4161 = vmatprep.subr.mxu0 %v2557_v32 }
 0xb7a   : > { %4162 = vmatpush3.msra.mxu0 %v2557_v32  ;;  %v2555_v8 = vpop.permute.xlu0 %2554 }
 0xb7b   : > { %2546 = vrot.lane.b32.xlu0 %v5704_v51, %s4933_s25  ;;  %4163 = vmatprep.subr.mxu0 %v2555_v8 }
 0xb7c   : > { %v2551_v2 = vpop.permute.xlu1 %2550  ;;  %4164 = vmatpush3.msra.mxu0 %v2555_v8 }
 0xb7d   : > { %4165 = vmatprep.subr.mxu0 %v2553_v62 }
 0xb7e   : > { %4166 = vmatpush3.msra.mxu0 %v2553_v62 }
 0xb7f   : > { %2542 = vrot.lane.b32.xlu0 %v5712_v53, %s4933_s25  ;;  %4167 = vmatprep.subr.mxu0 %v2551_v2 }
 0xb80   : > { %v2549_v30 = vpop.permute.xlu1 %2548  ;;  %4168 = vmatpush3.msra.mxu0 %v2551_v2 }
 0xb81   : > { %4169 = vmatprep.subr.mxu0 %v2549_v30 }
 0xb82   : > { %4170 = vmatpush3.msra.mxu0 %v2549_v30  ;;  %v1525_v30 = vld [vmem:[#allocation4] sm:$0xff] }
 0xb83   : > { %2538 = vrot.lane.b32.xlu0 %v5720_v56, %s4933_s25  ;;  %v6547_v56 = vsub.f32 %v5775_v9, %v5778_v27  ;;  %v1814_v9 = vld [vmem:[#allocation4 + $0x18] sm:$0xff] }
 0xb84   : > { %v2545_v51 = vpop.permute.xlu1 %2544 }
 0xb85   : > { %v1505_v33 = vmul.f32 1.442695, %v6547_v56 }
 0xb87   : > { %2534 = vrot.lane.b32.xlu0 %v5728_v59, %s4933_s25  ;;  %4463 = vpow2.f32 %v1505_v33  ;;  %v6548_v59 = vsub.f32 %v5881_v57, %v5891_v7  ;;  %v1816_v57 = vmul.f32 %v4460_v52, %v1814_v9 }
 0xb88   : > { %v6212_v53 = vpop.permute.xlu1 %2540 }
 0xb8b   : > { %2530 = vrot.lane.b32.xlu0 %v5736_v61, %s4933_s25  ;;  %v1792_v61 = vmul.f32 1.442695, %v6548_v59 }
 0xb8c   : > { %v6215_v34 = vpop.permute.xlu1 %2536 }
 0xb8d   : > { %4465 = vpow2.f32 %v1792_v61 }
 0xb90   : > { %v6223_v10 = vpop.permute.xlu1 %2532 }
 0xb94   : > { %v6228_v12 = vpop.permute.xlu1 %2528  ;;  %v6230_v15 = vpop.eup %4463 }
 0xbaa   : > { %1529 = vadd.xlane.f32.xlu0 %v5816_v41  ;;  %v6549_v41 = vsub.f32 %v6017_v11, %v6027_v40  ;;  %v6234_v11 = vpop.eup %4465  ;;  %v2168_v40 = vmul.f32 %v6177_v54, %v2166_v16 }
 0xbae   : > { %1817 = vadd.xlane.f32.xlu0 %v5953_v39  ;;  %v2144_v39 = vmul.f32 1.442695, %v6549_v41  ;;  %v1538_v41 = vld [vmem:[#allocation5] sm:$0xff] }
 0xbb0   : > { %4467 = vpow2.f32 %v2144_v39 }
 0xbb2   : > { %2169 = vadd.xlane.f32.xlu0 %v6091_v25  ;;  %v1526_v25 = vld [vmem:[#allocation4 + $0x8] sm:$0xff] }
 0xbb3   : > { %v1528_v13 = vmul.f32 %v4458_v50, %v1526_v25  ;;  %v1826_v25 = vld [vmem:[#allocation5 + $0x10] sm:$0xff] }
 0xbbd   : > { %v6239_v20 = vpop.eup %4467 }
 0xbbe   : > { %v2167_v59 = vmul.f32 %v6239_v20, %v2165_v45 }
 0xbc5   : > { %v1532_v14 = vpop.xlane.xlu1 %1531 }
 0xbc6   : > { %v1534_v27 = vadd.f32 %v1532_v14, %v1528_v13 }
 0xbc8   : > { %1537 = vst.msk [vmem:[#allocation4 + $0x8] sm:$0xff] %vm1535_vm3, %v1534_v27  ;;  %1542 = vperm.xlu0 %4444, %v6230_v15   ;;  %v2178_v27 = vld [vmem:[#allocation5 + $0x20] sm:$0xff] }
 0xbc9   : > { %v1820_v7 = vpop.xlane.xlu1 %1819 }
 0xbca   : > { %v1822_v17 = vadd.f32 %v1820_v7, %v1816_v57 }
 0xbcc   : > { %1824 = vst.msk [vmem:[#allocation4 + $0x18] sm:$0xff] %vm1535_vm3, %v1822_v17  ;;  %1830 = vperm.xlu0 %4444, %v6234_v11   ;;  %v2502_v17 = vld [vmem:[#allocation4 + $0x38] sm:$0xff] }
 0xbcd   : > { %v2172_v18 = vpop.xlane.xlu1 %2171 }
 0xbce   : > { %v2174_v19 = vadd.f32 %v2172_v18, %v2168_v40  ;;  %v2501_v18 = vld [vmem:[#allocation4 + $0x30] sm:$0xff] }
 0xbd0   : > { %2176 = vst.msk [vmem:[#allocation4 + $0x28] sm:$0xff] %vm1535_vm3, %v2174_v19  ;;  %2182 = vperm.xlu0 %4444, %v6239_v20  }
 0xbd1   : > { %v1548_v22 = vpop.permute.xlu1 %1547 }
 0xbd2   : > { %v1551_v23 = vmul.f32 %v1548_v22, %v1539_v21 }
 0xbd4   : > { %v1628_v43 = vadd.f32 %v5855_v37, %v1551_v23  ;;  %v2514_v23 = vld [vmem:[#allocation5 + $0x30] sm:$0xff] }
 0xbd5   : > { %v1836_v42 = vpop.permute.xlu1 %1835 }
 0xbd6   : > { %1630 = vst.msk [vmem:[#allocation5 + $0x8] sm:$0xff] %vm1365_vm2, %v1628_v43  ;;  %v1839_v44 = vmul.f32 %v1836_v42, %v1827_v24 }
 0xbd8   : > { %v1980_v47 = vadd.f32 %v5993_v35, %v1839_v44 }
 0xbd9   : > { %v2188_v48 = vpop.permute.xlu1 %2187 }
 0xbda   : > { %1982 = vst.msk [vmem:[#allocation5 + $0x18] sm:$0xff] %vm1365_vm2, %v1980_v47  ;;  %v2191_v49 = vmul.f32 %v2188_v48, %v2179_v46 }
 0xbdc   : > { %v2316_v50 = vadd.f32 %v6131_v26, %v2191_v49 }
 0xbde   : > { %2318 = vst.msk [vmem:[#allocation5 + $0x28] sm:$0xff] %vm1365_vm2, %v2316_v50 }
 0xbee   : > { %v2492_v52 = vpop.permute.xlu0 %2491 }
 0xbef   : > { %v2495_v54 = vsub.f32 %v6136_v4, %v2492_v52 }
 0xbf1   : > { %v2498_v60 = vmul.f32 1.442695, %v2495_v54 }
 0xbf2   : > { %v2487_v37 = vpop.permute.xlu0 %2486 }
 0xbf3   : > { %4469 = vpow2.f32 %v2498_v60  ;;  %v2494_v5 = vsub.f32 %v6139_v29, %v2487_v37  ;;  %v2482_v29 = vmul.f32 1.442695, %v2479_v28 }
 0xbf5   : > { %v2496_v32 = vmul.f32 1.442695, %v2494_v5 }
 0xbf6   : > { %v2547_v3 = vpop.permute.xlu0 %2546 }
 0xbf7   : > { %4471 = vpow2.f32 %v2496_v32  ;;  %4171 = vmatprep.subr.mxu0 %v2547_v3 }
 0xbf8   : > { %4172 = vmatpush3.msra.mxu0 %v2547_v3  ;;  %4473 = vpow2.f32 %v2482_v29 }
 0xbf9   : > { %4173 = vmatprep.subr.mxu0 %v2545_v51  ;;  %4475 = vpow2.f32 %v2480_v58 }
 0xbfa   : > { %4174 = vmatpush3.msra.mxu0 %v2545_v51  ;;  %v2543_v35 = vpop.permute.xlu0 %2542  ;;  %v1527_v51 = vmul.f32 %v6230_v15, %v1525_v30 }
 0xbfb   : > { %4175 = vmatprep.subr.mxu0 %v2543_v35 }
 0xbfc   : > { %4176 = vmatpush3.msra.mxu0 %v2543_v35 }
 0xbfd   : > { %4177 = vmatprep.subr.mxu0 %v6212_v53 }
 0xbfe   : > { %4178 = vmatpush3.msra.mxu0 %v6212_v53  ;;  %v2539_v26 = vpop.permute.xlu0 %2538 }
 0xbff   : > { %4179 = vmatprep.subr.mxu0 %v2539_v26 }
 0xc00   : > { %v4470_v4 = vpop.eup %4469  ;;  %4180 = vmatpush3.msra.mxu0 %v2539_v26 }
 0xc01   : > { %2507 = vadd.xlane.f32.xlu1 %v4470_v4  ;;  %4181 = vmatprep.subr.mxu0 %v6215_v34 }
 0xc02   : > { %4182 = vmatpush3.msra.mxu0 %v6215_v34  ;;  %v2535_v62 = vpop.permute.xlu0 %2534  ;;  %v1813_v34 = vld [vmem:[#allocation4 + $0x10] sm:$0xff] }
 0xc03   : > { %4183 = vmatprep.subr.mxu0 %v2535_v62  ;;  %v1815_v63 = vmul.f32 %v6234_v11, %v1813_v34 }
 0xc04   : > { %v4472_v8 = vpop.eup %4471  ;;  %4184 = vmatpush3.msra.mxu0 %v2535_v62 }
 0xc05   : > { %2505 = vadd.xlane.f32.xlu0 %v4472_v8  ;;  %4185 = vmatprep.subr.mxu0 %v6223_v10  ;;  %v4474_v55 = vpop.eup %4473 }
 0xc06   : > { %4191 = vmatprep.mubr.f32.mxu0 %v4472_v8  ;;  %4186 = vmatpush3.msra.mxu0 %v6223_v10  ;;  %v2531_v2 = vpop.permute.xlu0 %2530  ;;  %v4476_v28 = vpop.eup %4475  ;;  %v2504_v11 = vmul.f32 %v4474_v55, %v2502_v17 }
 0xc07   : > { %4187 = vmatprep.subr.mxu0 %v2531_v2  ;;  %v2503_v19 = vmul.f32 %v4476_v28, %v2501_v18 }
 0xc08   : > { %4188 = vmatpush3.msra.mxu0 %v2531_v2 }
 0xc09   : > { %4189 = vmatprep.subr.mxu0 %v6228_v12 }
 0xc0a   : > { %4190 = vmatpush3.msra.mxu0 %v6228_v12 }
 0xc0b   : > { %4192 = vmatmul.mubr.f32.vlgmr.msra.gmra.mxu0 %v4470_v4 }
 0xc12   : > { %2523 = vperm.xlu1 %4443, %v4474_v55  }
 0xc1b   : > { %2518 = vperm.xlu0 %4444, %v4476_v28  }
 0xc33   : > { %v1530_v53 = vpop.xlane.xlu0 %1529 }
 0xc34   : > { %v1533_v56 = vadd.f32 %v1530_v53, %v1527_v51 }
 0xc36   : > { %1536 = vst.msk [vmem:[#allocation4] sm:$0xff] %vm1535_vm3, %v1533_v56 }
 0xc37   : > { %v1818_v31 = vpop.xlane.xlu0 %1817 }
 0xc38   : > { %v1821_v33 = vadd.f32 %v1818_v31, %v1815_v63 }
 0xc3a   : > { %1823 = vst.msk [vmem:[#allocation4 + $0x10] sm:$0xff] %vm1535_vm3, %v1821_v33 }
 0xc3b   : > { %v2170_v61 = vpop.xlane.xlu0 %2169 }
 0xc3c   : > { %v2173_v10 = vadd.f32 %v2170_v61, %v2167_v59 }
 0xc3e   : > { %2175 = vst.msk [vmem:[#allocation4 + $0x20] sm:$0xff] %vm1535_vm3, %v2173_v10 }
 0xc43   : > { %v1543_v39 = vpop.permute.xlu0 %1542 }
 0xc44   : > { %v1550_v12 = vmul.f32 %v1543_v39, %v1538_v41 }
 0xc46   : > { %v1627_v13 = vadd.f32 %v5857_v38, %v1550_v12 }
 0xc47   : > { %v1831_v14 = vpop.permute.xlu0 %1830 }
 0xc48   : > { %1629 = vst.msk [vmem:[#allocation5] sm:$0xff] %vm1365_vm2, %v1627_v13  ;;  %v1838_v9 = vmul.f32 %v1831_v14, %v1826_v25 }
 0xc4a   : > { %v1979_v15 = vadd.f32 %v5995_v36, %v1838_v9  ;;  %v2515_v36 = vld [vmem:[#allocation5 + $0x38] sm:$0xff] }
 0xc4b   : > { %v2183_v57 = vpop.permute.xlu0 %2182 }
 0xc4c   : > { %1981 = vst.msk [vmem:[#allocation5 + $0x10] sm:$0xff] %vm1365_vm2, %v1979_v15  ;;  %v2190_v7 = vmul.f32 %v2183_v57, %v2178_v27 }
 0xc4e   : > { %v2315_v16 = vadd.f32 %v6133_v6, %v2190_v7 }
 0xc50   : > { %2317 = vst.msk [vmem:[#allocation5 + $0x20] sm:$0xff] %vm1365_vm2, %v2315_v16 }
 0xc8a   : > { %v2508_v40 = vpop.xlane.xlu1 %2507 }
 0xc8b   : > { %v2510_v38 = vadd.f32 %v2508_v40, %v2504_v11 }
 0xc8d   : > { %2512 = vst.msk [vmem:[#allocation4 + $0x38] sm:$0xff] %vm1535_vm3, %v2510_v38 }
 0xc8e   : > { %v2506_v20 = vpop.xlane.xlu0 %2505  ;;  %v2524_v22 = vpop.permute.xlu1 %2523 }
 0xc8f   : > { %v2509_v21 = vadd.f32 %v2506_v20, %v2503_v19  ;;  %v2527_v43 = vmul.f32 %v2524_v22, %v2515_v36 }
 0xc91   : > { %2511 = vst.msk [vmem:[#allocation4 + $0x30] sm:$0xff] %vm1535_vm3, %v2509_v21 }
 0xc96   : > { %v2519_v24 = vpop.permute.xlu0 %2518 }
 0xc97   : > { %v2526_v42 = vmul.f32 %v2519_v24, %v2514_v23 }
 0xccb   : > { %v4193_v6 = vpop.f32.mrf.mxu0 }
 0xccc   : > { %v2652_v44 = vadd.f32 %v4193_v6, %v2527_v43  ;;  %2660 = sbr.rel (%p3497_p12) target bundleno = 3947 (0xf6b), region = 128 }
 0xccd   : > { %v2642_v46 = vpop.f32.mrf.mxu0 }
 0xcce   : > { %2654 = vst.msk [vmem:[#allocation5 + $0x38] sm:$0xff] %vm1365_vm2, %v2652_v44  ;;  %v2651_v47 = vadd.f32 %v2642_v46, %v2526_v42 }
 0xcd0   : > { %2653 = vst.msk [vmem:[#allocation5 + $0x30] sm:$0xff] %vm1365_vm2, %v2651_v47 }
 0xcd1   : > { %v2777_v48 = vld [vmem:[#allocation4 + $0x10] sm:$0xff]  ;;  %v2664_v49 = vld [vmem:[#allocation4] sm:$0xff]  ;;  %v2778_v50 = vld [vmem:[#allocation4 + $0x18] sm:$0xff]  ;;  %v4934_v52 = vmov 0  }
 0xcd2   : > { %4478 = vset.pattern.permute.xlu1 %v4934_v52  ;;  %4477 = vset.pattern.permute.xlu0 %v4934_v52  ;;  %4479 = vrcp.f32 %v2777_v48  ;;  %v2665_v54 = vld [vmem:[#allocation4 + $0x8] sm:$0xff]  ;;  %v2687_v60 = vld [vmem:[#allocation20 + $0x18] sm:$0xff]  ;;  %v2686_v5 = vld [vmem:[#allocation20 + $0x10] sm:$0xff] }
 0xcd3   : > { %4481 = vrcp.f32 %v2664_v49  ;;  %4194 = vmatprep.subr.mxu0 %v2687_v60  ;;  %v2801_v37 = vld [vmem:[#allocation20 + $0x38] sm:$0xff]  ;;  %v2886_v32 = vld [vmem:[#allocation4 + $0x28] sm:$0xff]  ;;  %v2885_v3 = vld [vmem:[#allocation4 + $0x20] sm:$0xff] }
 0xcd4   : > { %4483 = vrcp.f32 %v2778_v50  ;;  %4195 = vmatpush3.msra.mxu0 %v2687_v60  ;;  %4205 = vmatprep.subr.mxu1 %v2801_v37  ;;  %v2994_v35 = vld [vmem:[#allocation4 + $0x38] sm:$0xff]  ;;  %v2993_v26 = vld [vmem:[#allocation4 + $0x30] sm:$0xff]  ;;  %v2685_v29 = vld [vmem:[#allocation20 + $0x8] sm:$0xff] }
 0xcd5   : > { %4485 = vrcp.f32 %v2665_v54  ;;  %4196 = vmatprep.subr.mxu0 %v2686_v5  ;;  %4206 = vmatpush3.msra.mxu1 %v2801_v37  ;;  %v2800_v4 = vld [vmem:[#allocation20 + $0x30] sm:$0xff]  ;;  %v2799_v62 = vld [vmem:[#allocation20 + $0x28] sm:$0xff]  ;;  %v2684_v2 = vld [vmem:[#allocation20] sm:$0xff] }
 0xcd6   : > { %4197 = vmatpush3.msra.mxu0 %v2686_v5  ;;  %4487 = vrcp.f32 %v2886_v32  ;;  %4207 = vmatprep.subr.mxu1 %v2800_v4  ;;  %v2798_v55 = vld [vmem:[#allocation20 + $0x20] sm:$0xff]  ;;  %v2909_v30 = vld [vmem:[#allocation20 + $0x58] sm:$0xff]  ;;  %v2783_v45 = vld [vmem:[#allocation5 + $0x10] sm:$0xff] }
 0xcd7   : > { %4489 = vrcp.f32 %v2885_v3  ;;  %4198 = vmatprep.subr.mxu0 %v2685_v29  ;;  %4208 = vmatpush3.msra.mxu1 %v2800_v4  ;;  %v3017_v53 = vld [vmem:[#allocation20 + $0x78] sm:$0xff]  ;;  %v2670_v33 = vld [vmem:[#allocation5] sm:$0xff]  ;;  %v2671_v12 = vld [vmem:[#allocation5 + $0x8] sm:$0xff] }
 0xcd8   : > { %4491 = vrcp.f32 %v2994_v35  ;;  %4199 = vmatpush3.msra.mxu0 %v2685_v29  ;;  %4209 = vmatprep.subr.mxu1 %v2799_v62  ;;  %v2784_v39 = vld [vmem:[#allocation5 + $0x18] sm:$0xff]  ;;  %v3016_v27 = vld [vmem:[#allocation20 + $0x70] sm:$0xff]  ;;  %v2891_v57 = vld [vmem:[#allocation5 + $0x20] sm:$0xff] }
 0xcd9   : > { %4493 = vrcp.f32 %v2993_v26  ;;  %4200 = vmatprep.subr.mxu0 %v2684_v2  ;;  %4210 = vmatpush3.msra.mxu1 %v2799_v62  ;;  %v2908_v15 = vld [vmem:[#allocation20 + $0x50] sm:$0xff]  ;;  %v3015_v16 = vld [vmem:[#allocation20 + $0x68] sm:$0xff]  ;;  %v3000_v38 = vld [vmem:[#allocation5 + $0x38] sm:$0xff] }
 0xcda   : > { %4201 = vmatpush3.msra.mxu0 %v2684_v2  ;;  %4211 = vmatprep.subr.mxu1 %v2798_v55  ;;  %v2907_v11 = vld [vmem:[#allocation20 + $0x48] sm:$0xff]  ;;  %v2906_v19 = vld [vmem:[#allocation20 + $0x40] sm:$0xff]  ;;  %v2999_v20 = vld [vmem:[#allocation5 + $0x30] sm:$0xff] }
 0xcdb   : > { %4212 = vmatpush3.msra.mxu1 %v2798_v55  ;;  %4216 = vmatprep.subr.mxu0 %v2909_v30  ;;  %v2892_v40 = vld [vmem:[#allocation5 + $0x28] sm:$0xff]  ;;  %v3014_v21 = vld [vmem:[#allocation20 + $0x60] sm:$0xff] }
 0xcdc   : > { %4227 = vmatprep.subr.mxu1 %v3017_v53  ;;  %v3500_v6 = vld [vmem:[%s6551_s23] ss:$0 sm:$0xff]  ;;  %v2662_v32 = vld [vmem:[%s5370_s1 + $0x8] sm:$0xff] }
 0xcdd   : > { %v2661_v4 = vld [vmem:[%s5370_s1] sm:$0xff] }
 0xcdf   : > { %v4480_v8 = vpop.eup %4479 }
 0xce0   : > { %v4482_v58 = vpop.eup %4481  ;;  %2787 = vperm.xlu1 %4478, %v4480_v8  }
 0xce1   : > { %v4484_v28 = vpop.eup %4483  ;;  %2674 = vperm.xlu0 %4477, %v4482_v58  }
 0xce2   : > { %v4486_v51 = vpop.eup %4485 }
 0xce3   : > { %v4488_v34 = vpop.eup %4487 }
 0xce4   : > { %2792 = vperm.xlu1 %4478, %v4484_v28   ;;  %v4490_v56 = vpop.eup %4489 }
 0xce5   : > { %2679 = vperm.xlu0 %4477, %v4486_v51   ;;  %v4492_v63 = vpop.eup %4491 }
 0xce6   : > { %v4494_v31 = vpop.eup %4493 }
 0xce8   : > { %2900 = vperm.xlu1 %4478, %v4488_v34  }
 0xce9   : > { %2895 = vperm.xlu0 %4477, %v4490_v56  }
 0xcec   : > { %3008 = vperm.xlu1 %4478, %v4492_v63  }
 0xced   : > { %3003 = vperm.xlu0 %4477, %v4494_v31  }
 0xd5b   : > { %v2788_v59 = vpop.permute.xlu1 %2787 }
 0xd5c   : > { %v2675_v61 = vpop.permute.xlu0 %2674  ;;  %v2795_v10 = vmul.f32 %v2788_v59, %v2783_v45 }
 0xd5d   : > { %v2682_v41 = vmul.f32 %v2675_v61, %v2670_v33 }
 0xd5e   : > { %4213 = vmatprep.mubr.msk.f32.mxu1 %vm1365_vm2, %v2795_v10 }
 0xd5f   : > { %4202 = vmatprep.mubr.msk.f32.mxu0 %vm1365_vm2, %v2682_v41  ;;  %v2793_v25 = vpop.permute.xlu1 %2792 }
 0xd60   : > { %v2796_v13 = vmul.f32 %v2793_v25, %v2784_v39  ;;  %v2680_v14 = vpop.permute.xlu0 %2679 }
 0xd61   : > { %v2683_v9 = vmul.f32 %v2680_v14, %v2671_v12 }
 0xd62   : > { %4214 = vmatmul.mubr.msk.f32.vlgmr.msra.gmra.mxu1 %vm1365_vm2, %v2796_v13 }
 0xd63   : > { %4203 = vmatmul.mubr.msk.f32.vlgmr.msra.gmra.mxu0 %vm1365_vm2, %v2683_v9  ;;  %v2901_v7 = vpop.permute.xlu1 %2900  ;;  %4228 = vmatpush3.msra.mxu1 %v3017_v53 }
 0xd64   : > { %4217 = vmatpush3.msra.mxu0 %v2909_v30  ;;  %v2896_v17 = vpop.permute.xlu0 %2895  ;;  %4229 = vmatprep.subr.mxu1 %v3016_v27  ;;  %v2904_v24 = vmul.f32 %v2901_v7, %v2892_v40 }
 0xd65   : > { %4218 = vmatprep.subr.mxu0 %v2908_v15  ;;  %v2903_v18 = vmul.f32 %v2896_v17, %v2891_v57  ;;  %4230 = vmatpush3.msra.mxu1 %v3016_v27 }
 0xd66   : > { %4219 = vmatpush3.msra.mxu0 %v2908_v15  ;;  %4231 = vmatprep.subr.mxu1 %v3015_v16 }
 0xd67   : > { %4220 = vmatprep.subr.mxu0 %v2907_v11  ;;  %4224 = vmatprep.mubr.msk.f32.mxu0 %vm1365_vm2, %v2903_v18  ;;  %v3009_v36 = vpop.permute.xlu1 %3008 }
 0xd68   : > { %4221 = vmatpush3.msra.mxu0 %v2907_v11  ;;  %v3012_v22 = vmul.f32 %v3009_v36, %v3000_v38  ;;  %v3004_v23 = vpop.permute.xlu0 %3003  ;;  %4232 = vmatpush3.msra.mxu1 %v3015_v16 }
 0xd69   : > { %4222 = vmatprep.subr.mxu0 %v2906_v19  ;;  %v3011_v43 = vmul.f32 %v3004_v23, %v2999_v20  ;;  %4233 = vmatprep.subr.mxu1 %v3014_v21 }
 0xd6a   : > { %4223 = vmatpush3.msra.mxu0 %v2906_v19  ;;  %4234 = vmatpush3.msra.mxu1 %v3014_v21 }
 0xd6b   : > { %4225 = vmatmul.mubr.msk.f32.vlgmr.msra.gmra.mxu0 %vm1365_vm2, %v2904_v24  ;;  %4235 = vmatprep.mubr.msk.f32.mxu1 %vm1365_vm2, %v3011_v43 }
 0xd6c   : > { %4236 = vmatmul.mubr.msk.f32.vlgmr.msra.gmra.mxu1 %vm1365_vm2, %v3012_v22 }
 0xe22   : > { %v4215_v47 = vpop.f32.mrf.mxu1 }
 0xe23   : > { %v4204_v42 = vpop.f32.mrf.mxu0 }
 0xe24   : > { %v2776_v46 = vadd.f32 %v4204_v42, %v3500_v6  ;;  %v2874_v50 = vpop.f32.mrf.mxu1 }
 0xe25   : > { %v2760_v44 = vpop.f32.mrf.mxu0 }
 0xe26   : > { %v2775_v48 = vadd.f32 %v3500_v6, %v2760_v44  ;;  %v2884_v49 = vadd.f32 %v4215_v47, %v2776_v46 }
 0xe28   : > { %v2883_v54 = vadd.f32 %v2874_v50, %v2775_v48 }
 0xe2b   : > { %v4226_v52 = vpop.f32.mrf.mxu0 }
 0xe2c   : > { %v2992_v60 = vadd.f32 %v4226_v52, %v2884_v49  ;;  %v4237_v37 = vpop.f32.mrf.mxu1 }
 0xe2d   : > { %v2982_v5 = vpop.f32.mrf.mxu0 }
 0xe2e   : > { %v2991_v3 = vadd.f32 %v2982_v5, %v2883_v54  ;;  %v3100_v35 = vadd.f32 %v4237_v37, %v2992_v60  ;;  %v3090_v26 = vpop.f32.mrf.mxu1 }
 0xe30   : > { %v3099_v29 = vadd.f32 %v3090_v26, %v2991_v3  ;;  %v3102_v62 = vadd.f32 %v3100_v35, %v2662_v32 }
 0xe32   : > { %3105 = vadd.xlane.f32.xlu1 %v3102_v62  ;;  %v3101_v8 = vadd.f32 %v3099_v29, %v2661_v4 }
 0xe34   : > { %3103 = vadd.xlane.f32.xlu0 %v3101_v8 }
 0xebb   : > { %v3106_v2 = vpop.xlane.xlu1 %3105 }
 0xebc   : > { %v3109_v55 = vmul.f32 0.0078125, %v3106_v2 }
 0xebd   : > { %v3104_v58 = vpop.xlane.xlu0 %3103 }
 0xebe   : > { %v3108_v28 = vmul.f32 0.0078125, %v3104_v58  ;;  %v3111_v51 = vsub.f32 %v3102_v62, %v3109_v55 }
 0xec0   : > { %v3110_v30 = vsub.f32 %v3101_v8, %v3108_v28  ;;  %v3113_v34 = vmul.f32 %v3111_v51, %v3111_v51 }
 0xec2   : > { %v3112_v53 = vmul.f32 %v3110_v30, %v3110_v30 }
 0xec4   : > { %3114 = vadd.xlane.f32.xlu0 %v3112_v53 }
 0xec8   : > { %3116 = vadd.xlane.f32.xlu0 %v3113_v34 }
 0xf4d   : > { %v3115_v56 = vpop.xlane.xlu0 %3114 }
 0xf4e   : > { %v3118_v63 = vmul.f32 0.0078125, %v3115_v56 }
 0xf50   : > { %v3120_v31 = vadd.f32 1e-05, %v3118_v63 }
 0xf51   : > { %v3117_v45 = vpop.xlane.xlu0 %3116 }
 0xf52   : > { %4495 = vrsqrt.f32 %v3120_v31  ;;  %v3119_v33 = vmul.f32 0.0078125, %v3117_v45 }
 0xf54   : > { %v3121_v59 = vadd.f32 1e-05, %v3119_v33 }
 0xf56   : > { %4497 = vrsqrt.f32 %v3121_v59 }
 0xf5f   : > { %v4496_v61 = vpop.eup %4495 }
 0xf60   : > { %v3124_v10 = vmul.f32 %v4496_v61, %v3110_v30 }
 0xf62   : > { %v3132_v41 = vmul.f32 %v5420_v0, %v3124_v10 }
 0xf63   : > { %v4498_v39 = vpop.eup %4497 }
 0xf64   : > { %v3140_v12 = vadd.f32 %v5425_v1, %v3132_v41  ;;  %v3125_v25 = vmul.f32 %v4498_v39, %v3111_v51 }
 0xf66   : > { %3142 = vst [vmem:[%s5432_s12] sm:$0xff] %v3140_v12  ;;  %v3133_v13 = vmul.f32 %v5420_v0, %v3125_v25 }
 0xf68   : > { %v3141_v14 = vadd.f32 %v5425_v1, %v3133_v13 }
 0xf6a   : > { %3143 = vst [vmem:[%s5432_s12 + $0x8] sm:$0xff] %v3141_v14 }
 0xf6b PF: > { %s6552_s1 = sld [smem:[#allocation37_spill]]  ;;  %s3158_s2 = sshll.u32 %s5432_s12, 4  ;;  %s6308_s2 = int_to_ptr.vmem [resolvable:$true] %s3158_s2 }
 0xf6c   : > { %s6553_s16 = sld [smem:[#allocation41_spill]]  ;;  %s3145_s24 = scalar_lea.sflag [#allocation8], %s5363_s9 }
 0xf6d   : > { %s6554_s6 = sld [smem:[#allocation64_spill]]  ;;  %s4743_s30 = scalar_lea.vmem %s6308_s2, 256 }
 0xf6e   : > { %p4744_p6 = scmp.ne.s32.totalorder %s6308_s2, %s4743_s30  ;;  %s4935_s28 = smov [#allocation21]  }
 0xf6f   : > { %s4747_s13 = sshll.u32 %s4935_s28, 4  ;;  %s4748_s13 = int_to_ptr.vmem [resolvable:$false] %s4747_s13 }
 0xf70   : > { %s4749_s0 = scalar_lea.vmem %s4748_s13, 512  ;;  %p4750_p11 = scmp.lt.s32.totalorder %s6308_s2, %s4748_s13 }
 0xf71   : > { %s3516_s20 = sshll.u32 %s6552_s1, 8  ;;  %p4751_p3 = scmp.lt.s32.totalorder %s4749_s0, %s4743_s30 }
 0xf72   : > { %p6555_p8 = scmp.ne.s32.totalorder %s6553_s16, 0 }
 0xf73   : > { %s6305_s7 = scalar_lea.hbm %s6554_s6, %s3516_s20  ;;  %p4752_p7 = por %p4751_p3, %p4750_p11 }
 0xf74   : > { %p4745_p9 = pnand %p4744_p6, %p6555_p8 }
 0xf76   : > { %p4746_p1 = pneg %p4745_p9 }
 0xf78   : > { %p4753_p2 = pnand %p4752_p7, %p4746_p1 }
 0xf7a   : > { %4756 = shalt.err (!%p4753_p2)
}
 0xf7b   : > { %s4757_s12 = scalar_lea.hbm %s6305_s7, 256  ;;  %s4761_s25 = scalar_lea.hbm %s6554_s6, 512 }
 0xf7c   : > { %p4758_p13 = scmp.ne.s32.totalorder %s6305_s7, %s4757_s12  ;;  %p4762_p5 = scmp.lt.s32.totalorder %s6305_s7, %s6554_s6 }
 0xf7d   : > { %p4763_p10 = scmp.lt.s32.totalorder %s4761_s25, %s4757_s12 }
 0xf7e   : > { %p4759_p4 = pnand %p4758_p13, %p6555_p8 }
 0xf7f   : > { %p4764_p12 = por %p4763_p10, %p4762_p5 }
 0xf80   : > { %p4760_p0 = pneg %p4759_p4 }
 0xf82   : > { %p4765_p6 = pnand %p4764_p12, %p4760_p0 }
 0xf84   : > { %4768 = shalt.err (!%p4765_p6)
}
 0xf85   : > { %s4936_s14 = smov 128   ;;  %s4937_s23 = smov 8  }
 0xf86   : > { %4267 = dma.vmem_to_hbm [thread:$0]  (%p6555_p8), %s6308_s2, 256, %s6305_s7, %s3145_s24, %s4936_s14, %s4936_s14, %s4937_s23  }
 0xf87 PF: > { %s6556_s1 = sld [smem:[#allocation34_spill]]  ;;  %p4311_p9 = scmp.ge.s32.totalorder %s4911_s19, 2 }
 0xf88   : > { %s6557_s20 = sld [smem:[#allocation42_spill]] }
 0xf8d   : > { %s3173_s3 = sand.u32 1, %s6556_s1  }
 0xf8e   : > { %p6558_p1 = scmp.ne.s32.totalorder %s6557_s20, 0  ;;  %s3174_s27 = scalar_lea.sflag [#allocation8], %s3173_s3 }
 0xf90   : > { %p4299_p11 = pnand %p4311_p9, %p6558_p1 }
 0xf92   : > { %p4300_p3 = pneg %p4299_p11 }
 0xf94   : > { %4854 = dma.done.wait (%p4300_p3), %s3174_s27, 256  }
 0xf95   : > { %4856 = vsyncadd (%p4300_p3), %s3174_s27, 4294967040  ;;  %s40_s19 = sadd.s32 1, %s4911_s19   ;;  %s6560_s9 = sld [smem:[#allocation31_spill]] }
 0xf96   : > { %p6338_p7 = scmp.ge.s32.totalorder %s40_s19, 8   ;;  %s6561_s16 = sld [smem:[#allocation32_spill]] }
 0xf97   : > { %s6562_s24 = sld [smem:[#allocation33_spill]]  ;;  %s6563_s7 = smov %s5237_s22 }
 0xf98   : > { %s6564_s27 = sld [smem:[#allocation35_spill]]  ;;  %s6565_s2 = smov %s5234_s21 }
 0xf99   : > { %s6566_s13 = sld [smem:[#allocation46_spill]]  ;;  %s6570_s23 = smov %s5330_s5 }
 0xf9a   : > { %s6571_s25 = smov %s4879_s26  ;;  %s6572_s26 = smov %s6563_s7 }
 0xf9b   : > { %s6568_s21 = smov %s6560_s9  ;;  %s6573_s28 = smov %s4891_s29 }
 0xf9c   : > { %s6569_s22 = smov %s6561_s16  ;;  %s6574_s29 = smov %s6565_s2 }
 0xf9d   : > { %s6575_s30 = smov %s4903_s17  ;;  %s6576_s0 = smov %s4907_s18 }
 0xf9e   : > { %s6578_s18 = smov %s6584_s4  ;;  %39 = sbr.rel (!%p6338_p7) target bundleno = 34 (0x22), region = 222 }
 0xf9f   : > { %s6577_s17 = smov %s6566_s13 }
 0xfa3   :  { %3179 = vsyncpa [#allocation7], 1 }
 0xfa4   :  { %3181 = vsyncpa [#allocation7 + $0x1], 1 }
 0xfa5   :  { %3182 = vsyncpa [#allocation10], 1 }
 0xfa6   :  { %3184 = vsyncpa [#allocation10 + $0x1], 1 }
 0xfa7   :  { %3185 = vsyncpa [#allocation13], 1 }
 0xfa8   :  { %3187 = vsyncpa [#allocation13 + $0x1], 1 }
 0xfa9   :  { %3188 = vsyncpa [#allocation16], 1 }
 0xfaa   :  { %3189 = vsyncpa [#allocation19], 1 }
 0xfab   :  { %3190 = vsyncpa [#allocation8], 1 }
 0xfac   :  { %3192 = vsyncpa [#allocation8 + $0x1], 1 }

</bundles_post_ra>
